<compile_context>
chip_gen: v7x
topology: tpu7x:2x2x1
jax: 0.10.0
libtpu: 0.0.40
codegen_flags: <defaults>
</compile_context>

<pallas_src>
import jax
import jax.numpy as jnp
from jax.experimental import pallas as pl
from jax.experimental.pallas import tpu as pltpu


# ------------------------------------------------------------------
# Fused conv-stack kernel
# ------------------------------------------------------------------
def _conv3x3_relu(x, w_ref, b_ref):
    """One VALID 3x3 conv + bias + ReLU, keeping the full padded width.

    x      : (hin, wp, cin)  f32 value (wp = 8-aligned padded width)
    w_ref  : (3, 3*cin, cout) VMEM ref, packed so row index = dx*cin + ci
    b_ref  : (1, cout)        VMEM ref
    returns: (hin-2, wp, cout) f32; columns >= true valid width are don't-care.
    """
    hin, wp, cin = x.shape
    cout = w_ref.shape[-1]
    hout = hin - 2

    # dx taps aligned with XLU rolls along W, packed into the channel (K) dim.
    taps = [x] + [pltpu.roll(x, wp - dx, axis=1) for dx in (1, 2)]
    cols = jnp.concatenate(taps, axis=-1)                  # (hin, wp, 3*cin)

    acc = jnp.zeros((hout * wp, cout), jnp.float32)
    for dy in range(3):                                    # 3 matmuls, K = 3*cin
        lhs = cols[dy:dy + hout].reshape(hout * wp, 3 * cin)   # tile-preserving
        acc = acc + jnp.dot(lhs, w_ref[dy], preferred_element_type=jnp.float32)

    y = acc.reshape(hout, wp, cout) + b_ref[...]
    return jnp.maximum(y, 0.0)                             # ReLU


def fused_conv_kernel(x_ref, w1, b1, w2, b2, w3, b3, w4, b4, o_ref):
    """All four conv+ReLU layers for one image; activations never leave VMEM."""
    wf = o_ref.shape[2]                 # true valid output width of layer 4
    y = x_ref[0]                        # (H, Wp, 1)
    y = _conv3x3_relu(y, w1, b1)
    y = _conv3x3_relu(y, w2, b2)
    y = _conv3x3_relu(y, w3, b3)
    y = _conv3x3_relu(y, w4, b4)        # (H-8, Wp, 256), 256 lanes -> dense store
    o_ref[0] = y[:, :wf, :]


# ------------------------------------------------------------------
# K-tiled Linear kernel (bias init via pl.when, resident f32 accumulator)
# ------------------------------------------------------------------
def linear_kernel(x_ref, w_ref, b_ref, o_ref):
    @pl.when(pl.program_id(0) == 0)
    def _():
        o_ref[...] = jnp.broadcast_to(b_ref[...], o_ref.shape)
    o_ref[...] += jnp.dot(x_ref[...].astype(w_ref.dtype), w_ref[...],
                          preferred_element_type=jnp.float32)


# ------------------------------------------------------------------
# Wrapper: full forward pass matching the PyTorch module (NCHW in, (N,69) out)
# ------------------------------------------------------------------
def image_classifier_forward(x_nchw, params):
    n, c, h, w = x_nchw.shape
    assert c == 1
    hf, wf = h - 8, w - 8
    w_pad = ((w + 7) // 8) * 8          # 8-align W so in-kernel reshapes/rolls are clean

    x = jnp.transpose(x_nchw, (0, 2, 3, 1))                      # NCHW -> NHWC
    x = jnp.pad(x, ((0, 0), (0, 0), (0, w_pad - w), (0, 0)))     # pad W

    # Pack conv weights (3,3,cin,cout) -> (3, 3*cin, cout): row = dx*cin + ci.
    conv_ws = [wgt.reshape(3, 3 * wgt.shape[2], wgt.shape[3])
               for (wgt, _) in params["convs"]]
    conv_bs = [b for (_, b) in params["convs"]]

    conv_in_specs = [pl.BlockSpec((1, h, w_pad, 1), lambda i: (i, 0, 0, 0))]
    for wp_, bp_ in zip(conv_ws, conv_bs):
        conv_in_specs.append(pl.BlockSpec(wp_.shape, lambda i: (0, 0, 0)))
        conv_in_specs.append(pl.BlockSpec(bp_.shape, lambda i: (0, 0)))

    conv_out = pl.pallas_call(
        fused_conv_kernel,
        out_shape=jax.ShapeDtypeStruct((n, hf, wf, 256), jnp.float32),
        grid=(n,),
        in_specs=conv_in_specs,
        out_specs=pl.BlockSpec((1, hf, wf, 256), lambda i: (i, 0, 0, 0)),
        compiler_params=pltpu.CompilerParams(
            dimension_semantics=("parallel",)),     # batch images independent (2 TCs on v7x)
    )(x, *[a for pair in zip(conv_ws, conv_bs) for a in pair])

    # Flatten NHWC directly (tiny XLA reshape of a ~0.1 MB activation) and fold
    # the PyTorch (C,H,W)-flatten order into fc_w instead of transposing the
    # activation. Pad the output lane dim 69 -> 128 for unmasked stores.
    feat = 256 * hf * wf
    out_dim = params["fc_b"].shape[-1]
    out_pad = ((out_dim + 127) // 128) * 128
    acts = conv_out.reshape(n, feat)

    fcw = params["fc_w"].reshape(256, hf, wf, out_dim)
    fcw = jnp.transpose(fcw, (1, 2, 0, 3)).reshape(feat, out_dim)      # CHW -> HWC row order
    fcw = jnp.pad(fcw, ((0, 0), (0, out_pad - out_dim))).astype(jnp.bfloat16)
    fcb = jnp.pad(params["fc_b"], ((0, 0), (0, out_pad - out_dim)))

    tk = 2048 if feat % 2048 == 0 else feat
    out = pl.pallas_call(
        linear_kernel,
        out_shape=jax.ShapeDtypeStruct((n, out_pad), jnp.float32),
        grid=(feat // tk,),
        in_specs=[pl.BlockSpec((n, tk), lambda k: (0, k)),
                  pl.BlockSpec((tk, out_pad), lambda k: (k, 0)),
                  pl.BlockSpec((1, out_pad), lambda k: (0, 0))],
        out_specs=pl.BlockSpec((n, out_pad), lambda k: (0, 0)),
        compiler_params=pltpu.CompilerParams(
            dimension_semantics=("arbitrary",)),    # K is a reduction axis
    )(acts, fcw, fcb)
    return out[:, :out_dim]


# ------------------------------------------------------------------
# Pure-JAX reference (numerical sanity check)
# ------------------------------------------------------------------
def reference_forward(x_nchw, params):
    x = jnp.transpose(x_nchw, (0, 2, 3, 1))
    for (w, b) in params["convs"]:
        x = jax.lax.conv_general_dilated(
            x, w, window_strides=(1, 1), padding="VALID",
            dimension_numbers=("NHWC", "HWIO", "NHWC"))
        x = jnp.maximum(x + b.reshape(1, 1, 1, -1), 0.0)
    x = jnp.transpose(x, (0, 3, 1, 2)).reshape(x.shape[0], -1)   # PyTorch CHW flatten
    return x @ params["fc_w"] + params["fc_b"]


# ------------------------------------------------------------------
# Deterministic parameter initialization (shapes from the module __init__)
# ------------------------------------------------------------------
def init_params(key, h_in, w_in):
    chans = [1, 32, 64, 128, 256]
    convs = []
    for cin, cout in zip(chans[:-1], chans[1:]):
        key, kw, kb = jax.random.split(key, 3)
        fan_in = cin * 3 * 3
        w = jax.random.normal(kw, (3, 3, cin, cout), jnp.float32) / jnp.sqrt(fan_in)
        b = jax.random.normal(kb, (1, cout), jnp.float32) * 0.01
        convs.append((w, b))
    h_out, w_out = h_in - 8, w_in - 8
    feat = 256 * h_out * w_out
    key, kw, kb = jax.random.split(key, 3)
    fc_w = jax.random.normal(kw, (feat, 69), jnp.float32) / jnp.sqrt(feat)
    fc_b = jax.random.normal(kb, (1, 69), jnp.float32) * 0.01
    return {"convs": convs, "fc_w": fc_w, "fc_b": fc_b}


if __name__ == "__main__":
    key = jax.random.PRNGKey(0)
    key, kx = jax.random.split(key)

    # Small input consistent with the module: N=2, C=1, H=16, W=15
    # (H != W, mirroring the original 128 x 127 expectation at reduced scale).
    N, C, H, W = 2, 1, 16, 15
    x = jax.random.normal(kx, (N, C, H, W), jnp.float32)
    params = init_params(key, H, W)

    fwd = jax.jit(image_classifier_forward)
    out = jax.block_until_ready(fwd(x, params))
    assert out.shape == (N, 69), out.shape
    assert out.dtype == jnp.float32

    ref = jax.block_until_ready(reference_forward(x, params))
    assert bool(jnp.allclose(out, ref, rtol=2e-2, atol=2e-2)), "mismatch vs reference"

    print("KERNEL_OK")
</pallas_src>

<mosaic_0001>
module attributes {stable_mosaic.version = 11 : i64} {
  func.func @fused_conv_kernel(%arg0: i32, %arg1: memref<1x16x16x1xf32, #tpu.memory_space<vmem>>, %arg2: memref<3x3x32xf32, #tpu.memory_space<vmem>>, %arg3: memref<1x32xf32, #tpu.memory_space<vmem>>, %arg4: memref<3x96x64xf32, #tpu.memory_space<vmem>>, %arg5: memref<1x64xf32, #tpu.memory_space<vmem>>, %arg6: memref<3x192x128xf32, #tpu.memory_space<vmem>>, %arg7: memref<1x128xf32, #tpu.memory_space<vmem>>, %arg8: memref<3x384x256xf32, #tpu.memory_space<vmem>>, %arg9: memref<1x256xf32, #tpu.memory_space<vmem>>, %arg10: memref<1x8x7x256xf32, #tpu.memory_space<vmem>>) attributes {dimension_semantics = [#tpu.dimension_semantics<parallel>], iteration_bounds = array<i64: 2>, scalar_prefetch = 0 : i64, scratch_operands = 0 : i64, tpu.core_type = #tpu.core_type<tc>, window_params = [{transform_indices = @transform_0, window_bounds = array<i64: 1, 16, 16, 1>}, {pipeline_mode = #tpu.pipeline_mode<synchronous>, transform_indices = @transform_1, window_bounds = array<i64: 3, 3, 32>}, {pipeline_mode = #tpu.pipeline_mode<synchronous>, transform_indices = @transform_2, window_bounds = array<i64: 1, 32>}, {pipeline_mode = #tpu.pipeline_mode<synchronous>, transform_indices = @transform_3, window_bounds = array<i64: 3, 96, 64>}, {pipeline_mode = #tpu.pipeline_mode<synchronous>, transform_indices = @transform_4, window_bounds = array<i64: 1, 64>}, {pipeline_mode = #tpu.pipeline_mode<synchronous>, transform_indices = @transform_5, window_bounds = array<i64: 3, 192, 128>}, {pipeline_mode = #tpu.pipeline_mode<synchronous>, transform_indices = @transform_6, window_bounds = array<i64: 1, 128>}, {pipeline_mode = #tpu.pipeline_mode<synchronous>, transform_indices = @transform_7, window_bounds = array<i64: 3, 384, 256>}, {pipeline_mode = #tpu.pipeline_mode<synchronous>, transform_indices = @transform_8, window_bounds = array<i64: 1, 256>}, {transform_indices = @transform_9, window_bounds = array<i64: 1, 8, 7, 256>}]} {
    %c0 = arith.constant 0 : index
    %c0_0 = arith.constant 0 : index
    %c0_1 = arith.constant 0 : index
    %c0_2 = arith.constant 0 : index
    %0 = vector.load %arg1[%c0, %c0_0, %c0_1, %c0_2] : memref<1x16x16x1xf32, #tpu.memory_space<vmem>>, vector<1x16x16x1xf32>
    %1 = vector.shape_cast %0 : vector<1x16x16x1xf32> to vector<16x16x1xf32>
    %c15_i32 = arith.constant 15 : i32
    %2 = tpu.dynamic_rotate %1 by %c15_i32 dim 1 : vector<16x16x1xf32>, i32 -> vector<16x16x1xf32>
    %c14_i32 = arith.constant 14 : i32
    %3 = tpu.dynamic_rotate %1 by %c14_i32 dim 1 : vector<16x16x1xf32>, i32 -> vector<16x16x1xf32>
    %4 = tpu.concatenate %1, %2, %3 in 2 : vector<16x16x1xf32>, vector<16x16x1xf32>, vector<16x16x1xf32> -> vector<16x16x3xf32>
    %cst = arith.constant 0.000000e+00 : f32
    %5 = vector.broadcast %cst : f32 to vector<224x32xf32>
    %6 = vector.extract_strided_slice %4 {offsets = [0, 0, 0], sizes = [14, 16, 3], strides = [1, 1, 1]} : vector<16x16x3xf32> to vector<14x16x3xf32>
    %7 = vector.shape_cast %6 : vector<14x16x3xf32> to vector<224x3xf32>
    %c0_3 = arith.constant 0 : index
    %c0_4 = arith.constant 0 : index
    %c0_5 = arith.constant 0 : index
    %8 = vector.load %arg2[%c0_3, %c0_4, %c0_5] : memref<3x3x32xf32, #tpu.memory_space<vmem>>, vector<1x3x32xf32>
    %9 = vector.shape_cast %8 : vector<1x3x32xf32> to vector<3x32xf32>
    %cst_6 = arith.constant dense<0.000000e+00> : vector<224x32xf32>
    %10 = tpu.matmul %7, %9, %cst_6 {dimension_numbers = #tpu.dot_dimension_numbers<[1], [0], [0], [1], [0, 0, 1, 1], [], []>} : vector<224x3xf32>, vector<3x32xf32>, vector<224x32xf32> -> vector<224x32xf32>
    %11 = arith.addf %5, %10 : vector<224x32xf32>
    %12 = vector.extract_strided_slice %4 {offsets = [1, 0, 0], sizes = [14, 16, 3], strides = [1, 1, 1]} : vector<16x16x3xf32> to vector<14x16x3xf32>
    %13 = vector.shape_cast %12 : vector<14x16x3xf32> to vector<224x3xf32>
    %c1 = arith.constant 1 : index
    %c0_7 = arith.constant 0 : index
    %c0_8 = arith.constant 0 : index
    %14 = vector.load %arg2[%c1, %c0_7, %c0_8] : memref<3x3x32xf32, #tpu.memory_space<vmem>>, vector<1x3x32xf32>
    %15 = vector.shape_cast %14 : vector<1x3x32xf32> to vector<3x32xf32>
    %cst_9 = arith.constant dense<0.000000e+00> : vector<224x32xf32>
    %16 = tpu.matmul %13, %15, %cst_9 {dimension_numbers = #tpu.dot_dimension_numbers<[1], [0], [0], [1], [0, 0, 1, 1], [], []>} : vector<224x3xf32>, vector<3x32xf32>, vector<224x32xf32> -> vector<224x32xf32>
    %17 = arith.addf %11, %16 : vector<224x32xf32>
    %18 = vector.extract_strided_slice %4 {offsets = [2, 0, 0], sizes = [14, 16, 3], strides = [1, 1, 1]} : vector<16x16x3xf32> to vector<14x16x3xf32>
    %19 = vector.shape_cast %18 : vector<14x16x3xf32> to vector<224x3xf32>
    %c2 = arith.constant 2 : index
    %c0_10 = arith.constant 0 : index
    %c0_11 = arith.constant 0 : index
    %20 = vector.load %arg2[%c2, %c0_10, %c0_11] : memref<3x3x32xf32, #tpu.memory_space<vmem>>, vector<1x3x32xf32>
    %21 = vector.shape_cast %20 : vector<1x3x32xf32> to vector<3x32xf32>
    %cst_12 = arith.constant dense<0.000000e+00> : vector<224x32xf32>
    %22 = tpu.matmul %19, %21, %cst_12 {dimension_numbers = #tpu.dot_dimension_numbers<[1], [0], [0], [1], [0, 0, 1, 1], [], []>} : vector<224x3xf32>, vector<3x32xf32>, vector<224x32xf32> -> vector<224x32xf32>
    %23 = arith.addf %17, %22 : vector<224x32xf32>
    %24 = vector.shape_cast %23 : vector<224x32xf32> to vector<14x16x32xf32>
    %c0_13 = arith.constant 0 : index
    %c0_14 = arith.constant 0 : index
    %25 = vector.load %arg3[%c0_13, %c0_14] : memref<1x32xf32, #tpu.memory_space<vmem>>, vector<1x32xf32>
    %26 = vector.shape_cast %25 : vector<1x32xf32> to vector<1x1x32xf32>
    %27 = vector.broadcast %26 : vector<1x1x32xf32> to vector<14x16x32xf32>
    %28 = arith.addf %24, %27 : vector<14x16x32xf32>
    %cst_15 = arith.constant 0.000000e+00 : f32
    %29 = vector.broadcast %cst_15 : f32 to vector<14x16x32xf32>
    %30 = arith.maximumf %28, %29 : vector<14x16x32xf32>
    %c15_i32_16 = arith.constant 15 : i32
    %31 = tpu.dynamic_rotate %30 by %c15_i32_16 dim 1 : vector<14x16x32xf32>, i32 -> vector<14x16x32xf32>
    %c14_i32_17 = arith.constant 14 : i32
    %32 = tpu.dynamic_rotate %30 by %c14_i32_17 dim 1 : vector<14x16x32xf32>, i32 -> vector<14x16x32xf32>
    %33 = tpu.concatenate %30, %31, %32 in 2 : vector<14x16x32xf32>, vector<14x16x32xf32>, vector<14x16x32xf32> -> vector<14x16x96xf32>
    %cst_18 = arith.constant 0.000000e+00 : f32
    %34 = vector.broadcast %cst_18 : f32 to vector<192x64xf32>
    %35 = vector.extract_strided_slice %33 {offsets = [0, 0, 0], sizes = [12, 16, 96], strides = [1, 1, 1]} : vector<14x16x96xf32> to vector<12x16x96xf32>
    %36 = vector.shape_cast %35 : vector<12x16x96xf32> to vector<192x96xf32>
    %c0_19 = arith.constant 0 : index
    %c0_20 = arith.constant 0 : index
    %c0_21 = arith.constant 0 : index
    %37 = vector.load %arg4[%c0_19, %c0_20, %c0_21] : memref<3x96x64xf32, #tpu.memory_space<vmem>>, vector<1x96x64xf32>
    %38 = vector.shape_cast %37 : vector<1x96x64xf32> to vector<96x64xf32>
    %cst_22 = arith.constant dense<0.000000e+00> : vector<192x64xf32>
    %39 = tpu.matmul %36, %38, %cst_22 {dimension_numbers = #tpu.dot_dimension_numbers<[1], [0], [0], [1], [0, 0, 1, 1], [], []>} : vector<192x96xf32>, vector<96x64xf32>, vector<192x64xf32> -> vector<192x64xf32>
    %40 = arith.addf %34, %39 : vector<192x64xf32>
    %41 = vector.extract_strided_slice %33 {offsets = [1, 0, 0], sizes = [12, 16, 96], strides = [1, 1, 1]} : vector<14x16x96xf32> to vector<12x16x96xf32>
    %42 = vector.shape_cast %41 : vector<12x16x96xf32> to vector<192x96xf32>
    %c1_23 = arith.constant 1 : index
    %c0_24 = arith.constant 0 : index
    %c0_25 = arith.constant 0 : index
    %43 = vector.load %arg4[%c1_23, %c0_24, %c0_25] : memref<3x96x64xf32, #tpu.memory_space<vmem>>, vector<1x96x64xf32>
    %44 = vector.shape_cast %43 : vector<1x96x64xf32> to vector<96x64xf32>
    %cst_26 = arith.constant dense<0.000000e+00> : vector<192x64xf32>
    %45 = tpu.matmul %42, %44, %cst_26 {dimension_numbers = #tpu.dot_dimension_numbers<[1], [0], [0], [1], [0, 0, 1, 1], [], []>} : vector<192x96xf32>, vector<96x64xf32>, vector<192x64xf32> -> vector<192x64xf32>
    %46 = arith.addf %40, %45 : vector<192x64xf32>
    %47 = vector.extract_strided_slice %33 {offsets = [2, 0, 0], sizes = [12, 16, 96], strides = [1, 1, 1]} : vector<14x16x96xf32> to vector<12x16x96xf32>
    %48 = vector.shape_cast %47 : vector<12x16x96xf32> to vector<192x96xf32>
    %c2_27 = arith.constant 2 : index
    %c0_28 = arith.constant 0 : index
    %c0_29 = arith.constant 0 : index
    %49 = vector.load %arg4[%c2_27, %c0_28, %c0_29] : memref<3x96x64xf32, #tpu.memory_space<vmem>>, vector<1x96x64xf32>
    %50 = vector.shape_cast %49 : vector<1x96x64xf32> to vector<96x64xf32>
    %cst_30 = arith.constant dense<0.000000e+00> : vector<192x64xf32>
    %51 = tpu.matmul %48, %50, %cst_30 {dimension_numbers = #tpu.dot_dimension_numbers<[1], [0], [0], [1], [0, 0, 1, 1], [], []>} : vector<192x96xf32>, vector<96x64xf32>, vector<192x64xf32> -> vector<192x64xf32>
    %52 = arith.addf %46, %51 : vector<192x64xf32>
    %53 = vector.shape_cast %52 : vector<192x64xf32> to vector<12x16x64xf32>
    %c0_31 = arith.constant 0 : index
    %c0_32 = arith.constant 0 : index
    %54 = vector.load %arg5[%c0_31, %c0_32] : memref<1x64xf32, #tpu.memory_space<vmem>>, vector<1x64xf32>
    %55 = vector.shape_cast %54 : vector<1x64xf32> to vector<1x1x64xf32>
    %56 = vector.broadcast %55 : vector<1x1x64xf32> to vector<12x16x64xf32>
    %57 = arith.addf %53, %56 : vector<12x16x64xf32>
    %cst_33 = arith.constant 0.000000e+00 : f32
    %58 = vector.broadcast %cst_33 : f32 to vector<12x16x64xf32>
    %59 = arith.maximumf %57, %58 : vector<12x16x64xf32>
    %c15_i32_34 = arith.constant 15 : i32
    %60 = tpu.dynamic_rotate %59 by %c15_i32_34 dim 1 : vector<12x16x64xf32>, i32 -> vector<12x16x64xf32>
    %c14_i32_35 = arith.constant 14 : i32
    %61 = tpu.dynamic_rotate %59 by %c14_i32_35 dim 1 : vector<12x16x64xf32>, i32 -> vector<12x16x64xf32>
    %62 = tpu.concatenate %59, %60, %61 in 2 : vector<12x16x64xf32>, vector<12x16x64xf32>, vector<12x16x64xf32> -> vector<12x16x192xf32>
    %cst_36 = arith.constant 0.000000e+00 : f32
    %63 = vector.broadcast %cst_36 : f32 to vector<160x128xf32>
    %64 = vector.extract_strided_slice %62 {offsets = [0, 0, 0], sizes = [10, 16, 192], strides = [1, 1, 1]} : vector<12x16x192xf32> to vector<10x16x192xf32>
    %65 = vector.shape_cast %64 : vector<10x16x192xf32> to vector<160x192xf32>
    %c0_37 = arith.constant 0 : index
    %c0_38 = arith.constant 0 : index
    %c0_39 = arith.constant 0 : index
    %66 = vector.load %arg6[%c0_37, %c0_38, %c0_39] : memref<3x192x128xf32, #tpu.memory_space<vmem>>, vector<1x192x128xf32>
    %67 = vector.shape_cast %66 : vector<1x192x128xf32> to vector<192x128xf32>
    %cst_40 = arith.constant dense<0.000000e+00> : vector<160x128xf32>
    %68 = tpu.matmul %65, %67, %cst_40 {dimension_numbers = #tpu.dot_dimension_numbers<[1], [0], [0], [1], [0, 0, 1, 1], [], []>} : vector<160x192xf32>, vector<192x128xf32>, vector<160x128xf32> -> vector<160x128xf32>
    %69 = arith.addf %63, %68 : vector<160x128xf32>
    %70 = vector.extract_strided_slice %62 {offsets = [1, 0, 0], sizes = [10, 16, 192], strides = [1, 1, 1]} : vector<12x16x192xf32> to vector<10x16x192xf32>
    %71 = vector.shape_cast %70 : vector<10x16x192xf32> to vector<160x192xf32>
    %c1_41 = arith.constant 1 : index
    %c0_42 = arith.constant 0 : index
    %c0_43 = arith.constant 0 : index
    %72 = vector.load %arg6[%c1_41, %c0_42, %c0_43] : memref<3x192x128xf32, #tpu.memory_space<vmem>>, vector<1x192x128xf32>
    %73 = vector.shape_cast %72 : vector<1x192x128xf32> to vector<192x128xf32>
    %cst_44 = arith.constant dense<0.000000e+00> : vector<160x128xf32>
    %74 = tpu.matmul %71, %73, %cst_44 {dimension_numbers = #tpu.dot_dimension_numbers<[1], [0], [0], [1], [0, 0, 1, 1], [], []>} : vector<160x192xf32>, vector<192x128xf32>, vector<160x128xf32> -> vector<160x128xf32>
    %75 = arith.addf %69, %74 : vector<160x128xf32>
    %76 = vector.extract_strided_slice %62 {offsets = [2, 0, 0], sizes = [10, 16, 192], strides = [1, 1, 1]} : vector<12x16x192xf32> to vector<10x16x192xf32>
    %77 = vector.shape_cast %76 : vector<10x16x192xf32> to vector<160x192xf32>
    %c2_45 = arith.constant 2 : index
    %c0_46 = arith.constant 0 : index
    %c0_47 = arith.constant 0 : index
    %78 = vector.load %arg6[%c2_45, %c0_46, %c0_47] : memref<3x192x128xf32, #tpu.memory_space<vmem>>, vector<1x192x128xf32>
    %79 = vector.shape_cast %78 : vector<1x192x128xf32> to vector<192x128xf32>
    %cst_48 = arith.constant dense<0.000000e+00> : vector<160x128xf32>
    %80 = tpu.matmul %77, %79, %cst_48 {dimension_numbers = #tpu.dot_dimension_numbers<[1], [0], [0], [1], [0, 0, 1, 1], [], []>} : vector<160x192xf32>, vector<192x128xf32>, vector<160x128xf32> -> vector<160x128xf32>
    %81 = arith.addf %75, %80 : vector<160x128xf32>
    %82 = vector.shape_cast %81 : vector<160x128xf32> to vector<10x16x128xf32>
    %c0_49 = arith.constant 0 : index
    %c0_50 = arith.constant 0 : index
    %83 = vector.load %arg7[%c0_49, %c0_50] : memref<1x128xf32, #tpu.memory_space<vmem>>, vector<1x128xf32>
    %84 = vector.shape_cast %83 : vector<1x128xf32> to vector<1x1x128xf32>
    %85 = vector.broadcast %84 : vector<1x1x128xf32> to vector<10x16x128xf32>
    %86 = arith.addf %82, %85 : vector<10x16x128xf32>
    %cst_51 = arith.constant 0.000000e+00 : f32
    %87 = vector.broadcast %cst_51 : f32 to vector<10x16x128xf32>
    %88 = arith.maximumf %86, %87 : vector<10x16x128xf32>
    %c15_i32_52 = arith.constant 15 : i32
    %89 = tpu.dynamic_rotate %88 by %c15_i32_52 dim 1 : vector<10x16x128xf32>, i32 -> vector<10x16x128xf32>
    %c14_i32_53 = arith.constant 14 : i32
    %90 = tpu.dynamic_rotate %88 by %c14_i32_53 dim 1 : vector<10x16x128xf32>, i32 -> vector<10x16x128xf32>
    %91 = tpu.concatenate %88, %89, %90 in 2 : vector<10x16x128xf32>, vector<10x16x128xf32>, vector<10x16x128xf32> -> vector<10x16x384xf32>
    %cst_54 = arith.constant 0.000000e+00 : f32
    %92 = vector.broadcast %cst_54 : f32 to vector<128x256xf32>
    %93 = vector.extract_strided_slice %91 {offsets = [0, 0, 0], sizes = [8, 16, 384], strides = [1, 1, 1]} : vector<10x16x384xf32> to vector<8x16x384xf32>
    %94 = vector.shape_cast %93 : vector<8x16x384xf32> to vector<128x384xf32>
    %c0_55 = arith.constant 0 : index
    %c0_56 = arith.constant 0 : index
    %c0_57 = arith.constant 0 : index
    %95 = vector.load %arg8[%c0_55, %c0_56, %c0_57] : memref<3x384x256xf32, #tpu.memory_space<vmem>>, vector<1x384x256xf32>
    %96 = vector.shape_cast %95 : vector<1x384x256xf32> to vector<384x256xf32>
    %cst_58 = arith.constant dense<0.000000e+00> : vector<128x256xf32>
    %97 = tpu.matmul %94, %96, %cst_58 {dimension_numbers = #tpu.dot_dimension_numbers<[1], [0], [0], [1], [0, 0, 1, 1], [], []>} : vector<128x384xf32>, vector<384x256xf32>, vector<128x256xf32> -> vector<128x256xf32>
    %98 = arith.addf %92, %97 : vector<128x256xf32>
    %99 = vector.extract_strided_slice %91 {offsets = [1, 0, 0], sizes = [8, 16, 384], strides = [1, 1, 1]} : vector<10x16x384xf32> to vector<8x16x384xf32>
    %100 = vector.shape_cast %99 : vector<8x16x384xf32> to vector<128x384xf32>
    %c1_59 = arith.constant 1 : index
    %c0_60 = arith.constant 0 : index
    %c0_61 = arith.constant 0 : index
    %101 = vector.load %arg8[%c1_59, %c0_60, %c0_61] : memref<3x384x256xf32, #tpu.memory_space<vmem>>, vector<1x384x256xf32>
    %102 = vector.shape_cast %101 : vector<1x384x256xf32> to vector<384x256xf32>
    %cst_62 = arith.constant dense<0.000000e+00> : vector<128x256xf32>
    %103 = tpu.matmul %100, %102, %cst_62 {dimension_numbers = #tpu.dot_dimension_numbers<[1], [0], [0], [1], [0, 0, 1, 1], [], []>} : vector<128x384xf32>, vector<384x256xf32>, vector<128x256xf32> -> vector<128x256xf32>
    %104 = arith.addf %98, %103 : vector<128x256xf32>
    %105 = vector.extract_strided_slice %91 {offsets = [2, 0, 0], sizes = [8, 16, 384], strides = [1, 1, 1]} : vector<10x16x384xf32> to vector<8x16x384xf32>
    %106 = vector.shape_cast %105 : vector<8x16x384xf32> to vector<128x384xf32>
    %c2_63 = arith.constant 2 : index
    %c0_64 = arith.constant 0 : index
    %c0_65 = arith.constant 0 : index
    %107 = vector.load %arg8[%c2_63, %c0_64, %c0_65] : memref<3x384x256xf32, #tpu.memory_space<vmem>>, vector<1x384x256xf32>
    %108 = vector.shape_cast %107 : vector<1x384x256xf32> to vector<384x256xf32>
    %cst_66 = arith.constant dense<0.000000e+00> : vector<128x256xf32>
    %109 = tpu.matmul %106, %108, %cst_66 {dimension_numbers = #tpu.dot_dimension_numbers<[1], [0], [0], [1], [0, 0, 1, 1], [], []>} : vector<128x384xf32>, vector<384x256xf32>, vector<128x256xf32> -> vector<128x256xf32>
    %110 = arith.addf %104, %109 : vector<128x256xf32>
    %111 = vector.shape_cast %110 : vector<128x256xf32> to vector<8x16x256xf32>
    %c0_67 = arith.constant 0 : index
    %c0_68 = arith.constant 0 : index
    %112 = vector.load %arg9[%c0_67, %c0_68] : memref<1x256xf32, #tpu.memory_space<vmem>>, vector<1x256xf32>
    %113 = vector.shape_cast %112 : vector<1x256xf32> to vector<1x1x256xf32>
    %114 = vector.broadcast %113 : vector<1x1x256xf32> to vector<8x16x256xf32>
    %115 = arith.addf %111, %114 : vector<8x16x256xf32>
    %cst_69 = arith.constant 0.000000e+00 : f32
    %116 = vector.broadcast %cst_69 : f32 to vector<8x16x256xf32>
    %117 = arith.maximumf %115, %116 : vector<8x16x256xf32>
    %118 = vector.extract_strided_slice %117 {offsets = [0, 0, 0], sizes = [8, 7, 256], strides = [1, 1, 1]} : vector<8x16x256xf32> to vector<8x7x256xf32>
    %c0_70 = arith.constant 0 : index
    %c0_71 = arith.constant 0 : index
    %c0_72 = arith.constant 0 : index
    %c0_73 = arith.constant 0 : index
    %119 = vector.load %arg10[%c0_70, %c0_71, %c0_72, %c0_73] : memref<1x8x7x256xf32, #tpu.memory_space<vmem>>, vector<1x8x7x256xf32>
    %120 = vector.shape_cast %119 : vector<1x8x7x256xf32> to vector<8x7x256xf32>
    %121 = vector.shape_cast %118 : vector<8x7x256xf32> to vector<1x8x7x256xf32>
    tpu.vector_store %arg10[%c0_70, %c0_71, %c0_72, %c0_73], %121 {strides = array<i32>} : memref<1x8x7x256xf32, #tpu.memory_space<vmem>>, vector<1x8x7x256xf32>,
    return
  }
  func.func @transform_0(%arg0: i32) -> (i32, i32, i32, i32) {
    %c0_i32 = arith.constant 0 : i32
    %c0_i32_0 = arith.constant 0 : i32
    %c0_i32_1 = arith.constant 0 : i32
    %c0_i32_2 = arith.constant 0 : i32
    return %arg0, %c0_i32, %c0_i32_0, %c0_i32_1 : i32, i32, i32, i32
  }
  func.func @transform_1(%arg0: i32) -> (i32, i32, i32) {
    %c0_i32 = arith.constant 0 : i32
    %c0_i32_0 = arith.constant 0 : i32
    %c0_i32_1 = arith.constant 0 : i32
    %c0_i32_2 = arith.constant 0 : i32
    return %c0_i32, %c0_i32_0, %c0_i32_1 : i32, i32, i32
  }
  func.func @transform_2(%arg0: i32) -> (i32, i32) {
    %c0_i32 = arith.constant 0 : i32
    %c0_i32_0 = arith.constant 0 : i32
    %c0_i32_1 = arith.constant 0 : i32
    return %c0_i32, %c0_i32_0 : i32, i32
  }
  func.func @transform_3(%arg0: i32) -> (i32, i32, i32) {
    %c0_i32 = arith.constant 0 : i32
    %c0_i32_0 = arith.constant 0 : i32
    %c0_i32_1 = arith.constant 0 : i32
    %c0_i32_2 = arith.constant 0 : i32
    return %c0_i32, %c0_i32_0, %c0_i32_1 : i32, i32, i32
  }
  func.func @transform_4(%arg0: i32) -> (i32, i32) {
    %c0_i32 = arith.constant 0 : i32
    %c0_i32_0 = arith.constant 0 : i32
    %c0_i32_1 = arith.constant 0 : i32
    return %c0_i32, %c0_i32_0 : i32, i32
  }
  func.func @transform_5(%arg0: i32) -> (i32, i32, i32) {
    %c0_i32 = arith.constant 0 : i32
    %c0_i32_0 = arith.constant 0 : i32
    %c0_i32_1 = arith.constant 0 : i32
    %c0_i32_2 = arith.constant 0 : i32
    return %c0_i32, %c0_i32_0, %c0_i32_1 : i32, i32, i32
  }
  func.func @transform_6(%arg0: i32) -> (i32, i32) {
    %c0_i32 = arith.constant 0 : i32
    %c0_i32_0 = arith.constant 0 : i32
    %c0_i32_1 = arith.constant 0 : i32
    return %c0_i32, %c0_i32_0 : i32, i32
  }
  func.func @transform_7(%arg0: i32) -> (i32, i32, i32) {
    %c0_i32 = arith.constant 0 : i32
    %c0_i32_0 = arith.constant 0 : i32
    %c0_i32_1 = arith.constant 0 : i32
    %c0_i32_2 = arith.constant 0 : i32
    return %c0_i32, %c0_i32_0, %c0_i32_1 : i32, i32, i32
  }
  func.func @transform_8(%arg0: i32) -> (i32, i32) {
    %c0_i32 = arith.constant 0 : i32
    %c0_i32_0 = arith.constant 0 : i32
    %c0_i32_1 = arith.constant 0 : i32
    return %c0_i32, %c0_i32_0 : i32, i32
  }
  func.func @transform_9(%arg0: i32) -> (i32, i32, i32, i32) {
    %c0_i32 = arith.constant 0 : i32
    %c0_i32_0 = arith.constant 0 : i32
    %c0_i32_1 = arith.constant 0 : i32
    %c0_i32_2 = arith.constant 0 : i32
    return %arg0, %c0_i32, %c0_i32_0, %c0_i32_1 : i32, i32, i32, i32
  }
}

module attributes {stable_mosaic.version = 11 : i64} {
  func.func @linear_kernel(%arg0: i32, %arg1: memref<2x2048xf32, #tpu.memory_space<vmem>>, %arg2: memref<2048x128xbf16, #tpu.memory_space<vmem>>, %arg3: memref<1x128xf32, #tpu.memory_space<vmem>>, %arg4: memref<2x128xf32, #tpu.memory_space<vmem>>) attributes {dimension_semantics = [#tpu.dimension_semantics<arbitrary>], iteration_bounds = array<i64: 7>, scalar_prefetch = 0 : i64, scratch_operands = 0 : i64, tpu.core_type = #tpu.core_type<tc>, window_params = [{transform_indices = @transform_0, window_bounds = array<i64: 2, 2048>}, {transform_indices = @transform_1, window_bounds = array<i64: 2048, 128>}, {pipeline_mode = #tpu.pipeline_mode<synchronous>, transform_indices = @transform_2, window_bounds = array<i64: 1, 128>}, {pipeline_mode = #tpu.pipeline_mode<synchronous>, transform_indices = @transform_3, window_bounds = array<i64: 2, 128>}]} {
    %c0_i32 = arith.constant 0 : i32
    %0 = arith.cmpi eq, %arg0, %c0_i32 : i32
    %1 = arith.extui %0 : i1 to i32
    %c0_i32_0 = arith.constant 0 : i32
    %2 = arith.cmpi ne, %1, %c0_i32_0 : i32
    scf.if %2 {
      %c0_8 = arith.constant 0 : index
      %c0_9 = arith.constant 0 : index
      %10 = vector.load %arg3[%c0_8, %c0_9] : memref<1x128xf32, #tpu.memory_space<vmem>>, vector<1x128xf32>
      %11 = vector.shape_cast %10 : vector<1x128xf32> to vector<1x128xf32>
      %12 = vector.broadcast %11 : vector<1x128xf32> to vector<2x128xf32>
      %c0_10 = arith.constant 0 : index
      %c0_11 = arith.constant 0 : index
      %13 = vector.load %arg4[%c0_10, %c0_11] : memref<2x128xf32, #tpu.memory_space<vmem>>, vector<2x128xf32>
      tpu.vector_store %arg4[%c0_10, %c0_11], %12 {strides = array<i32>} : memref<2x128xf32, #tpu.memory_space<vmem>>, vector<2x128xf32>,
    } else {
    }
    %c0 = arith.constant 0 : index
    %c0_1 = arith.constant 0 : index
    %3 = vector.load %arg4[%c0, %c0_1] : memref<2x128xf32, #tpu.memory_space<vmem>>, vector<2x128xf32>
    %c0_2 = arith.constant 0 : index
    %c0_3 = arith.constant 0 : index
    %4 = vector.load %arg1[%c0_2, %c0_3] : memref<2x2048xf32, #tpu.memory_space<vmem>>, vector<2x2048xf32>
    %5 = arith.truncf %4 : vector<2x2048xf32> to vector<2x2048xbf16>
    %c0_4 = arith.constant 0 : index
    %c0_5 = arith.constant 0 : index
    %6 = vector.load %arg2[%c0_4, %c0_5] : memref<2048x128xbf16, #tpu.memory_space<vmem>>, vector<2048x128xbf16>
    %cst = arith.constant dense<0.000000e+00> : vector<2x128xf32>
    %7 = tpu.matmul %5, %6, %cst {dimension_numbers = #tpu.dot_dimension_numbers<[1], [0], [0], [1], [0, 0, 1, 1], [], []>} : vector<2x2048xbf16>, vector<2048x128xbf16>, vector<2x128xf32> -> vector<2x128xf32>
    %8 = arith.addf %3, %7 : vector<2x128xf32>
    %c0_6 = arith.constant 0 : index
    %c0_7 = arith.constant 0 : index
    %9 = vector.load %arg4[%c0_6, %c0_7] : memref<2x128xf32, #tpu.memory_space<vmem>>, vector<2x128xf32>
    tpu.vector_store %arg4[%c0_6, %c0_7], %8 {strides = array<i32>} : memref<2x128xf32, #tpu.memory_space<vmem>>, vector<2x128xf32>,
    return
  }
  func.func @transform_0(%arg0: i32) -> (i32, i32) {
    %c0_i32 = arith.constant 0 : i32
    %c0_i32_0 = arith.constant 0 : i32
    return %c0_i32, %arg0 : i32, i32
  }
  func.func @transform_1(%arg0: i32) -> (i32, i32) {
    %c0_i32 = arith.constant 0 : i32
    %c0_i32_0 = arith.constant 0 : i32
    return %arg0, %c0_i32 : i32, i32
  }
  func.func @transform_2(%arg0: i32) -> (i32, i32) {
    %c0_i32 = arith.constant 0 : i32
    %c0_i32_0 = arith.constant 0 : i32
    %c0_i32_1 = arith.constant 0 : i32
    return %c0_i32, %c0_i32_0 : i32, i32
  }
  func.func @transform_3(%arg0: i32) -> (i32, i32) {
    %c0_i32 = arith.constant 0 : i32
    %c0_i32_0 = arith.constant 0 : i32
    %c0_i32_1 = arith.constant 0 : i32
    return %c0_i32, %c0_i32_0 : i32, i32
  }
}

</mosaic_0001>

<bundles_post_ra>
// kernel: image_classifier_forward.3
= control target key start
LH: loop header
LB: loop body
LE: loop exit
PB: predicated region body
PF: predicated region fallthrough
CT: control target
= control target key end

     0   :  { %8 = vsyncpa [#allocation3], 0  ;;  %s2233_s12 = smov 0   ;;  %s2427_s0 = inlined_call_operand.vmem [shape: f32[2,14336], index: 0, kind: input, shape index: {}]   ;;  %s2428_s1 = inlined_call_operand.vmem [shape: bf16[14336,128], index: 1, kind: input, shape index: {}]   ;;  %s2429_s2 = inlined_call_operand.vmem [shape: f32[1,128], index: 2, kind: input, shape index: {}]   ;;  %s2430_s3 = inlined_call_operand.hbm [shape: f32[2,128], index: 3, kind: output, shape index: {}]  }
   0x1 LB: > { %s2239_s13 = sadd.s32 4294967295, %s2209_s12   ;;  %p1710_p0 = scmp.ge.s32.totalorder %s2209_s12, 1  ;;  %s2209_s12 = sphi %s2233_s12, %s14_s12  }
   0x2   : > { %p145_p1 = scmp.lt.s32.totalorder %s2209_s12, 8 }
   0x4   : > { %p146_p2 = pnand %p1710_p0, %p145_p1 }
   0x5   : > { %s1711_s14 = sshll.u32 (!%p146_p2), %s2239_s13, 4  ;;  %s1713_s15 = sshll.u32 (!%p146_p2), %s2239_s13, 8 }
   0x6   : > { %149 = sbr.rel (%p146_p2) target bundleno = 389 (0x185), region = 32  ;;  %p170_p3 = scmp.lt.s32.totalorder (!%p146_p2), %s1711_s14, 111 }
   0x7   : > { %p176_p4 = scmp.lt.s32.totalorder (!%p146_p2), %s1713_s15, 1791  ;;  %p1715_p5 = scmp.ne.s32.totalorder (!%p146_p2), %s2239_s13, 0 }
   0xd   : > { %s2432_s14 = smov (!%p170_p3, %s1711_s14), 111  ;;  %s2434_s15 = smov (!%p176_p4, %s1713_s15), 1791 }
   0xe   : > { %s1712_s16 = sshll.u32 %s2432_s14, 1  ;;  %s1714_s20 = sshll.u32 %s2434_s15, 2  ;;  %v1716_v0 = vld [vmem:[%s2429_s2] ss:$0 sm:$0xff] (!%p1715_p5) }
   0xf   : > { %s2248_s19 = scalar_lea.vmem %s2427_s0, %s1712_s16  ;;  %s2253_s23 = scalar_lea.vmem %s2428_s1, %s1714_s20  ;;  %193 = vst [vmem:[#allocation2] sm:$0x3] (!%p1715_p5), %v1716_v0 }
  0x10   : > { %185 = sbr.rel (%p1715_p5) target bundleno = 23 (0x17), region = 36 }
  0x17 PF: > { %v2041_v1 = vld [vmem:[%s2253_s23 + $0x40] sm:$0xff]   ;;  %v2045_v5 = vld [vmem:[%s2253_s23 + $0x48] sm:$0xff]   ;;  %v2049_v9 = vld [vmem:[%s2253_s23 + $0x50] sm:$0xff]   ;;  %v207_v29 = vlaneseq  ;;  %v2211_v37 = vmov 1983009808   ;;  %s2212_s26 = smov [#allocation2]  }
  0x18   : > { %v2042_v2 = vld [vmem:[%s2253_s23 + $0xc0] sm:$0xff]   ;;  %1849 = vmatprep.subr.bf16.mxu0 %v2041_v1  ;;  %v2046_v6 = vld [vmem:[%s2253_s23 + $0xc8] sm:$0xff]   ;;  %v2050_v10 = vld [vmem:[%s2253_s23 + $0xd0] sm:$0xff]   ;;  %v205_v38 = vunpack.c.l.s4 %v2211_v37  ;;  %s1656_s27 = sshll.u32 %s2212_s26, 4  ;;  %p2029_p6 = scmp.eq.s32.totalorder %s2239_s13, 6  ;;  %s1657_s27 = int_to_ptr.vmem [resolvable:$true] %s1656_s27 }
  0x19   : > { %v2043_v3 = vld [vmem:[%s2253_s23] sm:$0xff]   ;;  %1871 = vmatprep.subr.bf16.mxu1 %v2042_v2  ;;  %v2047_v7 = vld [vmem:[%s2253_s23 + $0x8] sm:$0xff]   ;;  %v2051_v11 = vld [vmem:[%s2253_s23 + $0x10] sm:$0xff]   ;;  %v208_v34 = vshrl.u32 %v207_v29, 7  ;;  %s2173_s28 = scalar_lea.vmem %s1657_s27, 32  ;;  %p2180_p10 = scmp.lt.s32.totalorder %s1657_s27, %s1657_s27 }
  0x1a   : > { %v2044_v4 = vld [vmem:[%s2253_s23 + $0x80] sm:$0xff]   ;;  %1850 = vmatpush3.bf16.msra.mxu0 %v2043_v3  ;;  %v2048_v8 = vld [vmem:[%s2253_s23 + $0x88] sm:$0xff]   ;;  %v2052_v12 = vld [vmem:[%s2253_s23 + $0x90] sm:$0xff]   ;;  %v206_v40 = vunpack.c.0.s8 %v205_v38  ;;  %p2174_p7 = scmp.ne.s32.totalorder %s1657_s27, %s2173_s28  ;;  %p2181_p11 = scmp.lt.s32.totalorder %s2173_s28, %s2173_s28 }
  0x1b   : > { %1872 = vmatpush3.bf16.msra.mxu1 %v2044_v4  ;;  %1851 = vmatprep.subr.bf16.mxu0 %v2045_v5  ;;  %v2053_v13 = vld [vmem:[%s2253_s23 + $0x58] sm:$0xff]   ;;  %v2057_v17 = vld [vmem:[%s2253_s23 + $0x60] sm:$0xff]   ;;  %v2061_v21 = vld [vmem:[%s2253_s23 + $0x68] sm:$0xff]  }
  0x1c   : > { %1873 = vmatprep.subr.bf16.mxu1 %v2046_v6  ;;  %v2054_v14 = vld [vmem:[%s2253_s23 + $0xd8] sm:$0xff]   ;;  %v2058_v18 = vld [vmem:[%s2253_s23 + $0xe0] sm:$0xff]   ;;  %v2062_v22 = vld [vmem:[%s2253_s23 + $0xe8] sm:$0xff]   ;;  %v2294_v42 = vsub.s32 %v206_v40, %v208_v34  ;;  %p2175_p8 = pnand %p2174_p7, %p2029_p6  ;;  %p2182_p12 = por %p2181_p11, %p2180_p10 }
  0x1d   : > { %v2055_v15 = vld [vmem:[%s2253_s23 + $0x18] sm:$0xff]   ;;  %v2059_v19 = vld [vmem:[%s2253_s23 + $0x20] sm:$0xff]   ;;  %v2063_v23 = vld [vmem:[%s2253_s23 + $0x28] sm:$0xff]  }
  0x1e   : > { %1852 = vmatpush3.bf16.msra.mxu0 %v2047_v7  ;;  %v2056_v16 = vld [vmem:[%s2253_s23 + $0x98] sm:$0xff]   ;;  %v2060_v20 = vld [vmem:[%s2253_s23 + $0xa0] sm:$0xff]   ;;  %v2064_v24 = vld [vmem:[%s2253_s23 + $0xa8] sm:$0xff]   ;;  %p2176_p9 = pneg %p2175_p8 }
  0x1f   : > { %1874 = vmatpush3.bf16.msra.mxu1 %v2048_v8  ;;  %1853 = vmatprep.subr.bf16.mxu0 %v2049_v9  ;;  %v2065_v25 = vld [vmem:[%s2253_s23 + $0x70] sm:$0xff]   ;;  %v2069_v30 = vld [vmem:[%s2253_s23 + $0x78] sm:$0xff]   ;;  %v195_v35 = vld [vmem:[%s2248_s19] sm:$0xff] }
  0x20   : > { %1875 = vmatprep.subr.bf16.mxu1 %v2050_v10  ;;  %v2066_v26 = vld [vmem:[%s2253_s23 + $0xf0] sm:$0xff]   ;;  %v2070_v31 = vld [vmem:[%s2253_s23 + $0xf8] sm:$0xff]   ;;  %v2074_v36 = vld [vmem:[%s2253_s23 + $0x140] sm:$0xff]   ;;  %v203_v41 = vcombine.high %v195_v35, %v195_v35  ;;  %v210_v43 = vrot.slane %v195_v35, %v2294_v42  ;;  %p2183_p13 = pnand %p2182_p12, %p2176_p9 }
  0x21   : > { %v2067_v27 = vld [vmem:[%s2253_s23 + $0x30] sm:$0xff]   ;;  %v2071_v32 = vld [vmem:[%s2253_s23 + $0x38] sm:$0xff]   ;;  %v2075_v39 = vld [vmem:[%s2253_s23 + $0x1c0] sm:$0xff]  }
  0x22   : > { %1854 = vmatpush3.bf16.msra.mxu0 %v2051_v11  ;;  %v2068_v28 = vld [vmem:[%s2253_s23 + $0xb0] sm:$0xff]   ;;  %v2072_v33 = vld [vmem:[%s2253_s23 + $0xb8] sm:$0xff]   ;;  %v217_v44 = vrot.slane %v203_v41, %v2294_v42  ;;  %v218_v45 = vcombine.high %v210_v43, %v210_v43  ;;  %v2076_v47 = vld [vmem:[%s2253_s23 + $0x100] sm:$0xff]   ;;  %v287_v48 = vpack.c.bf16 %v210_v43, %v210_v43 }
  0x23   : > { %1876 = vmatpush3.bf16.msra.mxu1 %v2052_v12  ;;  %1855 = vmatprep.subr.bf16.mxu0 %v2053_v13  ;;  %v2077_v50 = vld [vmem:[%s2253_s23 + $0x180] sm:$0xff]   ;;  %v2078_v53 = vld [vmem:[%s2253_s23 + $0x148] sm:$0xff]   ;;  %v2082_v57 = vld [vmem:[%s2253_s23 + $0x150] sm:$0xff]  }
  0x24   : > { %1877 = vmatprep.subr.bf16.mxu1 %v2054_v14  ;;  %v219_v46 = vcombine.high %v217_v44, %v217_v44  ;;  %v289_v49 = vpack.c.bf16 %v217_v44, %v217_v44  ;;  %v288_v51 = vpack.c.bf16 %v218_v45, %v218_v45  ;;  %v2079_v54 = vld [vmem:[%s2253_s23 + $0x1c8] sm:$0xff]   ;;  %v2083_v58 = vld [vmem:[%s2253_s23 + $0x1d0] sm:$0xff]   ;;  %v2086_v61 = vld [vmem:[%s2253_s23 + $0x158] sm:$0xff]  }
  0x25   : > { %v2080_v55 = vld [vmem:[%s2253_s23 + $0x108] sm:$0xff]   ;;  %v2084_v59 = vld [vmem:[%s2253_s23 + $0x110] sm:$0xff]   ;;  %v2087_v62 = vld [vmem:[%s2253_s23 + $0x1d8] sm:$0xff]  }
  0x26   : > { %1856 = vmatpush3.bf16.msra.mxu0 %v2055_v15  ;;  %v290_v52 = vpack.c.bf16 %v219_v46, %v219_v46  ;;  %1359 = vmatprep.mubr.bf16.mxu0 %v288_v51  ;;  %v2081_v56 = vld [vmem:[%s2253_s23 + $0x188] sm:$0xff]   ;;  %v2085_v60 = vld [vmem:[%s2253_s23 + $0x190] sm:$0xff]   ;;  %v2088_v63 = vld [vmem:[%s2253_s23 + $0x118] sm:$0xff]  }
  0x27   : > { %1878 = vmatpush3.bf16.msra.mxu1 %v2056_v16  ;;  %1857 = vmatprep.subr.bf16.mxu0 %v2057_v17  ;;  %v2089_v0 = vld [vmem:[%s2253_s23 + $0x198] sm:$0xff]   ;;  %v2090_v1 = vld [vmem:[%s2253_s23 + $0x160] sm:$0xff]   ;;  %v2094_v5 = vld [vmem:[%s2253_s23 + $0x168] sm:$0xff]  }
  0x28   : > { %1879 = vmatprep.subr.bf16.mxu1 %v2058_v18  ;;  %1399 = vmatprep.mubr.bf16.mxu1 %v290_v52  ;;  %v2091_v2 = vld [vmem:[%s2253_s23 + $0x1e0] sm:$0xff]   ;;  %v2095_v6 = vld [vmem:[%s2253_s23 + $0x1e8] sm:$0xff]   ;;  %v2098_v9 = vld [vmem:[%s2253_s23 + $0x170] sm:$0xff]  }
  0x29   : > { %v2092_v3 = vld [vmem:[%s2253_s23 + $0x120] sm:$0xff]   ;;  %v2096_v7 = vld [vmem:[%s2253_s23 + $0x128] sm:$0xff]   ;;  %v2099_v10 = vld [vmem:[%s2253_s23 + $0x1f0] sm:$0xff]  }
  0x2a   : > { %1858 = vmatpush3.bf16.msra.mxu0 %v2059_v19  ;;  %v2093_v4 = vld [vmem:[%s2253_s23 + $0x1a0] sm:$0xff]   ;;  %v2097_v8 = vld [vmem:[%s2253_s23 + $0x1a8] sm:$0xff]   ;;  %v2100_v12 = vld [vmem:[%s2253_s23 + $0x130] sm:$0xff]  }
  0x2b   : > { %1880 = vmatpush3.bf16.msra.mxu1 %v2060_v20  ;;  %1859 = vmatprep.subr.bf16.mxu0 %v2061_v21  ;;  %v196_v11 = vld [vmem:[%s2248_s19 + $0x8] sm:$0xff]  ;;  %v2101_v15 = vld [vmem:[%s2253_s23 + $0x1b0] sm:$0xff]   ;;  %v2102_v16 = vld [vmem:[%s2253_s23 + $0x178] sm:$0xff]  }
  0x2c   : > { %1881 = vmatprep.subr.bf16.mxu1 %v2062_v22  ;;  %v227_v13 = vrot.slane %v196_v11, %v2294_v42  ;;  %v220_v14 = vcombine.high %v196_v11, %v196_v11  ;;  %v2103_v19 = vld [vmem:[%s2253_s23 + $0x1f8] sm:$0xff]   ;;  %v2114_v34 = vld [vmem:[%s2253_s23 + $0x288] sm:$0xff]   ;;  %v2115_v35 = vld [vmem:[%s2253_s23 + $0x250] sm:$0xff]  }
  0x2d   : > { %v2104_v20 = vld [vmem:[%s2253_s23 + $0x138] sm:$0xff]   ;;  %v2117_v37 = vld [vmem:[%s2253_s23 + $0x210] sm:$0xff]   ;;  %v2123_v44 = vld [vmem:[%s2253_s23 + $0x260] sm:$0xff]  }
  0x2e   : > { %1860 = vmatpush3.bf16.msra.mxu0 %v2063_v23  ;;  %v235_v17 = vcombine.high %v227_v13, %v227_v13  ;;  %v234_v18 = vrot.slane %v220_v14, %v2294_v42  ;;  %v2105_v23 = vld [vmem:[%s2253_s23 + $0x1b8] sm:$0xff]   ;;  %v2118_v38 = vld [vmem:[%s2253_s23 + $0x290] sm:$0xff]   ;;  %v2124_v45 = vld [vmem:[%s2253_s23 + $0x2e0] sm:$0xff]  }
  0x2f   : > { %1882 = vmatpush3.bf16.msra.mxu1 %v2064_v24  ;;  %1861 = vmatprep.subr.bf16.mxu0 %v2065_v25  ;;  %v2107_v25 = vld [vmem:[%s2253_s23 + $0x240] sm:$0xff]   ;;  %v2120_v40 = vld [vmem:[%s2253_s23 + $0x2d8] sm:$0xff]   ;;  %v2130_v51 = vld [vmem:[%s2253_s23 + $0x2a8] sm:$0xff]  }
  0x30   : > { %1883 = vmatprep.subr.bf16.mxu1 %v2066_v26  ;;  %v292_v21 = vpack.c.bf16 %v235_v17, %v235_v17  ;;  %v236_v22 = vcombine.high %v234_v18, %v234_v18  ;;  %v2108_v26 = vld [vmem:[%s2253_s23 + $0x2c0] sm:$0xff]   ;;  %v293_v29 = vpack.c.bf16 %v234_v18, %v234_v18  ;;  %v2121_v41 = vld [vmem:[%s2253_s23 + $0x218] sm:$0xff]   ;;  %v2131_v52 = vld [vmem:[%s2253_s23 + $0x270] sm:$0xff]  }
  0x31   : > { %v2122_v43 = vld [vmem:[%s2253_s23 + $0x298] sm:$0xff]   ;;  %v2125_v46 = vld [vmem:[%s2253_s23 + $0x220] sm:$0xff]   ;;  %v2145_v11 = vld [vmem:[%s2253_s23 + $0x3c8] sm:$0xff]  }
  0x32   : > { %1862 = vmatpush3.bf16.msra.mxu0 %v2067_v27  ;;  %v294_v24 = vpack.c.bf16 %v236_v22, %v236_v22  ;;  %v2109_v27 = vld [vmem:[%s2253_s23 + $0x200] sm:$0xff]   ;;  %v2148_v14 = vld [vmem:[%s2253_s23 + $0x350] sm:$0xff]   ;;  %v2152_v18 = vld [vmem:[%s2253_s23 + $0x358] sm:$0xff]  }
  0x33   : > { %1884 = vmatpush3.bf16.msra.mxu1 %v2068_v28  ;;  %1863 = vmatprep.subr.bf16.mxu0 %v2069_v30  ;;  %v291_v28 = vpack.c.bf16 %v227_v13, %v227_v13  ;;  %v2110_v30 = vld [vmem:[%s2253_s23 + $0x280] sm:$0xff]   ;;  %v2147_v13 = vld [vmem:[%s2253_s23 + $0x388] sm:$0xff]   ;;  %v2151_v17 = vld [vmem:[%s2253_s23 + $0x390] sm:$0xff]  }
  0x34   : > { %1885 = vmatprep.subr.bf16.mxu1 %v2070_v31  ;;  %v2111_v31 = vld [vmem:[%s2253_s23 + $0x248] sm:$0xff]   ;;  %v2156_v22 = vld [vmem:[%s2253_s23 + $0x360] sm:$0xff]  }
  0x36   : > { %1864 = vmatpush3.bf16.msra.mxu0 %v2071_v32  ;;  %v2112_v32 = vld [vmem:[%s2253_s23 + $0x2c8] sm:$0xff]  }
  0x37   : > { %1886 = vmatpush3.bf16.msra.mxu1 %v2072_v33  ;;  %1893 = vmatprep.subr.bf16.mxu0 %v2074_v36  ;;  %v2113_v33 = vld [vmem:[%s2253_s23 + $0x208] sm:$0xff]   ;;  %v2116_v36 = vld [vmem:[%s2253_s23 + $0x2d0] sm:$0xff]  }
  0x38   : > { %1915 = vmatprep.subr.bf16.mxu1 %v2075_v39  ;;  %v2119_v39 = vld [vmem:[%s2253_s23 + $0x258] sm:$0xff]  }
  0x39   : > { %1360 = vmatmul.mubr.bf16.vlgmr.msra.gmra.mrb[0].mxu0 %v287_v48  ;;  %v2127_v48 = vld [vmem:[%s2253_s23 + $0x268] sm:$0xff]  }
  0x3a   : > { %1400 = vmatmul.mubr.bf16.vlgmr.msra.gmra.mrb[0].mxu1 %v289_v49  ;;  %1894 = vmatpush3.bf16.msra.mxu0 %v2076_v47  ;;  %v2126_v47 = vld [vmem:[%s2253_s23 + $0x2a0] sm:$0xff]   ;;  %v2128_v49 = vld [vmem:[%s2253_s23 + $0x2e8] sm:$0xff]  }
  0x3b   : > { %1916 = vmatpush3.bf16.msra.mxu1 %v2077_v50  ;;  %1895 = vmatprep.subr.bf16.mxu0 %v2078_v53  ;;  %v2129_v50 = vld [vmem:[%s2253_s23 + $0x228] sm:$0xff]   ;;  %v2132_v53 = vld [vmem:[%s2253_s23 + $0x2f0] sm:$0xff]  }
  0x3c   : > { %1917 = vmatprep.subr.bf16.mxu1 %v2079_v54  ;;  %1439 = vmatprep.mubr.bf16.mxu0 %v292_v21  ;;  %v197_v54 = vld [vmem:[%s2248_s19 + $0x10] sm:$0xff]  ;;  %v2155_v21 = vld [vmem:[%s2253_s23 + $0x398] sm:$0xff]  }
  0x3d   : > { %1479 = vmatprep.mubr.bf16.mxu1 %v294_v24  ;;  %v2158_v24 = vld [vmem:[%s2253_s23 + $0x320] sm:$0xff]  }
  0x3e   : > { %1896 = vmatpush3.bf16.msra.mxu0 %v2080_v55  ;;  %v2133_v55 = vld [vmem:[%s2253_s23 + $0x230] sm:$0xff]  }
  0x3f   : > { %1918 = vmatpush3.bf16.msra.mxu1 %v2081_v56  ;;  %1897 = vmatprep.subr.bf16.mxu0 %v2082_v57  ;;  %v244_v56 = vrot.slane %v197_v54, %v2294_v42  ;;  %v237_v57 = vcombine.high %v197_v54, %v197_v54 }
  0x40   : > { %1919 = vmatprep.subr.bf16.mxu1 %v2083_v58  ;;  %v2134_v58 = vld [vmem:[%s2253_s23 + $0x2b0] sm:$0xff]  }
  0x42   : > { %1898 = vmatpush3.bf16.msra.mxu0 %v2084_v59  ;;  %v2135_v59 = vld [vmem:[%s2253_s23 + $0x278] sm:$0xff]  }
  0x43   : > { %1920 = vmatpush3.bf16.msra.mxu1 %v2085_v60  ;;  %1899 = vmatprep.subr.bf16.mxu0 %v2086_v61  ;;  %v252_v60 = vcombine.high %v244_v56, %v244_v56  ;;  %v251_v61 = vrot.slane %v237_v57, %v2294_v42 }
  0x44   : > { %1921 = vmatprep.subr.bf16.mxu1 %v2087_v62  ;;  %v2136_v62 = vld [vmem:[%s2253_s23 + $0x2f8] sm:$0xff]  }
  0x46   : > { %1900 = vmatpush3.bf16.msra.mxu0 %v2088_v63  ;;  %v2137_v63 = vld [vmem:[%s2253_s23 + $0x238] sm:$0xff]  }
  0x47   : > { %1922 = vmatpush3.bf16.msra.mxu1 %v2089_v0  ;;  %1901 = vmatprep.subr.bf16.mxu0 %v2090_v1  ;;  %v296_v0 = vpack.c.bf16 %v252_v60, %v252_v60  ;;  %v253_v1 = vcombine.high %v251_v61, %v251_v61 }
  0x48   : > { %1923 = vmatprep.subr.bf16.mxu1 %v2091_v2  ;;  %v2138_v2 = vld [vmem:[%s2253_s23 + $0x2b8] sm:$0xff]  }
  0x4a   : > { %1902 = vmatpush3.bf16.msra.mxu0 %v2092_v3  ;;  %v298_v3 = vpack.c.bf16 %v253_v1, %v253_v1 }
  0x4b   : > { %1924 = vmatpush3.bf16.msra.mxu1 %v2093_v4  ;;  %1903 = vmatprep.subr.bf16.mxu0 %v2094_v5  ;;  %v2140_v4 = vld [vmem:[%s2253_s23 + $0x340] sm:$0xff]  }
  0x4c   : > { %1925 = vmatprep.subr.bf16.mxu1 %v2095_v6  ;;  %v2141_v5 = vld [vmem:[%s2253_s23 + $0x3c0] sm:$0xff]  }
  0x4d   : > { %v2142_v6 = vld [vmem:[%s2253_s23 + $0x300] sm:$0xff]  }
  0x4e   : > { %1904 = vmatpush3.bf16.msra.mxu0 %v2096_v7  ;;  %v295_v7 = vpack.c.bf16 %v244_v56, %v244_v56 }
  0x4f   : > { %1926 = vmatpush3.bf16.msra.mxu1 %v2097_v8  ;;  %1905 = vmatprep.subr.bf16.mxu0 %v2098_v9  ;;  %v297_v8 = vpack.c.bf16 %v251_v61, %v251_v61  ;;  %v2143_v9 = vld [vmem:[%s2253_s23 + $0x380] sm:$0xff]  }
  0x50   : > { %1927 = vmatprep.subr.bf16.mxu1 %v2099_v10  ;;  %v2144_v10 = vld [vmem:[%s2253_s23 + $0x348] sm:$0xff]  }
  0x52   : > { %1906 = vmatpush3.bf16.msra.mxu0 %v2100_v12  ;;  %v2146_v12 = vld [vmem:[%s2253_s23 + $0x308] sm:$0xff]  }
  0x53   : > { %1928 = vmatpush3.bf16.msra.mxu1 %v2101_v15  ;;  %1907 = vmatprep.subr.bf16.mxu0 %v2102_v16  ;;  %v2149_v15 = vld [vmem:[%s2253_s23 + $0x3d0] sm:$0xff]  }
  0x54   : > { %1929 = vmatprep.subr.bf16.mxu1 %v2103_v19  ;;  %v2150_v16 = vld [vmem:[%s2253_s23 + $0x310] sm:$0xff]   ;;  %v2153_v19 = vld [vmem:[%s2253_s23 + $0x3d8] sm:$0xff]  }
  0x56   : > { %1908 = vmatpush3.bf16.msra.mxu0 %v2104_v20  ;;  %v2154_v20 = vld [vmem:[%s2253_s23 + $0x318] sm:$0xff]  }
  0x57   : > { %1930 = vmatpush3.bf16.msra.mxu1 %v2105_v23  ;;  %1937 = vmatprep.subr.bf16.mxu0 %v2107_v25  ;;  %v2157_v23 = vld [vmem:[%s2253_s23 + $0x3e0] sm:$0xff]  }
  0x58   : > { %1959 = vmatprep.subr.bf16.mxu1 %v2108_v26  ;;  %v2159_v25 = vld [vmem:[%s2253_s23 + $0x3a0] sm:$0xff]   ;;  %v2160_v26 = vld [vmem:[%s2253_s23 + $0x368] sm:$0xff]  }
  0x59   : > { %1440 = vmatmul.mubr.bf16.vlgmr.msra.gmra.mrb[4].mxu0 %v291_v28  ;;  %v2162_v28 = vld [vmem:[%s2253_s23 + $0x328] sm:$0xff]  }
  0x5a   : > { %1480 = vmatmul.mubr.bf16.vlgmr.msra.gmra.mrb[4].mxu1 %v293_v29  ;;  %1938 = vmatpush3.bf16.msra.mxu0 %v2109_v27  ;;  %v2161_v27 = vld [vmem:[%s2253_s23 + $0x3e8] sm:$0xff]  }
  0x5b   : > { %1960 = vmatpush3.bf16.msra.mxu1 %v2110_v30  ;;  %1939 = vmatprep.subr.bf16.mxu0 %v2111_v31  ;;  %v2163_v29 = vld [vmem:[%s2253_s23 + $0x3a8] sm:$0xff]   ;;  %v2164_v30 = vld [vmem:[%s2253_s23 + $0x370] sm:$0xff]  }
  0x5c   : > { %1961 = vmatprep.subr.bf16.mxu1 %v2112_v32  ;;  %1519 = vmatprep.mubr.bf16.mxu0 %v296_v0  ;;  %v2165_v31 = vld [vmem:[%s2253_s23 + $0x3f0] sm:$0xff]   ;;  %v198_v32 = vld [vmem:[%s2248_s19 + $0x18] sm:$0xff] }
  0x5d   : > { %1559 = vmatprep.mubr.bf16.mxu1 %v298_v3 }
  0x5e   : > { %1940 = vmatpush3.bf16.msra.mxu0 %v2113_v33  ;;  %v261_v33 = vrot.slane %v198_v32, %v2294_v42 }
  0x5f   : > { %1962 = vmatpush3.bf16.msra.mxu1 %v2114_v34  ;;  %1941 = vmatprep.subr.bf16.mxu0 %v2115_v35  ;;  %v254_v34 = vcombine.high %v198_v32, %v198_v32  ;;  %v2166_v35 = vld [vmem:[%s2253_s23 + $0x330] sm:$0xff]  }
  0x60   : > { %1963 = vmatprep.subr.bf16.mxu1 %v2116_v36  ;;  %v2167_v36 = vld [vmem:[%s2253_s23 + $0x3b0] sm:$0xff]  }
  0x62   : > { %1942 = vmatpush3.bf16.msra.mxu0 %v2117_v37  ;;  %v2168_v37 = vld [vmem:[%s2253_s23 + $0x378] sm:$0xff]  }
  0x63   : > { %1964 = vmatpush3.bf16.msra.mxu1 %v2118_v38  ;;  %1943 = vmatprep.subr.bf16.mxu0 %v2119_v39  ;;  %v2169_v38 = vld [vmem:[%s2253_s23 + $0x3f8] sm:$0xff]   ;;  %v269_v39 = vcombine.high %v261_v33, %v261_v33 }
  0x64   : > { %1965 = vmatprep.subr.bf16.mxu1 %v2120_v40  ;;  %v268_v40 = vrot.slane %v254_v34, %v2294_v42 }
  0x66   : > { %1944 = vmatpush3.bf16.msra.mxu0 %v2121_v41  ;;  %v300_v41 = vpack.c.bf16 %v269_v39, %v269_v39 }
  0x67   : > { %1966 = vmatpush3.bf16.msra.mxu1 %v2122_v43  ;;  %1945 = vmatprep.subr.bf16.mxu0 %v2123_v44  ;;  %v270_v43 = vcombine.high %v268_v40, %v268_v40  ;;  %v2170_v44 = vld [vmem:[%s2253_s23 + $0x338] sm:$0xff]  }
  0x68   : > { %1967 = vmatprep.subr.bf16.mxu1 %v2124_v45  ;;  %v2171_v45 = vld [vmem:[%s2253_s23 + $0x3b8] sm:$0xff]  }
  0x6a   : > { %1946 = vmatpush3.bf16.msra.mxu0 %v2125_v46  ;;  %v302_v46 = vpack.c.bf16 %v270_v43, %v270_v43 }
  0x6b   : > { %1968 = vmatpush3.bf16.msra.mxu1 %v2126_v47  ;;  %1947 = vmatprep.subr.bf16.mxu0 %v2127_v48  ;;  %v299_v47 = vpack.c.bf16 %v261_v33, %v261_v33  ;;  %v301_v48 = vpack.c.bf16 %v268_v40, %v268_v40 }
  0x6c   : > { %1969 = vmatprep.subr.bf16.mxu1 %v2128_v49 }
  0x6e   : > { %1948 = vmatpush3.bf16.msra.mxu0 %v2129_v50 }
  0x6f   : > { %1970 = vmatpush3.bf16.msra.mxu1 %v2130_v51  ;;  %1949 = vmatprep.subr.bf16.mxu0 %v2131_v52 }
  0x70   : > { %1971 = vmatprep.subr.bf16.mxu1 %v2132_v53 }
  0x72   : > { %1950 = vmatpush3.bf16.msra.mxu0 %v2133_v55 }
  0x73   : > { %1972 = vmatpush3.bf16.msra.mxu1 %v2134_v58  ;;  %1951 = vmatprep.subr.bf16.mxu0 %v2135_v59 }
  0x74   : > { %1973 = vmatprep.subr.bf16.mxu1 %v2136_v62 }
  0x76   : > { %1952 = vmatpush3.bf16.msra.mxu0 %v2137_v63 }
  0x77   : > { %1974 = vmatpush3.bf16.msra.mxu1 %v2138_v2  ;;  %1981 = vmatprep.subr.bf16.mxu0 %v2140_v4 }
  0x78   : > { %2003 = vmatprep.subr.bf16.mxu1 %v2141_v5 }
  0x79   : > { %1520 = vmatmul.mubr.bf16.vlgmr.msra.gmra.mrb[8].mxu0 %v295_v7 }
  0x7a   : > { %1560 = vmatmul.mubr.bf16.vlgmr.msra.gmra.mrb[8].mxu1 %v297_v8  ;;  %1982 = vmatpush3.bf16.msra.mxu0 %v2142_v6 }
  0x7b   : > { %2004 = vmatpush3.bf16.msra.mxu1 %v2143_v9  ;;  %1983 = vmatprep.subr.bf16.mxu0 %v2144_v10 }
  0x7c   : > { %2005 = vmatprep.subr.bf16.mxu1 %v2145_v11  ;;  %1599 = vmatprep.mubr.bf16.mxu0 %v300_v41 }
  0x7d   : > { %1639 = vmatprep.mubr.bf16.mxu1 %v302_v46 }
  0x7e   : > { %1984 = vmatpush3.bf16.msra.mxu0 %v2146_v12 }
  0x7f   : > { %2006 = vmatpush3.bf16.msra.mxu1 %v2147_v13  ;;  %1985 = vmatprep.subr.bf16.mxu0 %v2148_v14 }
  0x80   : > { %2007 = vmatprep.subr.bf16.mxu1 %v2149_v15 }
  0x82   : > { %1986 = vmatpush3.bf16.msra.mxu0 %v2150_v16 }
  0x83   : > { %2008 = vmatpush3.bf16.msra.mxu1 %v2151_v17  ;;  %1987 = vmatprep.subr.bf16.mxu0 %v2152_v18 }
  0x84   : > { %2009 = vmatprep.subr.bf16.mxu1 %v2153_v19 }
  0x86   : > { %1988 = vmatpush3.bf16.msra.mxu0 %v2154_v20 }
  0x87   : > { %2010 = vmatpush3.bf16.msra.mxu1 %v2155_v21  ;;  %1989 = vmatprep.subr.bf16.mxu0 %v2156_v22 }
  0x88   : > { %2011 = vmatprep.subr.bf16.mxu1 %v2157_v23 }
  0x8a   : > { %1990 = vmatpush3.bf16.msra.mxu0 %v2158_v24 }
  0x8b   : > { %2012 = vmatpush3.bf16.msra.mxu1 %v2159_v25  ;;  %1991 = vmatprep.subr.bf16.mxu0 %v2160_v26 }
  0x8c   : > { %2013 = vmatprep.subr.bf16.mxu1 %v2161_v27 }
  0x8e   : > { %1992 = vmatpush3.bf16.msra.mxu0 %v2162_v28 }
  0x8f   : > { %2014 = vmatpush3.bf16.msra.mxu1 %v2163_v29  ;;  %1993 = vmatprep.subr.bf16.mxu0 %v2164_v30  ;;  %v194_v30 = vld [vmem:[#allocation2] sm:$0x3] }
  0x90   : > { %2015 = vmatprep.subr.bf16.mxu1 %v2165_v31 }
  0x92   : > { %1994 = vmatpush3.bf16.msra.mxu0 %v2166_v35 }
  0x93   : > { %2016 = vmatpush3.bf16.msra.mxu1 %v2167_v36  ;;  %1995 = vmatprep.subr.bf16.mxu0 %v2168_v37 }
  0x94   : > { %2017 = vmatprep.subr.bf16.mxu1 %v2169_v38 }
  0x96   : > { %1996 = vmatpush3.bf16.msra.mxu0 %v2170_v44 }
  0x97   : > { %2018 = vmatpush3.bf16.msra.mxu1 %v2171_v45 }
  0x99   : > { %1600 = vmatmul.mubr.bf16.vlgmr.msra.gmra.mrb[12].mxu0 %v299_v47 }
  0x9a   : > { %1640 = vmatmul.mubr.bf16.vlgmr.msra.gmra.mrb[12].mxu1 %v301_v48 }
 0x10c   : > { %v1865_v49 = vpop.f32.mrb[0].mxu0 }
 0x10d   : > { %v1887_v50 = vpop.f32.mrb[0].mxu1  ;;  %v1866_v42 = vpop.f32.mrb[1].mxu0 }
 0x10e   : > { %v1888_v51 = vpop.f32.mrb[1].mxu1  ;;  %v1867_v52 = vadd.f32 %v1866_v42, %v1865_v49  ;;  %v1868_v54 = vpop.f32.mrb[2].mxu0 }
 0x10f   : > { %v1889_v53 = vadd.f32 %v1888_v51, %v1887_v50  ;;  %v1890_v55 = vpop.f32.mrb[2].mxu1  ;;  %v1869_v56 = vpop.f32.mrb[3].mxu0 }
 0x110   : > { %v1891_v57 = vpop.f32.mrb[3].mxu1 }
 0x111   : > { %v1402_v58 = vadd.f32 %v1889_v53, %v1867_v52 }
 0x12c   : > { %v1909_v59 = vpop.f32.mrb[4].mxu0 }
 0x12d   : > { %v1931_v60 = vpop.f32.mrb[4].mxu1  ;;  %v1910_v61 = vpop.f32.mrb[5].mxu0 }
 0x12e   : > { %v1932_v62 = vpop.f32.mrb[5].mxu1  ;;  %v1911_v63 = vadd.f32 %v1910_v61, %v1909_v59  ;;  %v1912_v1 = vpop.f32.mrb[6].mxu0 }
 0x12f   : > { %v1933_v0 = vadd.f32 %v1932_v62, %v1931_v60  ;;  %v1934_v2 = vpop.f32.mrb[6].mxu1  ;;  %v1913_v3 = vpop.f32.mrb[7].mxu0 }
 0x130   : > { %v1935_v4 = vpop.f32.mrb[7].mxu1  ;;  %v1442_v5 = vadd.f32 %v1911_v63, %v1402_v58 }
 0x132   : > { %v1482_v6 = vadd.f32 %v1933_v0, %v1442_v5 }
 0x14c   : > { %v1953_v7 = vpop.f32.mrb[8].mxu0 }
 0x14d   : > { %v1975_v8 = vpop.f32.mrb[8].mxu1  ;;  %v1954_v9 = vpop.f32.mrb[9].mxu0 }
 0x14e   : > { %v1976_v10 = vpop.f32.mrb[9].mxu1  ;;  %v1955_v11 = vadd.f32 %v1954_v9, %v1953_v7  ;;  %v1956_v13 = vpop.f32.mrb[10].mxu0 }
 0x14f   : > { %v1977_v12 = vadd.f32 %v1976_v10, %v1975_v8  ;;  %v1978_v14 = vpop.f32.mrb[10].mxu1  ;;  %v1957_v15 = vpop.f32.mrb[11].mxu0 }
 0x150   : > { %v1979_v16 = vpop.f32.mrb[11].mxu1  ;;  %v1522_v17 = vadd.f32 %v1955_v11, %v1482_v6 }
 0x152   : > { %v1562_v18 = vadd.f32 %v1977_v12, %v1522_v17 }
 0x16c   : > { %v1997_v19 = vpop.f32.mrb[12].mxu0 }
 0x16d   : > { %v2019_v20 = vpop.f32.mrb[12].mxu1  ;;  %v1998_v21 = vpop.f32.mrb[13].mxu0 }
 0x16e   : > { %v2020_v22 = vpop.f32.mrb[13].mxu1  ;;  %v1999_v23 = vadd.f32 %v1998_v21, %v1997_v19  ;;  %v2000_v25 = vpop.f32.mrb[14].mxu0 }
 0x16f   : > { %v2021_v24 = vadd.f32 %v2020_v22, %v2019_v20  ;;  %v2022_v26 = vpop.f32.mrb[14].mxu1  ;;  %v2001_v27 = vpop.f32.mrb[15].mxu0 }
 0x170   : > { %v2023_v28 = vpop.f32.mrb[15].mxu1  ;;  %v1602_v29 = vadd.f32 %v1999_v23, %v1562_v18 }
 0x172   : > { %v1642_v31 = vadd.f32 %v2021_v24, %v1602_v29 }
 0x174   : > { %v1647_v32 = vadd.f32 %v1642_v31, %v194_v30 }
 0x176   : > { %1648 = vst [vmem:[#allocation2] sm:$0x3] %v1647_v32 }
 0x177   : > { %2186 = shalt.err (!%p2183_p13)
}
 0x178   : > { %s2187_s4 = scalar_lea.hbm %s2430_s3, 32 }
 0x179   : > { %p2188_p0 = scmp.ne.s32.totalorder %s2430_s3, %s2187_s4  ;;  %p2193_p3 = scmp.lt.u32.totalorder %s2187_s4, %s2430_s3 }
 0x17b   : > { %p2189_p1 = pnand %p2188_p0, %p2029_p6 }
 0x17d   : > { %p2190_p2 = pneg %p2189_p1 }
 0x17f   : > { %p2195_p4 = pnand %p2193_p3, %p2190_p2 }
 0x181   : > { %2198 = shalt.err (!%p2195_p4)
}
 0x182   : > { %2026 = dma.vmem_to_hbm [thread:$0]  (%p2029_p6), %s1657_s27, 32, %s2430_s3, [#allocation3]  }
 0x183   : > { %2204 = dma.done.wait (%p2029_p6), [#allocation3], 32  }
 0x184   : > { %2206 = vsyncadd (%p2029_p6), [#allocation3], 4294967264 }
 0x185 PF: > { %s14_s12 = sadd.s32 1, %s2209_s12  }
 0x186   : > { %p11_p5 = scmp.ge.s32.totalorder %s14_s12, 9  }
 0x188   :  { %13 = sbr.rel (!%p11_p5) target bundleno = 1 (0x1), region = 66 }
 0x18f   :  { %1669 = vsyncpa [#allocation3], 1 }
 0x190   :  { %1671 = vsyncpa [#allocation3 + $0x1], 1 }

// kernel: image_classifier_forward.2
= control target key start
LH: loop header
LB: loop body
LE: loop exit
PB: predicated region body
PF: predicated region fallthrough
CT: control target
= control target key end

     0   :  { %s6824_s30 = smov 0   ;;  %s10564_s0 = inlined_call_operand.vmem [shape: f32[2,16,16,1], index: 0, kind: input, shape index: {}]   ;;  %s10565_s1 = inlined_call_operand.vmem [shape: f32[3,3,32], index: 1, kind: input, shape index: {}]   ;;  %s10566_s2 = inlined_call_operand.vmem [shape: f32[1,32], index: 2, kind: input, shape index: {}]   ;;  %s10567_s3 = inlined_call_operand.vmem [shape: f32[3,96,64], index: 3, kind: input, shape index: {}]   ;;  %s10568_s4 = inlined_call_operand.vmem [shape: f32[1,64], index: 4, kind: input, shape index: {}]   ;;  %s10569_s5 = inlined_call_operand.vmem [shape: f32[3,192,128], index: 5, kind: input, shape index: {}]   ;;  %s10570_s6 = inlined_call_operand.vmem [shape: f32[1,128], index: 6, kind: input, shape index: {}]   ;;  %s10571_s7 = inlined_call_operand.vmem [shape: f32[3,384,256], index: 7, kind: input, shape index: {}]   ;;  %s10572_s8 = inlined_call_operand.vmem [shape: f32[1,256], index: 8, kind: input, shape index: {}]   ;;  %s10573_s9 = inlined_call_operand.vmem [shape: f32[2,8,7,256], index: 9, kind: output, shape index: {}]  }
   0x1 LB: > { %s5083_s10 = sadd.s32 4294967295, %s6766_s30   ;;  %p5087_p0 = scmp.ge.s32.totalorder %s6766_s30, 1  ;;  %s6766_s30 = sphi %s6824_s30, %s19_s30  }
   0x2   : > { %p287_p1 = scmp.lt.s32.totalorder %s6766_s30, 3 }
   0x4   : > { %p288_p2 = pnand %p5087_p0, %p287_p1 }
   0x6   : > { %291 = sbr.rel (%p288_p2) target bundleno = 2041 (0x7f9), region = 56 }
   0xd   : > { %p323_p3 = scmp.lt.s32.totalorder %s5083_s10, 1  ;;  %v397_v0 = vlaneseq  ;;  %v5092_v1 = vld [vmem:[%s10565_s1 + $0x4] sm:$0x7]  ;;  %vm907_vm0 = vcmask 1042432   ;;  %s6768_s17 = smov 2   ;;  %vm753_vm3 = vcmask 7168  }
   0xe   : > { %5779 = vmatprep.subr.msk.mxu0 %vm907_vm0, %v5092_v1  ;;  %s6769_s18 = smov 1   ;;  %vm786_vm4 = vcmask 15360   ;;  %vm822_vm5 = vcmask 23552   ;;  %s6770_s14 = smov 32   ;;  %vm1973_vm6 = vcmask 261120   ;;  %vm2002_vm7 = vcmask 523264  }
   0xf   : > { %s10592_s10 = smov (!%p323_p3, %s5083_s10), 1  ;;  %v6837_v2 = vshrl.u32 %v397_v0, 7  ;;  %5780 = vmatpush3.msk.msra.mxu0 %vm907_vm0, %v5092_v1  ;;  %s6771_s19 = smov 64   ;;  %vm2056_vm8 = vcmask 785408  }
  0x10   : > { %s5582_s13 = sshll.u32 %s10592_s10, 8 }
  0x11   : > { %s6845_s16 = scalar_lea.vmem %s10564_s0, %s5582_s13  ;;  %vm464_vm1 = vcmp.lt.s32.totalorder %v6837_v2, 6  ;;  %vm399_vm2 = vcmp.lt.s32.totalorder %v6837_v2, 7 }
  0x12   : > { %v6848_v3 = vld [vmem:[%s6845_s16 + $0x10] sm:$0xff]  ;;  %v6851_v4 = vld [vmem:[%s6845_s16 + $0x18] sm:$0xff]  ;;  %v6860_v9 = vld [vmem:[%s6845_s16 + $0x20] sm:$0xff] }
  0x13   : > { %v433_v5 = vrot.slane %v6848_v3, 2  ;;  %v449_v6 = vrot.slane %v6851_v4, 2  ;;  %v366_v7 = vrot.slane %v6848_v3, 1  ;;  %v382_v8 = vrot.slane %v6851_v4, 1  ;;  %v6863_v10 = vld [vmem:[%s6845_s16 + $0x28] sm:$0xff]  ;;  %v6886_v21 = vld [vmem:[%s6845_s16 + $0x30] sm:$0xff] }
  0x14   : > { %v367_v15 = vrot.slane %v6860_v9, 1  ;;  %v383_v16 = vrot.slane %v6863_v10, 1  ;;  %v434_v19 = vrot.slane %v6860_v9, 2  ;;  %v450_v20 = vrot.slane %v6863_v10, 2  ;;  %v6889_v22 = vld [vmem:[%s6845_s16 + $0x38] sm:$0xff]  ;;  %v6908_v31 = vld [vmem:[%s6845_s16 + $0x40] sm:$0xff] }
  0x15   : > { %v466_v11 = vsel %vm464_vm1, %v433_v5, %v449_v6  ;;  %v401_v12 = vsel %vm399_vm2, %v366_v7, %v382_v8  ;;  %v482_v13 = vsel %vm464_vm1, %v449_v6, %v433_v5  ;;  %v417_v14 = vsel %vm399_vm2, %v382_v8, %v366_v7  ;;  %v6911_v32 = vld [vmem:[%s6845_s16 + $0x48] sm:$0xff]  ;;  %v6930_v41 = vld [vmem:[%s6845_s16 + $0x50] sm:$0xff]  ;;  %v6933_v42 = vld [vmem:[%s6845_s16 + $0x58] sm:$0xff] }
  0x16   : > { %661 = vrot.lane.b32.xlu1 %v466_v11, %s6768_s17  ;;  %533 = vrot.lane.b32.xlu0 %v401_v12, %s6769_s18  ;;  %v418_v17 = vsel %vm399_vm2, %v383_v16, %v367_v15  ;;  %v402_v18 = vsel %vm399_vm2, %v367_v15, %v383_v16  ;;  %v483_v23 = vsel %vm464_vm1, %v450_v20, %v434_v19  ;;  %v368_v25 = vrot.slane %v6886_v21, 1  ;;  %v6952_v51 = vld [vmem:[%s6845_s16 + $0x60] sm:$0xff]  ;;  %v6955_v52 = vld [vmem:[%s6845_s16 + $0x68] sm:$0xff] }
  0x17   : > { %v467_v24 = vsel %vm464_vm1, %v434_v19, %v450_v20  ;;  %v384_v26 = vrot.slane %v6889_v22, 1  ;;  %v435_v29 = vrot.slane %v6886_v21, 2  ;;  %v451_v30 = vrot.slane %v6889_v22, 2  ;;  %v6974_v61 = vld [vmem:[%s6845_s16 + $0x70] sm:$0xff]  ;;  %v6977_v62 = vld [vmem:[%s6845_s16 + $0x78] sm:$0xff]  ;;  %v6996_v12 = vld [vmem:[%s6845_s16 + $0x80] sm:$0xff] }
  0x18   : > { %v369_v35 = vrot.slane %v6908_v31, 1  ;;  %v385_v36 = vrot.slane %v6911_v32, 1  ;;  %v436_v39 = vrot.slane %v6908_v31, 2  ;;  %v452_v40 = vrot.slane %v6911_v32, 2 }
  0x19   : > { %v419_v27 = vsel %vm399_vm2, %v384_v26, %v368_v25  ;;  %v403_v28 = vsel %vm399_vm2, %v368_v25, %v384_v26  ;;  %v484_v33 = vsel %vm464_vm1, %v451_v30, %v435_v29  ;;  %v468_v34 = vsel %vm464_vm1, %v435_v29, %v451_v30  ;;  %v7025_v25 = vld [vmem:[%s6845_s16 + $0x90] sm:$0xff]  ;;  %v7028_v26 = vld [vmem:[%s6845_s16 + $0x98] sm:$0xff] }
  0x1a   : > { %663 = vrot.lane.b32.xlu1 %v482_v13, %s6768_s17  ;;  %535 = vrot.lane.b32.xlu0 %v417_v14, %s6769_s18  ;;  %v420_v37 = vsel %vm399_vm2, %v385_v36, %v369_v35  ;;  %v404_v38 = vsel %vm399_vm2, %v369_v35, %v385_v36  ;;  %v485_v43 = vsel %vm464_vm1, %v452_v40, %v436_v39  ;;  %v370_v45 = vrot.slane %v6930_v41, 1  ;;  %v6999_v13 = vld [vmem:[%s6845_s16 + $0x88] sm:$0xff]  ;;  %v7006_v14 = vld [vmem:[%s10565_s1] sm:$0x7] }
  0x1b   : > { %v469_v44 = vsel %vm464_vm1, %v436_v39, %v452_v40  ;;  %v386_v46 = vrot.slane %v6933_v42, 1  ;;  %v437_v49 = vrot.slane %v6930_v41, 2  ;;  %v453_v50 = vrot.slane %v6933_v42, 2  ;;  %5823 = vmatprep.subr.msk.mxu0 %vm907_vm0, %v7006_v14  ;;  %v7055_v39 = vld [vmem:[%s10565_s1 + $0x8] sm:$0x7] }
  0x1c   : > { %v371_v55 = vrot.slane %v6952_v51, 1  ;;  %v387_v56 = vrot.slane %v6955_v52, 1  ;;  %v438_v59 = vrot.slane %v6952_v51, 2  ;;  %v454_v60 = vrot.slane %v6955_v52, 2  ;;  %6559 = vmatprep.subr.msk.mxu1 %vm907_vm0, %v7055_v39 }
  0x1d   : > { %v421_v47 = vsel %vm399_vm2, %v386_v46, %v370_v45  ;;  %v405_v48 = vsel %vm399_vm2, %v370_v45, %v386_v46  ;;  %v486_v53 = vsel %vm464_vm1, %v453_v50, %v437_v49  ;;  %v470_v54 = vsel %vm464_vm1, %v437_v49, %v453_v50  ;;  %6560 = vmatpush3.msk.msra.mxu1 %vm907_vm0, %v7055_v39  ;;  %v7078_v50 = vld [vmem:[%s6845_s16 + $0xb0] sm:$0xff] }
  0x1e   : > { %539 = vrot.lane.b32.xlu1 %v418_v17, %s6769_s18  ;;  %537 = vrot.lane.b32.xlu0 %v402_v18, %s6769_s18  ;;  %v422_v57 = vsel %vm399_vm2, %v387_v56, %v371_v55  ;;  %v406_v58 = vsel %vm399_vm2, %v371_v55, %v387_v56  ;;  %v487_v63 = vsel %vm464_vm1, %v454_v60, %v438_v59  ;;  %v372_v1 = vrot.slane %v6974_v61, 1 }
  0x1f   : > { %v471_v0 = vsel %vm464_vm1, %v438_v59, %v454_v60  ;;  %v388_v5 = vrot.slane %v6977_v62, 1  ;;  %v439_v8 = vrot.slane %v6974_v61, 2  ;;  %v455_v11 = vrot.slane %v6977_v62, 2 }
  0x20   : > { %v373_v17 = vrot.slane %v6996_v12, 1  ;;  %v389_v18 = vrot.slane %v6999_v13, 1  ;;  %v374_v29 = vrot.slane %v7025_v25, 1  ;;  %v390_v30 = vrot.slane %v7028_v26, 1 }
  0x21   : > { %v423_v6 = vsel %vm399_vm2, %v388_v5, %v372_v1  ;;  %v407_v7 = vsel %vm399_vm2, %v372_v1, %v388_v5  ;;  %v488_v15 = vsel %vm464_vm1, %v455_v11, %v439_v8  ;;  %v472_v16 = vsel %vm464_vm1, %v439_v8, %v455_v11  ;;  %v7103_v1 = vld [vmem:[%s6845_s16 + $0xc8] sm:$0xff] }
  0x22   : > { %667 = vrot.lane.b32.xlu1 %v483_v23, %s6768_s17  ;;  %665 = vrot.lane.b32.xlu0 %v467_v24, %s6768_s17  ;;  %v424_v19 = vsel %vm399_vm2, %v389_v18, %v373_v17  ;;  %v408_v20 = vsel %vm399_vm2, %v373_v17, %v389_v18  ;;  %v440_v23 = vrot.slane %v6996_v12, 2  ;;  %v456_v24 = vrot.slane %v6999_v13, 2  ;;  %v7122_v18 = vld [vmem:[%s6845_s16 + $0xd0] sm:$0xff] }
  0x23   : > { %v441_v35 = vrot.slane %v7025_v25, 2  ;;  %v457_v36 = vrot.slane %v7028_v26, 2  ;;  %v376_v56 = vrot.slane %v7078_v50, 1  ;;  %v443_v60 = vrot.slane %v7078_v50, 2 }
  0x24   : > { %v393_v8 = vrot.slane %v7103_v1, 1  ;;  %v460_v17 = vrot.slane %v7103_v1, 2 }
  0x25   : > { %v490_v40 = vsel %vm464_vm1, %v457_v36, %v441_v35 }
  0x26   : > { %543 = vrot.lane.b32.xlu1 %v419_v27, %s6769_s18  ;;  %541 = vrot.lane.b32.xlu0 %v403_v28, %s6769_s18  ;;  %v489_v27 = vsel %vm464_vm1, %v456_v24, %v440_v23  ;;  %v473_v28 = vsel %vm464_vm1, %v440_v23, %v456_v24  ;;  %v378_v24 = vrot.slane %v7122_v18, 1 }
  0x2a   : > { %671 = vrot.lane.b32.xlu1 %v484_v33, %s6768_s17  ;;  %669 = vrot.lane.b32.xlu0 %v468_v34, %s6768_s17  ;;  %v425_v33 = vsel %vm399_vm2, %v390_v30, %v374_v29  ;;  %v409_v34 = vsel %vm399_vm2, %v374_v29, %v390_v30  ;;  %v445_v30 = vrot.slane %v7122_v18, 2 }
  0x2e   : > { %547 = vrot.lane.b32.xlu1 %v420_v37, %s6769_s18  ;;  %545 = vrot.lane.b32.xlu0 %v404_v38, %s6769_s18  ;;  %v7047_v37 = vld [vmem:[%s6845_s16 + $0xa0] sm:$0xff]  ;;  %v7050_v38 = vld [vmem:[%s6845_s16 + $0xa8] sm:$0xff] }
  0x2f   : > { %v391_v45 = vrot.slane %v7050_v38, 1  ;;  %v458_v49 = vrot.slane %v7050_v38, 2 }
  0x32   : > { %675 = vrot.lane.b32.xlu1 %v485_v43, %s6768_s17  ;;  %673 = vrot.lane.b32.xlu0 %v469_v44, %s6768_s17  ;;  %v474_v43 = vsel %vm464_vm1, %v441_v35, %v457_v36  ;;  %v375_v44 = vrot.slane %v7047_v37, 1  ;;  %v7147_v35 = vld [vmem:[%s6845_s16 + $0xe8] sm:$0xff] }
  0x34   : > { %v426_v46 = vsel %vm399_vm2, %v391_v45, %v375_v44 }
  0x36   : > { %551 = vrot.lane.b32.xlu1 %v421_v47, %s6769_s18  ;;  %549 = vrot.lane.b32.xlu0 %v405_v48, %s6769_s18  ;;  %v410_v47 = vsel %vm399_vm2, %v375_v44, %v391_v45  ;;  %v442_v48 = vrot.slane %v7047_v37, 2  ;;  %v395_v44 = vrot.slane %v7147_v35, 1 }
  0x38   : > { %v475_v55 = vsel %vm464_vm1, %v442_v48, %v458_v49 }
  0x3a   : > { %679 = vrot.lane.b32.xlu1 %v486_v53, %s6768_s17  ;;  %677 = vrot.lane.b32.xlu0 %v470_v54, %s6768_s17  ;;  %v7081_v53 = vld [vmem:[%s6845_s16 + $0xb8] sm:$0xff]  ;;  %v491_v54 = vsel %vm464_vm1, %v458_v49, %v442_v48  ;;  %v462_v48 = vrot.slane %v7147_v35, 2  ;;  %v7166_v49 = vld [vmem:[%s6845_s16] sm:$0xff] }
  0x3e   : > { %555 = vrot.lane.b32.xlu1 %v422_v57, %s6769_s18  ;;  %553 = vrot.lane.b32.xlu0 %v406_v58, %s6769_s18  ;;  %v392_v57 = vrot.slane %v7081_v53, 1 }
  0x40   : > { %v427_v58 = vsel %vm399_vm2, %v392_v57, %v376_v56  ;;  %v411_v59 = vsel %vm399_vm2, %v376_v56, %v392_v57  ;;  %v365_v57 = vrot.slane %v7166_v49, 1 }
  0x42   : > { %683 = vrot.lane.b32.xlu1 %v487_v63, %s6768_s17  ;;  %681 = vrot.lane.b32.xlu0 %v471_v0, %s6768_s17  ;;  %v459_v63 = vrot.slane %v7081_v53, 2  ;;  %v7100_v0 = vld [vmem:[%s6845_s16 + $0xc0] sm:$0xff] }
  0x44   : > { %v492_v5 = vsel %vm464_vm1, %v459_v63, %v443_v60 }
  0x46   : > { %559 = vrot.lane.b32.xlu1 %v423_v6, %s6769_s18  ;;  %557 = vrot.lane.b32.xlu0 %v407_v7, %s6769_s18  ;;  %v476_v6 = vsel %vm464_vm1, %v443_v60, %v459_v63  ;;  %v377_v7 = vrot.slane %v7100_v0, 1  ;;  %v432_v63 = vrot.slane %v7166_v49, 2 }
  0x48   : > { %v428_v11 = vsel %vm399_vm2, %v393_v8, %v377_v7 }
  0x4a   : > { %687 = vrot.lane.b32.xlu1 %v488_v15, %s6768_s17  ;;  %685 = vrot.lane.b32.xlu0 %v472_v16, %s6768_s17  ;;  %v412_v15 = vsel %vm399_vm2, %v377_v7, %v393_v8  ;;  %v444_v16 = vrot.slane %v7100_v0, 2  ;;  %v7191_v7 = vld [vmem:[%s6845_s16 + $0xf8] sm:$0xff] }
  0x4c   : > { %v477_v23 = vsel %vm464_vm1, %v444_v16, %v460_v17 }
  0x4e   : > { %563 = vrot.lane.b32.xlu1 %v424_v19, %s6769_s18  ;;  %561 = vrot.lane.b32.xlu0 %v408_v20, %s6769_s18  ;;  %v7125_v19 = vld [vmem:[%s6845_s16 + $0xd8] sm:$0xff]  ;;  %v493_v20 = vsel %vm464_vm1, %v460_v17, %v444_v16  ;;  %v396_v16 = vrot.slane %v7191_v7, 1 }
  0x52   : > { %691 = vrot.lane.b32.xlu1 %v489_v27, %s6768_s17  ;;  %689 = vrot.lane.b32.xlu0 %v473_v28, %s6768_s17  ;;  %v394_v27 = vrot.slane %v7125_v19, 1 }
  0x54   : > { %v429_v28 = vsel %vm399_vm2, %v394_v27, %v378_v24  ;;  %v413_v29 = vsel %vm399_vm2, %v378_v24, %v394_v27 }
  0x56   : > { %567 = vrot.lane.b32.xlu1 %v425_v33, %s6769_s18  ;;  %565 = vrot.lane.b32.xlu0 %v409_v34, %s6769_s18  ;;  %v461_v33 = vrot.slane %v7125_v19, 2  ;;  %v7144_v34 = vld [vmem:[%s6845_s16 + $0xe0] sm:$0xff] }
  0x58   : > { %v494_v36 = vsel %vm464_vm1, %v461_v33, %v445_v30 }
  0x5a   : > { %695 = vrot.lane.b32.xlu1 %v490_v40, %s6768_s17  ;;  %693 = vrot.lane.b32.xlu0 %v474_v43, %s6768_s17  ;;  %v478_v40 = vsel %vm464_vm1, %v445_v30, %v461_v33  ;;  %v379_v43 = vrot.slane %v7144_v34, 1 }
  0x5c   : > { %v430_v45 = vsel %vm399_vm2, %v395_v44, %v379_v43 }
  0x5e   : > { %571 = vrot.lane.b32.xlu1 %v426_v46, %s6769_s18  ;;  %569 = vrot.lane.b32.xlu0 %v410_v47, %s6769_s18  ;;  %v414_v46 = vsel %vm399_vm2, %v379_v43, %v395_v44  ;;  %v446_v47 = vrot.slane %v7144_v34, 2 }
  0x60   : > { %v479_v56 = vsel %vm464_vm1, %v446_v47, %v462_v48 }
  0x62   : > { %699 = vrot.lane.b32.xlu1 %v491_v54, %s6768_s17  ;;  %697 = vrot.lane.b32.xlu0 %v475_v55, %s6768_s17  ;;  %v7169_v54 = vld [vmem:[%s6845_s16 + $0x8] sm:$0xff]  ;;  %v495_v55 = vsel %vm464_vm1, %v462_v48, %v446_v47 }
  0x66   : > { %575 = vrot.lane.b32.xlu1 %v427_v58, %s6769_s18  ;;  %573 = vrot.lane.b32.xlu0 %v411_v59, %s6769_s18  ;;  %v381_v58 = vrot.slane %v7169_v54, 1 }
  0x68   : > { %v416_v59 = vsel %vm399_vm2, %v381_v58, %v365_v57  ;;  %v400_v60 = vsel %vm399_vm2, %v365_v57, %v381_v58 }
  0x6a   : > { %703 = vrot.lane.b32.xlu1 %v492_v5, %s6768_s17  ;;  %701 = vrot.lane.b32.xlu0 %v476_v6, %s6768_s17  ;;  %v448_v5 = vrot.slane %v7169_v54, 2  ;;  %v7188_v6 = vld [vmem:[%s6845_s16 + $0xf0] sm:$0xff]  ;;  %s5583_s16 = sshll.u32 %s10592_s10, 7 }
  0x6c   : > { %v481_v8 = vsel %vm464_vm1, %v448_v5, %v432_v63 }
  0x6e   : > { %579 = vrot.lane.b32.xlu1 %v428_v11, %s6769_s18  ;;  %577 = vrot.lane.b32.xlu0 %v412_v15, %s6769_s18  ;;  %v465_v11 = vsel %vm464_vm1, %v432_v63, %v448_v5  ;;  %v380_v15 = vrot.slane %v7188_v6, 1 }
  0x70   : > { %v415_v27 = vsel %vm399_vm2, %v380_v15, %v396_v16 }
  0x72   : > { %707 = vrot.lane.b32.xlu1 %v493_v20, %s6768_s17  ;;  %705 = vrot.lane.b32.xlu0 %v477_v23, %s6768_s17 }
  0x76   : > { %583 = vrot.lane.b32.xlu1 %v429_v28, %s6769_s18  ;;  %581 = vrot.lane.b32.xlu0 %v413_v29, %s6769_s18  ;;  %v431_v28 = vsel %vm399_vm2, %v396_v16, %v380_v15  ;;  %v447_v29 = vrot.slane %v7188_v6, 2 }
  0x7a   : > { %711 = vrot.lane.b32.xlu1 %v494_v36, %s6768_s17  ;;  %709 = vrot.lane.b32.xlu0 %v478_v40, %s6768_s17 }
  0x7e   : > { %587 = vrot.lane.b32.xlu1 %v430_v45, %s6769_s18  ;;  %585 = vrot.lane.b32.xlu0 %v414_v46, %s6769_s18 }
  0x82   : > { %715 = vrot.lane.b32.xlu1 %v495_v55, %s6768_s17  ;;  %713 = vrot.lane.b32.xlu0 %v479_v56, %s6768_s17 }
  0x86   : > { %531 = vrot.lane.b32.xlu1 %v416_v59, %s6769_s18  ;;  %529 = vrot.lane.b32.xlu0 %v400_v60, %s6769_s18 }
  0x88   : > { %v662_v17 = vpop.permute.xlu1 %661  ;;  %v534_v20 = vpop.permute.xlu0 %533 }
  0x89   : > { %v756_v23 = vsel %vm753_vm3, %v6848_v3, %v534_v20  ;;  %v463_v3 = vrot.slane %v7191_v7, 2 }
  0x8a   : > { %659 = vrot.lane.b32.xlu1 %v481_v8, %s6768_s17  ;;  %657 = vrot.lane.b32.xlu0 %v465_v11, %s6768_s17  ;;  %v7206_v24 = vsel %vm786_vm4, %v756_v23, %v662_v17 }
  0x8b   : > { %5781 = vmatprep.mubr.msk.f32.mxu0 %vm822_vm5, %v7206_v24  ;;  %v480_v43 = vsel %vm464_vm1, %v447_v29, %v463_v3  ;;  %v496_v44 = vsel %vm464_vm1, %v463_v3, %v447_v29 }
  0x8c   : > { %v664_v30 = vpop.permute.xlu1 %663  ;;  %v536_v33 = vpop.permute.xlu0 %535 }
  0x8d   : > { %v757_v36 = vsel %vm753_vm3, %v6851_v4, %v536_v33 }
  0x8e   : > { %v7219_v40 = vsel %vm786_vm4, %v757_v36, %v664_v30  ;;  %589 = vrot.lane.b32.xlu0 %v415_v27, %s6769_s18  ;;  %591 = vrot.lane.b32.xlu1 %v431_v28, %s6769_s18  ;;  %s10514_s18 = scalar_lea.vmem %s10573_s9, %s5583_s16 }
  0x8f   : > { %5782 = vmatmul.mubr.msk.f32.vlgmr.msra.gmra.mrb[0].mxu0 %vm822_vm5, %v7219_v40 }
  0x90   : > { %v540_v45 = vpop.permute.xlu1 %539  ;;  %v538_v46 = vpop.permute.xlu0 %537  ;;  %5824 = vmatpush3.msk.msra.mxu0 %vm907_vm0, %v7006_v14 }
  0x91   : > { %5867 = vmatprep.subr.msk.mxu0 %vm907_vm0, %v7055_v39  ;;  %v759_v4 = vsel %vm753_vm3, %v6863_v10, %v540_v45  ;;  %v758_v47 = vsel %vm753_vm3, %v6860_v9, %v538_v46 }
  0x92   : > { %717 = vrot.lane.b32.xlu0 %v480_v43, %s6768_s17  ;;  %719 = vrot.lane.b32.xlu1 %v496_v44, %s6768_s17 }
  0x94   : > { %v668_v48 = vpop.permute.xlu1 %667  ;;  %v666_v55 = vpop.permute.xlu0 %665 }
  0x95   : > { %v7240_v56 = vsel %vm786_vm4, %v759_v4, %v668_v48  ;;  %v7243_v14 = vsel %vm786_vm4, %v758_v47, %v666_v55 }
  0x96   : > { %5784 = vmatprep.mubr.msk.f32.mxu0 %vm822_vm5, %v7243_v14 }
  0x97   : > { %5785 = vmatmul.mubr.msk.f32.gmra.mrb[2].mxu0 %vm822_vm5, %v7240_v56 }
  0x98   : > { %v544_v57 = vpop.permute.xlu1 %543  ;;  %v542_v58 = vpop.permute.xlu0 %541 }
  0x99   : > { %v761_v10 = vsel %vm753_vm3, %v6889_v22, %v544_v57  ;;  %v760_v9 = vsel %vm753_vm3, %v6886_v21, %v542_v58 }
  0x9c   : > { %v672_v59 = vpop.permute.xlu1 %671  ;;  %v670_v60 = vpop.permute.xlu0 %669 }
  0x9d   : > { %v7254_v63 = vsel %vm786_vm4, %v761_v10, %v672_v59  ;;  %v7257_v5 = vsel %vm786_vm4, %v760_v9, %v670_v60 }
  0x9e   : > { %5787 = vmatprep.mubr.msk.f32.mxu0 %vm822_vm5, %v7257_v5 }
  0x9f   : > { %5788 = vmatmul.mubr.msk.f32.gmra.mrb[4].mxu0 %vm822_vm5, %v7254_v63 }
  0xa0   : > { %v548_v8 = vpop.permute.xlu1 %547  ;;  %v546_v11 = vpop.permute.xlu0 %545 }
  0xa1   : > { %v763_v22 = vsel %vm753_vm3, %v6911_v32, %v548_v8  ;;  %v762_v21 = vsel %vm753_vm3, %v6908_v31, %v546_v11 }
  0xa4   : > { %v676_v15 = vpop.permute.xlu1 %675  ;;  %v674_v16 = vpop.permute.xlu0 %673 }
  0xa5   : > { %v7268_v17 = vsel %vm786_vm4, %v763_v22, %v676_v15  ;;  %v7271_v20 = vsel %vm786_vm4, %v762_v21, %v674_v16 }
  0xa6   : > { %5790 = vmatprep.mubr.msk.f32.mxu0 %vm822_vm5, %v7271_v20 }
  0xa7   : > { %5791 = vmatmul.mubr.msk.f32.gmra.mrb[6].mxu0 %vm822_vm5, %v7268_v17 }
  0xa8   : > { %v552_v23 = vpop.permute.xlu1 %551  ;;  %v550_v27 = vpop.permute.xlu0 %549 }
  0xa9   : > { %v765_v32 = vsel %vm753_vm3, %v6933_v42, %v552_v23  ;;  %v764_v31 = vsel %vm753_vm3, %v6930_v41, %v550_v27 }
  0xac   : > { %v680_v28 = vpop.permute.xlu1 %679  ;;  %v678_v29 = vpop.permute.xlu0 %677 }
  0xad   : > { %v7282_v3 = vsel %vm786_vm4, %v765_v32, %v680_v28  ;;  %v7285_v30 = vsel %vm786_vm4, %v764_v31, %v678_v29 }
  0xae   : > { %5793 = vmatprep.mubr.msk.f32.mxu0 %vm822_vm5, %v7285_v30 }
  0xaf   : > { %5794 = vmatmul.mubr.msk.f32.gmra.mrb[8].mxu0 %vm822_vm5, %v7282_v3 }
  0xb0   : > { %v556_v33 = vpop.permute.xlu1 %555  ;;  %v554_v36 = vpop.permute.xlu0 %553 }
  0xb1   : > { %v767_v42 = vsel %vm753_vm3, %v6955_v52, %v556_v33  ;;  %v766_v41 = vsel %vm753_vm3, %v6952_v51, %v554_v36 }
  0xb4   : > { %v684_v43 = vpop.permute.xlu1 %683  ;;  %v682_v44 = vpop.permute.xlu0 %681 }
  0xb5   : > { %v7296_v45 = vsel %vm786_vm4, %v767_v42, %v684_v43  ;;  %v7299_v46 = vsel %vm786_vm4, %v766_v41, %v682_v44 }
  0xb6   : > { %5796 = vmatprep.mubr.msk.f32.mxu0 %vm822_vm5, %v7299_v46 }
  0xb7   : > { %5797 = vmatmul.mubr.msk.f32.gmra.mrb[10].mxu0 %vm822_vm5, %v7296_v45 }
  0xb8   : > { %v560_v4 = vpop.permute.xlu1 %559  ;;  %v558_v47 = vpop.permute.xlu0 %557 }
  0xb9   : > { %v769_v52 = vsel %vm753_vm3, %v6977_v62, %v560_v4  ;;  %v768_v51 = vsel %vm753_vm3, %v6974_v61, %v558_v47 }
  0xbc   : > { %v688_v48 = vpop.permute.xlu1 %687  ;;  %v686_v55 = vpop.permute.xlu0 %685 }
  0xbd   : > { %v7310_v57 = vsel %vm786_vm4, %v769_v52, %v688_v48  ;;  %v7313_v58 = vsel %vm786_vm4, %v768_v51, %v686_v55 }
  0xbe   : > { %5799 = vmatprep.mubr.msk.f32.mxu0 %vm822_vm5, %v7313_v58 }
  0xbf   : > { %5800 = vmatmul.mubr.msk.f32.gmra.mrb[12].mxu0 %vm822_vm5, %v7310_v57 }
  0xc0   : > { %v564_v10 = vpop.permute.xlu1 %563  ;;  %v562_v9 = vpop.permute.xlu0 %561 }
  0xc1   : > { %v771_v62 = vsel %vm753_vm3, %v6999_v13, %v564_v10  ;;  %v770_v61 = vsel %vm753_vm3, %v6996_v12, %v562_v9 }
  0xc4   : > { %v692_v59 = vpop.permute.xlu1 %691  ;;  %v690_v60 = vpop.permute.xlu0 %689 }
  0xc5   : > { %v7324_v8 = vsel %vm786_vm4, %v771_v62, %v692_v59  ;;  %v7327_v11 = vsel %vm786_vm4, %v770_v61, %v690_v60 }
  0xc6   : > { %5802 = vmatprep.mubr.msk.f32.mxu0 %vm822_vm5, %v7327_v11 }
  0xc7   : > { %5803 = vmatmul.mubr.msk.f32.gmra.mrb[14].mxu0 %vm822_vm5, %v7324_v8 }
  0xc8   : > { %v568_v22 = vpop.permute.xlu1 %567  ;;  %v566_v21 = vpop.permute.xlu0 %565 }
  0xc9   : > { %v773_v13 = vsel %vm753_vm3, %v7028_v26, %v568_v22  ;;  %v772_v12 = vsel %vm753_vm3, %v7025_v25, %v566_v21 }
  0xcc   : > { %v696_v15 = vpop.permute.xlu1 %695  ;;  %v694_v16 = vpop.permute.xlu0 %693 }
  0xcd   : > { %v7338_v23 = vsel %vm786_vm4, %v773_v13, %v696_v15  ;;  %v7341_v27 = vsel %vm786_vm4, %v772_v12, %v694_v16 }
  0xce   : > { %5805 = vmatprep.mubr.msk.f32.mxu0 %vm822_vm5, %v7341_v27 }
  0xcf   : > { %5806 = vmatmul.mubr.msk.f32.gmra.mrb[16].mxu0 %vm822_vm5, %v7338_v23 }
  0xd0   : > { %v572_v32 = vpop.permute.xlu1 %571  ;;  %v570_v31 = vpop.permute.xlu0 %569 }
  0xd1   : > { %v775_v26 = vsel %vm753_vm3, %v7050_v38, %v572_v32  ;;  %v774_v25 = vsel %vm753_vm3, %v7047_v37, %v570_v31 }
  0xd4   : > { %v700_v28 = vpop.permute.xlu1 %699  ;;  %v698_v29 = vpop.permute.xlu0 %697 }
  0xd5   : > { %v7352_v33 = vsel %vm786_vm4, %v775_v26, %v700_v28  ;;  %v7355_v36 = vsel %vm786_vm4, %v774_v25, %v698_v29 }
  0xd6   : > { %5808 = vmatprep.mubr.msk.f32.mxu0 %vm822_vm5, %v7355_v36  ;;  %5893 = vmatprep.mubr.msk.f32.mxu1 %vm822_vm5, %v7355_v36 }
  0xd7   : > { %5809 = vmatmul.mubr.msk.f32.gmra.mrb[18].mxu0 %vm822_vm5, %v7352_v33  ;;  %5894 = vmatmul.mubr.msk.f32.vlgmr.msra.gmra.mrb[0].mxu1 %vm822_vm5, %v7352_v33 }
  0xd8   : > { %v576_v37 = vpop.permute.xlu1 %575  ;;  %v574_v38 = vpop.permute.xlu0 %573 }
  0xd9   : > { %v777_v42 = vsel %vm753_vm3, %v7081_v53, %v576_v37  ;;  %v776_v41 = vsel %vm753_vm3, %v7078_v50, %v574_v38 }
  0xdc   : > { %v704_v43 = vpop.permute.xlu1 %703  ;;  %v702_v44 = vpop.permute.xlu0 %701 }
  0xdd   : > { %v7370_v4 = vsel %vm786_vm4, %v777_v42, %v704_v43  ;;  %v7373_v47 = vsel %vm786_vm4, %v776_v41, %v702_v44 }
  0xde   : > { %5811 = vmatprep.mubr.msk.f32.mxu0 %vm822_vm5, %v7373_v47  ;;  %5896 = vmatprep.mubr.msk.f32.mxu1 %vm822_vm5, %v7373_v47 }
  0xdf   : > { %5812 = vmatmul.mubr.msk.f32.gmra.mrb[20].mxu0 %vm822_vm5, %v7370_v4  ;;  %5897 = vmatmul.mubr.msk.f32.gmra.mrb[2].mxu1 %vm822_vm5, %v7370_v4 }
  0xe0   : > { %v580_v50 = vpop.permute.xlu1 %579  ;;  %v578_v53 = vpop.permute.xlu0 %577 }
  0xe1   : > { %v779_v52 = vsel %vm753_vm3, %v7103_v1, %v580_v50  ;;  %v778_v51 = vsel %vm753_vm3, %v7100_v0, %v578_v53  ;;  %v5182_v50 = vld [vmem:[%s10567_s3 + $0x60] sm:$0xff]  ;;  %v5183_v53 = vld [vmem:[%s10567_s3 + $0x68] sm:$0xff] }
  0xe4   : > { %v708_v48 = vpop.permute.xlu1 %707  ;;  %v706_v55 = vpop.permute.xlu0 %705 }
  0xe5   : > { %v7388_v10 = vsel %vm786_vm4, %v779_v52, %v708_v48  ;;  %v7391_v9 = vsel %vm786_vm4, %v778_v51, %v706_v55  ;;  %v6091_v48 = vpack.c.bf16 %v5183_v53, %v5182_v50 }
  0xe6   : > { %5814 = vmatprep.mubr.msk.f32.mxu0 %vm822_vm5, %v7391_v9  ;;  %5899 = vmatprep.mubr.msk.f32.mxu1 %vm822_vm5, %v7391_v9 }
  0xe7   : > { %5815 = vmatmul.mubr.msk.f32.gmra.mrb[22].mxu0 %vm822_vm5, %v7388_v10  ;;  %5900 = vmatmul.mubr.msk.f32.gmra.mrb[4].mxu1 %vm822_vm5, %v7388_v10 }
  0xe8   : > { %v584_v0 = vpop.permute.xlu1 %583  ;;  %v582_v1 = vpop.permute.xlu0 %581  ;;  %6092 = vmatprep.subr.bf16.mxu1 %v6091_v48 }
  0xe9   : > { %v781_v62 = vsel %vm753_vm3, %v7125_v19, %v584_v0  ;;  %v780_v61 = vsel %vm753_vm3, %v7122_v18, %v582_v1  ;;  %6094 = vmatpush3.bf16.msra.mxu1 %v6091_v48 }
  0xec   : > { %v712_v59 = vpop.permute.xlu1 %711  ;;  %v710_v60 = vpop.permute.xlu0 %709 }
  0xed   : > { %v7406_v22 = vsel %vm786_vm4, %v781_v62, %v712_v59  ;;  %v813_v21 = vsel %vm786_vm4, %v780_v61, %v710_v60 }
  0xee   : > { %5817 = vmatprep.mubr.msk.f32.mxu0 %vm822_vm5, %v813_v21  ;;  %5902 = vmatprep.mubr.msk.f32.mxu1 %vm822_vm5, %v813_v21 }
  0xef   : > { %5818 = vmatmul.mubr.msk.f32.gmra.mrb[24].mxu0 %vm822_vm5, %v7406_v22  ;;  %5903 = vmatmul.mubr.msk.f32.gmra.mrb[6].mxu1 %vm822_vm5, %v7406_v22 }
  0xf0   : > { %v588_v19 = vpop.permute.xlu1 %587  ;;  %v586_v13 = vpop.permute.xlu0 %585 }
  0xf1   : > { %v783_v18 = vsel %vm753_vm3, %v7147_v35, %v588_v19  ;;  %v782_v12 = vsel %vm753_vm3, %v7144_v34, %v586_v13 }
  0xf4   : > { %v716_v15 = vpop.permute.xlu1 %715  ;;  %v714_v16 = vpop.permute.xlu0 %713 }
  0xf5   : > { %v816_v32 = vsel %vm786_vm4, %v783_v18, %v716_v15  ;;  %v815_v31 = vsel %vm786_vm4, %v782_v12, %v714_v16  ;;  %v5184_v12 = vld [vmem:[%s10567_s3 + $0x70] sm:$0xff]  ;;  %v5185_v15 = vld [vmem:[%s10567_s3 + $0x78] sm:$0xff] }
  0xf6   : > { %5820 = vmatprep.mubr.msk.f32.mxu0 %vm822_vm5, %v815_v31  ;;  %5905 = vmatprep.mubr.msk.f32.mxu1 %vm822_vm5, %v815_v31 }
  0xf7   : > { %5821 = vmatmul.mubr.msk.f32.gmra.mrb[26].mxu0 %vm822_vm5, %v816_v32  ;;  %5906 = vmatmul.mubr.msk.f32.gmra.mrb[8].mxu1 %vm822_vm5, %v816_v32 }
  0xf8   : > { %v532_v26 = vpop.permute.xlu1 %531  ;;  %v530_v25 = vpop.permute.xlu0 %529 }
  0xf9   : > { %v755_v35 = vsel %vm753_vm3, %v7169_v54, %v532_v26  ;;  %v754_v34 = vsel %vm753_vm3, %v7166_v49, %v530_v25 }
  0xfc   : > { %v660_v28 = vpop.permute.xlu1 %659  ;;  %v658_v29 = vpop.permute.xlu0 %657 }
  0xfd   : > { %v788_v37 = vsel %vm786_vm4, %v755_v35, %v660_v28  ;;  %v787_v38 = vsel %vm786_vm4, %v754_v34, %v658_v29  ;;  %v6095_v34 = vpack.c.bf16 %v5185_v15, %v5184_v12 }
  0xfe   : > { %5825 = vmatprep.mubr.msk.f32.mxu0 %vm822_vm5, %v787_v38 }
  0xff   : > { %5826 = vmatmul.mubr.msk.f32.vlgmr.msra.gmra.mrb[0].mxu0 %vm822_vm5, %v788_v37  ;;  %6096 = vmatprep.subr.bf16.mxu1 %v6095_v34 }
 0x100   : > { %5868 = vmatpush3.msk.msra.mxu0 %vm907_vm0, %v7055_v39  ;;  %5828 = vmatprep.mubr.msk.f32.mxu0 %vm822_vm5, %v7206_v24  ;;  %v590_v54 = vpop.permute.xlu0 %589  ;;  %v592_v42 = vpop.permute.xlu1 %591 }
 0x101   : > { %v784_v49 = vsel %vm753_vm3, %v7188_v6, %v590_v54  ;;  %v785_v41 = vsel %vm753_vm3, %v7191_v7, %v592_v42  ;;  %v5186_v54 = vld [vmem:[%s10567_s3 + $0x80] sm:$0xff]  ;;  %v5187_v42 = vld [vmem:[%s10567_s3 + $0x88] sm:$0xff]  ;;  %6098 = vmatpush3.bf16.msra.mxu1 %v6095_v34 }
 0x103   : > { %5829 = vmatmul.mubr.msk.f32.gmra.mrb[2].mxu0 %vm822_vm5, %v7219_v40 }
 0x104   : > { %5831 = vmatprep.mubr.msk.f32.mxu0 %vm822_vm5, %v7243_v14  ;;  %v718_v43 = vpop.permute.xlu0 %717  ;;  %v720_v44 = vpop.permute.xlu1 %719 }
 0x105   : > { %v817_v39 = vsel %vm786_vm4, %v784_v49, %v718_v43  ;;  %v818_v24 = vsel %vm786_vm4, %v785_v41, %v720_v44 }
 0x106   : > { %5908 = vmatprep.mubr.msk.f32.mxu1 %vm822_vm5, %v817_v39 }
 0x107   : > { %5832 = vmatmul.mubr.msk.f32.gmra.mrb[4].mxu0 %vm822_vm5, %v7240_v56  ;;  %5909 = vmatmul.mubr.msk.f32.gmra.mrb[10].mxu1 %vm822_vm5, %v818_v24 }
 0x108   : > { %5834 = vmatprep.mubr.msk.f32.mxu0 %vm822_vm5, %v7257_v5 }
 0x10b   : > { %5835 = vmatmul.mubr.msk.f32.gmra.mrb[6].mxu0 %vm822_vm5, %v7254_v63 }
 0x10c   : > { %5837 = vmatprep.mubr.msk.f32.mxu0 %vm822_vm5, %v7271_v20 }
 0x10f   : > { %5838 = vmatmul.mubr.msk.f32.gmra.mrb[8].mxu0 %vm822_vm5, %v7268_v17 }
 0x110   : > { %5840 = vmatprep.mubr.msk.f32.mxu0 %vm822_vm5, %v7285_v30 }
 0x113   : > { %5841 = vmatmul.mubr.msk.f32.gmra.mrb[10].mxu0 %vm822_vm5, %v7282_v3 }
 0x114   : > { %5843 = vmatprep.mubr.msk.f32.mxu0 %vm822_vm5, %v7299_v46 }
 0x117   : > { %5844 = vmatmul.mubr.msk.f32.gmra.mrb[12].mxu0 %vm822_vm5, %v7296_v45 }
 0x118   : > { %5846 = vmatprep.mubr.msk.f32.mxu0 %vm822_vm5, %v7313_v58 }
 0x11b   : > { %5847 = vmatmul.mubr.msk.f32.gmra.mrb[14].mxu0 %vm822_vm5, %v7310_v57 }
 0x11c   : > { %5849 = vmatprep.mubr.msk.f32.mxu0 %vm822_vm5, %v7327_v11 }
 0x11f   : > { %5850 = vmatmul.mubr.msk.f32.gmra.mrb[16].mxu0 %vm822_vm5, %v7324_v8 }
 0x120   : > { %5852 = vmatprep.mubr.msk.f32.mxu0 %vm822_vm5, %v7341_v27 }
 0x123   : > { %5853 = vmatmul.mubr.msk.f32.gmra.mrb[18].mxu0 %vm822_vm5, %v7338_v23 }
 0x124   : > { %5855 = vmatprep.mubr.msk.f32.mxu0 %vm822_vm5, %v7355_v36 }
 0x127   : > { %5856 = vmatmul.mubr.msk.f32.gmra.mrb[20].mxu0 %vm822_vm5, %v7352_v33 }
 0x128   : > { %5858 = vmatprep.mubr.msk.f32.mxu0 %vm822_vm5, %v7373_v47 }
 0x12b   : > { %5859 = vmatmul.mubr.msk.f32.gmra.mrb[22].mxu0 %vm822_vm5, %v7370_v4 }
 0x12c   : > { %5861 = vmatprep.mubr.msk.f32.mxu0 %vm822_vm5, %v7391_v9 }
 0x12f   : > { %5862 = vmatmul.mubr.msk.f32.gmra.mrb[24].mxu0 %vm822_vm5, %v7388_v10 }
 0x130   : > { %5864 = vmatprep.mubr.msk.f32.mxu0 %vm822_vm5, %v813_v21 }
 0x133   : > { %5865 = vmatmul.mubr.msk.f32.gmra.mrb[26].mxu0 %vm822_vm5, %v7406_v22 }
 0x134   : > { %5869 = vmatprep.mubr.msk.f32.mxu0 %vm822_vm5, %v7243_v14 }
 0x137   : > { %5870 = vmatmul.mubr.msk.f32.vlgmr.msra.gmra.mrb[0].mxu0 %vm822_vm5, %v7240_v56 }
 0x138   : > { %5872 = vmatprep.mubr.msk.f32.mxu0 %vm822_vm5, %v7257_v5 }
 0x13b   : > { %5873 = vmatmul.mubr.msk.f32.gmra.mrb[2].mxu0 %vm822_vm5, %v7254_v63 }
 0x13c   : > { %5875 = vmatprep.mubr.msk.f32.mxu0 %vm822_vm5, %v7271_v20 }
 0x13f   : > { %5876 = vmatmul.mubr.msk.f32.gmra.mrb[4].mxu0 %vm822_vm5, %v7268_v17 }
 0x140   : > { %5878 = vmatprep.mubr.msk.f32.mxu0 %vm822_vm5, %v7285_v30 }
 0x143   : > { %5879 = vmatmul.mubr.msk.f32.gmra.mrb[6].mxu0 %vm822_vm5, %v7282_v3 }
 0x144   : > { %5881 = vmatprep.mubr.msk.f32.mxu0 %vm822_vm5, %v7299_v46 }
 0x147   : > { %5882 = vmatmul.mubr.msk.f32.gmra.mrb[8].mxu0 %vm822_vm5, %v7296_v45 }
 0x148   : > { %5884 = vmatprep.mubr.msk.f32.mxu0 %vm822_vm5, %v7313_v58 }
 0x14b   : > { %5885 = vmatmul.mubr.msk.f32.gmra.mrb[10].mxu0 %vm822_vm5, %v7310_v57  ;;  %v7537_v57 = vld [vmem:[%s10566_s2] ss:$0 sm:$0xff] }
 0x14c   : > { %5887 = vmatprep.mubr.msk.f32.mxu0 %vm822_vm5, %v7327_v11 }
 0x14f   : > { %5888 = vmatmul.mubr.msk.f32.gmra.mrb[12].mxu0 %vm822_vm5, %v7324_v8 }
 0x150   : > { %5890 = vmatprep.mubr.msk.f32.mxu0 %vm822_vm5, %v7341_v27 }
 0x153   : > { %5891 = vmatmul.mubr.msk.f32.gmra.mrb[14].mxu0 %vm822_vm5, %v7338_v23 }
 0x1aa   : > { %v5895_v6 = vpop.f32.mrb[0].mxu1 }
 0x1ab   : > { %v1487_v7 = vpop.f32.mrb[1].mxu1 }
 0x1b2   : > { %v5898_v40 = vpop.f32.mrb[2].mxu1 }
 0x1b3   : > { %v1497_v56 = vpop.f32.mrb[3].mxu1 }
 0x1ba   : > { %v5901_v14 = vpop.f32.mrb[4].mxu1 }
 0x1bb   : > { %v1507_v63 = vpop.f32.mrb[5].mxu1 }
 0x1c2   : > { %v5904_v5 = vpop.f32.mrb[6].mxu1 }
 0x1c3   : > { %v1517_v17 = vpop.f32.mrb[7].mxu1 }
 0x1ca   : > { %v7526_v20 = vpop.f32.mrb[8].mxu1 }
 0x1cb   : > { %v7528_v3 = vpop.f32.mrb[9].mxu1 }
 0x1da   : > { %v7530_v30 = vpop.f32.mrb[10].mxu1 }
 0x1db   : > { %v7532_v45 = vpop.f32.mrb[11].mxu1 }
 0x1f2   : > { %v5851_v46 = vpop.f32.mrb[16].mxu0 }
 0x1f3   : > { %v6561_v58 = vadd.f32 %v5895_v6, %v5851_v46  ;;  %v1271_v8 = vpop.f32.mrb[17].mxu0 }
 0x1f4   : > { %v6562_v11 = vadd.f32 %v1487_v7, %v1271_v8 }
 0x1f5   : > { %v1598_v23 = vadd.f32 %v6561_v58, %v7537_v57  ;;  %v5191_v58 = vld [vmem:[%s10567_s3 + $0xa8] sm:$0xff] }
 0x1f6   : > { %v1597_v27 = vadd.f32 %v6562_v11, %v7537_v57  ;;  %v5854_v33 = vpop.f32.mrb[18].mxu0 }
 0x1f7   : > { %v7541_v36 = vmax.f32 %v1598_v23, 0.0  ;;  %v6563_v4 = vadd.f32 %v5898_v40, %v5854_v33  ;;  %v1281_v47 = vpop.f32.mrb[19].mxu0  ;;  %v6099_v40 = vpack.c.bf16 %v5187_v42, %v5186_v54 }
 0x1f8   : > { %v7549_v52 = vmax.f32 %v1597_v27, 0.0  ;;  %v6564_v51 = vadd.f32 %v1497_v56, %v1281_v47 }
 0x1f9   : > { %v1600_v55 = vadd.f32 %v6563_v4, %v7537_v57  ;;  %v1659_v10 = vrot.slane %v7541_v36, 1  ;;  %v1715_v22 = vrot.slane %v7541_v36, 2  ;;  %6100 = vmatprep.subr.bf16.mxu1 %v6099_v40 }
 0x1fa   : > { %v1599_v9 = vadd.f32 %v6564_v51, %v7537_v57  ;;  %v5857_v0 = vpop.f32.mrb[20].mxu0  ;;  %v1645_v1 = vrot.slane %v7549_v52, 1  ;;  %v1701_v60 = vrot.slane %v7549_v52, 2  ;;  %6102 = vmatpush3.bf16.msra.mxu1 %v6099_v40 }
 0x1fb   : > { %v7555_v62 = vmax.f32 %v1600_v55, 0.0  ;;  %v6565_v61 = vadd.f32 %v5901_v14, %v5857_v0  ;;  %v1291_v59 = vpop.f32.mrb[21].mxu0 }
 0x1fc   : > { %v7559_v21 = vmax.f32 %v1599_v9, 0.0  ;;  %v6566_v19 = vadd.f32 %v1507_v63, %v1291_v59  ;;  %v1687_v13 = vsel %vm399_vm2, %v1659_v10, %v1645_v1  ;;  %v1673_v18 = vsel %vm399_vm2, %v1645_v1, %v1659_v10  ;;  %v5193_v9 = vld [vmem:[%s10567_s3 + $0xb8] sm:$0xff] }
 0x1fd   : > { %1811 = vrot.lane.b32.xlu1 %v1687_v13, %s6770_s14  ;;  %1809 = vrot.lane.b32.xlu0 %v1673_v18, %s6770_s14  ;;  %v1602_v16 = vadd.f32 %v6565_v61, %v7537_v57  ;;  %v1743_v25 = vsel %vm464_vm1, %v1715_v22, %v1701_v60  ;;  %v1729_v35 = vsel %vm464_vm1, %v1701_v60, %v1715_v22  ;;  %v1660_v38 = vrot.slane %v7555_v62, 1 }
 0x1fe   : > { %v5860_v32 = vpop.f32.mrb[22].mxu0  ;;  %v1601_v28 = vadd.f32 %v6566_v19, %v7537_v57  ;;  %v1646_v37 = vrot.slane %v7559_v21, 1  ;;  %v1702_v44 = vrot.slane %v7559_v21, 2  ;;  %v1716_v7 = vrot.slane %v7555_v62, 2 }
 0x1ff   : > { %v6567_v31 = vadd.f32 %v5904_v5, %v5860_v32  ;;  %v1301_v26 = vpop.f32.mrb[23].mxu0  ;;  %v7596_v39 = vmax.f32 %v1602_v16, 0.0 }
 0x200   : > { %v6568_v29 = vadd.f32 %v1517_v17, %v1301_v26  ;;  %v7600_v56 = vmax.f32 %v1601_v28, 0.0  ;;  %v1688_v63 = vsel %vm399_vm2, %v1660_v38, %v1646_v37  ;;  %v1674_v5 = vsel %vm399_vm2, %v1646_v37, %v1660_v38  ;;  %v5188_v17 = vld [vmem:[%s10567_s3 + $0x90] sm:$0xff] }
 0x201   : > { %v7588_v49 = vadd.f32 %v6567_v31, %v7537_v57  ;;  %1923 = vrot.lane.b32.xlu1 %v1743_v25, %s6771_s19  ;;  %1921 = vrot.lane.b32.xlu0 %v1729_v35, %s6771_s19  ;;  %v1744_v33 = vsel %vm464_vm1, %v1716_v7, %v1702_v44  ;;  %v1730_v4 = vsel %vm464_vm1, %v1702_v44, %v1716_v7  ;;  %v1661_v51 = vrot.slane %v7596_v39, 1 }
 0x202   : > { %v7593_v41 = vadd.f32 %v6568_v29, %v7537_v57  ;;  %v5863_v43 = vpop.f32.mrb[24].mxu0  ;;  %v1647_v53 = vrot.slane %v7600_v56, 1  ;;  %v1703_v61 = vrot.slane %v7600_v56, 2  ;;  %v1717_v59 = vrot.slane %v7596_v39, 2 }
 0x203   : > { %v6569_v24 = vadd.f32 %v7526_v20, %v5863_v43  ;;  %v1311_v6 = vpop.f32.mrb[25].mxu0  ;;  %v5189_v20 = vld [vmem:[%s10567_s3 + $0x98] sm:$0xff] }
 0x204   : > { %v6570_v14 = vadd.f32 %v7528_v3, %v1311_v6  ;;  %v5190_v3 = vld [vmem:[%s10567_s3 + $0xa0] sm:$0xff]  ;;  %v6103_v47 = vpack.c.bf16 %v5189_v20, %v5188_v17  ;;  %v1689_v22 = vsel %vm399_vm2, %v1661_v51, %v1647_v53  ;;  %v1675_v19 = vsel %vm399_vm2, %v1647_v53, %v1661_v51 }
 0x205   : > { %v7614_v46 = vadd.f32 %v6569_v24, %v7537_v57  ;;  %1815 = vrot.lane.b32.xlu1 %v1688_v63, %s6770_s14  ;;  %1813 = vrot.lane.b32.xlu0 %v1674_v5, %s6770_s14  ;;  %v6107_v48 = vpack.c.bf16 %v5191_v58, %v5190_v3  ;;  %v1745_v32 = vsel %vm464_vm1, %v1717_v59, %v1703_v61 }
 0x206   : > { %v7625_v8 = vadd.f32 %v6570_v14, %v7537_v57  ;;  %v5866_v11 = vpop.f32.mrb[26].mxu0  ;;  %6104 = vmatprep.subr.bf16.mxu1 %v6103_v47  ;;  %v1731_v31 = vsel %vm464_vm1, %v1703_v61, %v1717_v59 }
 0x207   : > { %v6571_v23 = vadd.f32 %v7530_v30, %v5866_v11  ;;  %v1321_v27 = vpop.f32.mrb[27].mxu0  ;;  %6106 = vmatpush3.bf16.msra.mxu1 %v6103_v47 }
 0x208   : > { %v6572_v50 = vadd.f32 %v7532_v45, %v1321_v27  ;;  %v5192_v45 = vld [vmem:[%s10567_s3 + $0xb0] sm:$0xff]  ;;  %6108 = vmatprep.subr.bf16.mxu1 %v6107_v48 }
 0x209   : > { %v7636_v55 = vadd.f32 %v6571_v23, %v7537_v57  ;;  %1927 = vrot.lane.b32.xlu1 %v1744_v33, %s6771_s19  ;;  %1925 = vrot.lane.b32.xlu0 %v1730_v4, %s6771_s19  ;;  %v6111_v13 = vpack.c.bf16 %v5193_v9, %v5192_v45 }
 0x20a   : > { %v7641_v30 = vadd.f32 %v6572_v50, %v7537_v57  ;;  %v5871_v10 = vpop.f32.mrb[0].mxu0 }
 0x20b   : > { %v7650_v0 = vadd.f32 %v5871_v10, %v7537_v57  ;;  %v1407_v1 = vpop.f32.mrb[1].mxu0  ;;  %6110 = vmatpush3.bf16.msra.mxu1 %v6107_v48 }
 0x20c   : > { %v7655_v60 = vadd.f32 %v7537_v57, %v1407_v1  ;;  %6112 = vmatprep.subr.bf16.mxu1 %v6111_v13 }
 0x20d   : > { %1819 = vrot.lane.b32.xlu1 %v1689_v22, %s6770_s14  ;;  %1817 = vrot.lane.b32.xlu0 %v1675_v19, %s6770_s14 }
 0x20e   : > { %v5874_v18 = vpop.f32.mrb[2].mxu0 }
 0x20f   : > { %v1584_v12 = vadd.f32 %v5874_v18, %v7537_v57  ;;  %v1417_v15 = vpop.f32.mrb[3].mxu0  ;;  %6114 = vmatpush3.bf16.msra.mxu1 %v6111_v13 }
 0x210   : > { %v1583_v16 = vadd.f32 %v7537_v57, %v1417_v15 }
 0x211   : > { %v7669_v26 = vmax.f32 %v1584_v12, 0.0  ;;  %1931 = vrot.lane.b32.xlu1 %v1745_v32, %s6771_s19  ;;  %1929 = vrot.lane.b32.xlu0 %v1731_v31, %s6771_s19 }
 0x212   : > { %v7673_v25 = vmax.f32 %v1583_v16, 0.0  ;;  %v5877_v35 = vpop.f32.mrb[4].mxu0 }
 0x213   : > { %v1652_v34 = vrot.slane %v7669_v26, 1  ;;  %v1586_v28 = vadd.f32 %v5877_v35, %v7537_v57  ;;  %v1427_v29 = vpop.f32.mrb[5].mxu0  ;;  %v1708_v54 = vrot.slane %v7669_v26, 2 }
 0x214   : > { %v1638_v37 = vrot.slane %v7673_v25, 1  ;;  %v1585_v38 = vadd.f32 %v7537_v57, %v1427_v29  ;;  %v1694_v42 = vrot.slane %v7673_v25, 2  ;;  %v2031_v29 = vld [vmem:[%s10567_s3] sm:$0xff] }
 0x215   : > { %v7681_v43 = vmax.f32 %v1586_v28, 0.0 }
 0x216   : > { %v7683_v44 = vmax.f32 %v1585_v38, 0.0  ;;  %v5880_v24 = vpop.f32.mrb[6].mxu0  ;;  %v1680_v6 = vsel %vm399_vm2, %v1652_v34, %v1638_v37  ;;  %v1666_v7 = vsel %vm399_vm2, %v1638_v37, %v1652_v34  ;;  %v1736_v63 = vsel %vm464_vm1, %v1708_v54, %v1694_v42  ;;  %v2032_v37 = vld [vmem:[%s10567_s3 + $0x8] sm:$0xff] }
 0x217   : > { %1783 = vrot.lane.b32.xlu1 %v1680_v6, %s6770_s14  ;;  %1781 = vrot.lane.b32.xlu0 %v1666_v7, %s6770_s14  ;;  %v1437_v40 = vpop.f32.mrb[7].mxu0  ;;  %v1653_v14 = vrot.slane %v7681_v43, 1  ;;  %v1588_v17 = vadd.f32 %v5880_v24, %v7537_v57  ;;  %v1722_v58 = vsel %vm464_vm1, %v1694_v42, %v1708_v54  ;;  %v1709_v23 = vrot.slane %v7681_v43, 2 }
 0x218   : > { %v1639_v5 = vrot.slane %v7683_v44, 1  ;;  %v1587_v20 = vadd.f32 %v7537_v57, %v1437_v40  ;;  %v1695_v27 = vrot.slane %v7683_v44, 2  ;;  %v7745_v54 = vpack.c.bf16 %v2032_v37, %v2031_v29 }
 0x219   : > { %v7703_v33 = vmax.f32 %v1588_v17, 0.0  ;;  %v7822_v29 = vmax.f32 %v7593_v41, 0.0 }
 0x21a   : > { %v5883_v3 = vpop.f32.mrb[8].mxu0  ;;  %v7705_v4 = vmax.f32 %v1587_v20, 0.0  ;;  %v1681_v50 = vsel %vm399_vm2, %v1653_v14, %v1639_v5  ;;  %v1667_v53 = vsel %vm399_vm2, %v1639_v5, %v1653_v14  ;;  %v1737_v10 = vsel %vm464_vm1, %v1709_v23, %v1695_v27  ;;  %6116 = vmatprep.subr.bf16.mxu1 %v7745_v54 }
 0x21b   : > { %1895 = vrot.lane.b32.xlu1 %v1736_v63, %s6771_s19  ;;  %1893 = vrot.lane.b32.xlu0 %v1722_v58, %s6771_s19  ;;  %v1447_v11 = vpop.f32.mrb[9].mxu0  ;;  %v1590_v48 = vadd.f32 %v5883_v3, %v7537_v57  ;;  %v1654_v45 = vrot.slane %v7703_v33, 1  ;;  %v1723_v59 = vsel %vm464_vm1, %v1695_v27, %v1709_v23  ;;  %v1710_v18 = vrot.slane %v7703_v33, 2 }
 0x21c   : > { %v1640_v9 = vrot.slane %v7705_v4, 1  ;;  %v1589_v1 = vadd.f32 %v7537_v57, %v1447_v11  ;;  %v1696_v12 = vrot.slane %v7705_v4, 2 }
 0x21d   : > { %v7727_v15 = vmax.f32 %v1590_v48, 0.0 }
 0x21e   : > { %v5886_v47 = vpop.f32.mrb[10].mxu0  ;;  %v7729_v16 = vmax.f32 %v1589_v1, 0.0  ;;  %v1682_v31 = vsel %vm399_vm2, %v1654_v45, %v1640_v9  ;;  %v1668_v35 = vsel %vm399_vm2, %v1640_v9, %v1654_v45  ;;  %v1738_v24 = vsel %vm464_vm1, %v1710_v18, %v1696_v12 }
 0x21f   : > { %1787 = vrot.lane.b32.xlu1 %v1681_v50, %s6770_s14  ;;  %1785 = vrot.lane.b32.xlu0 %v1667_v53, %s6770_s14  ;;  %v1457_v51 = vpop.f32.mrb[11].mxu0  ;;  %v1655_v42 = vrot.slane %v7727_v15, 1  ;;  %v1592_v7 = vadd.f32 %v5886_v47, %v7537_v57  ;;  %v1724_v14 = vsel %vm464_vm1, %v1696_v12, %v1710_v18  ;;  %v1711_v63 = vrot.slane %v7727_v15, 2 }
 0x220   : > { %v1641_v6 = vrot.slane %v7729_v16, 1  ;;  %v1591_v40 = vadd.f32 %v7537_v57, %v1457_v51  ;;  %v1697_v5 = vrot.slane %v7729_v16, 2 }
 0x221   : > { %v7760_v17 = vmax.f32 %v1592_v7, 0.0 }
 0x222   : > { %v5889_v61 = vpop.f32.mrb[12].mxu0  ;;  %v7762_v20 = vmax.f32 %v1591_v40, 0.0  ;;  %v1669_v3 = vsel %vm399_vm2, %v1641_v6, %v1655_v42  ;;  %v1739_v23 = vsel %vm464_vm1, %v1711_v63, %v1697_v5  ;;  %v1725_v27 = vsel %vm464_vm1, %v1697_v5, %v1711_v63 }
 0x223   : > { %v1594_v22 = vadd.f32 %v5889_v61, %v7537_v57  ;;  %1899 = vrot.lane.b32.xlu1 %v1737_v10, %s6771_s19  ;;  %1897 = vrot.lane.b32.xlu0 %v1723_v59, %s6771_s19  ;;  %v1467_v19 = vpop.f32.mrb[13].mxu0  ;;  %v1656_v58 = vrot.slane %v7760_v17, 1  ;;  %v1712_v47 = vrot.slane %v7760_v17, 2  ;;  %v7843_v63 = vmax.f32 %v7614_v46, 0.0 }
 0x224   : > { %v1593_v13 = vadd.f32 %v7537_v57, %v1467_v19  ;;  %v1642_v11 = vrot.slane %v7762_v20, 1  ;;  %v1698_v50 = vrot.slane %v7762_v20, 2  ;;  %v7846_v5 = vmax.f32 %v7625_v8, 0.0 }
 0x225   : > { %v7780_v53 = vmax.f32 %v1594_v22, 0.0 }
 0x226   : > { %v5892_v32 = vpop.f32.mrb[14].mxu0  ;;  %v7782_v51 = vmax.f32 %v1593_v13, 0.0  ;;  %v1684_v48 = vsel %vm399_vm2, %v1656_v58, %v1642_v11  ;;  %v1670_v10 = vsel %vm399_vm2, %v1642_v11, %v1656_v58  ;;  %v1740_v1 = vsel %vm464_vm1, %v1712_v47, %v1698_v50 }
 0x227   : > { %v1596_v34 = vadd.f32 %v5892_v32, %v7537_v57  ;;  %1791 = vrot.lane.b32.xlu1 %v1682_v31, %s6770_s14  ;;  %1789 = vrot.lane.b32.xlu0 %v1668_v35, %s6770_s14  ;;  %v1477_v28 = vpop.f32.mrb[15].mxu0  ;;  %v1657_v45 = vrot.slane %v7780_v53, 1  ;;  %v1726_v61 = vsel %vm464_vm1, %v1698_v50, %v1712_v47  ;;  %v1713_v59 = vrot.slane %v7780_v53, 2 }
 0x228   : > { %v1595_v38 = vadd.f32 %v7537_v57, %v1477_v28  ;;  %v1683_v57 = vsel %vm399_vm2, %v1655_v42, %v1641_v6  ;;  %v1643_v9 = vrot.slane %v7782_v51, 1  ;;  %v1699_v22 = vrot.slane %v7782_v51, 2 }
 0x229   : > { %v7800_v19 = vmax.f32 %v1596_v34, 0.0  ;;  %v7819_v28 = vmax.f32 %v7588_v49, 0.0  ;;  %v1648_v6 = vrot.slane %v7822_v29, 1  ;;  %v1663_v58 = vrot.slane %v7843_v63, 1 }
 0x22a   : > { %v7802_v13 = vmax.f32 %v1595_v38, 0.0  ;;  %v1685_v18 = vsel %vm399_vm2, %v1657_v45, %v1643_v9  ;;  %v1671_v12 = vsel %vm399_vm2, %v1643_v9, %v1657_v45  ;;  %v1741_v35 = vsel %vm464_vm1, %v1713_v59, %v1699_v22 }
 0x22b   : > { %1903 = vrot.lane.b32.xlu1 %v1738_v24, %s6771_s19  ;;  %1901 = vrot.lane.b32.xlu0 %v1724_v14, %s6771_s19  ;;  %v1658_v32 = vrot.slane %v7800_v19, 1  ;;  %v1727_v34 = vsel %vm464_vm1, %v1699_v22, %v1713_v59  ;;  %v1714_v37 = vrot.slane %v7800_v19, 2  ;;  %v1662_v49 = vrot.slane %v7819_v28, 1 }
 0x22c   : > { %v1644_v31 = vrot.slane %v7802_v13, 1  ;;  %v1700_v38 = vrot.slane %v7802_v13, 2  ;;  %v1718_v40 = vrot.slane %v7819_v28, 2  ;;  %v1704_v14 = vrot.slane %v7822_v29, 2 }
 0x22d   : > { %v1649_v11 = vrot.slane %v7846_v5, 1  ;;  %v7865_v47 = vmax.f32 %v7650_v0, 0.0  ;;  %v7868_v50 = vmax.f32 %v7655_v60, 0.0 }
 0x22e   : > { %v1686_v42 = vsel %vm399_vm2, %v1658_v32, %v1644_v31  ;;  %v1672_v24 = vsel %vm399_vm2, %v1644_v31, %v1658_v32  ;;  %v1742_v41 = vsel %vm464_vm1, %v1714_v37, %v1700_v38  ;;  %v1728_v7 = vsel %vm464_vm1, %v1700_v38, %v1714_v37 }
 0x22f   : > { %1795 = vrot.lane.b32.xlu1 %v1683_v57, %s6770_s14  ;;  %1793 = vrot.lane.b32.xlu0 %v1669_v3, %s6770_s14  ;;  %v1690_v57 = vsel %vm399_vm2, %v1662_v49, %v1648_v6  ;;  %v1676_v3 = vsel %vm399_vm2, %v1648_v6, %v1662_v49  ;;  %v1746_v46 = vsel %vm464_vm1, %v1718_v40, %v1704_v14  ;;  %v1651_v45 = vrot.slane %v7865_v47, 1 }
 0x230   : > { %v1732_v8 = vsel %vm464_vm1, %v1704_v14, %v1718_v40  ;;  %v1637_v9 = vrot.slane %v7868_v50, 1  ;;  %v1707_v59 = vrot.slane %v7865_v47, 2  ;;  %v1693_v22 = vrot.slane %v7868_v50, 2 }
 0x232   : > { %v1721_v31 = vsel %vm464_vm1, %v1693_v22, %v1707_v59 }
 0x233   : > { %1907 = vrot.lane.b32.xlu1 %v1739_v23, %s6771_s19  ;;  %1905 = vrot.lane.b32.xlu0 %v1725_v27, %s6771_s19  ;;  %v1719_v23 = vrot.slane %v7843_v63, 2  ;;  %v1705_v27 = vrot.slane %v7846_v5, 2 }
 0x235   : > { %v1747_v0 = vsel %vm464_vm1, %v1719_v23, %v1705_v27  ;;  %v1733_v60 = vsel %vm464_vm1, %v1705_v27, %v1719_v23 }
 0x237   : > { %1799 = vrot.lane.b32.xlu1 %v1684_v48, %s6770_s14  ;;  %1797 = vrot.lane.b32.xlu0 %v1670_v10, %s6770_s14  ;;  %v1691_v48 = vsel %vm399_vm2, %v1663_v58, %v1649_v11  ;;  %v1677_v10 = vsel %vm399_vm2, %v1649_v11, %v1663_v58 }
 0x23b   : > { %1911 = vrot.lane.b32.xlu1 %v1740_v1, %s6771_s19  ;;  %1909 = vrot.lane.b32.xlu0 %v1726_v61, %s6771_s19  ;;  %v7885_v1 = vmax.f32 %v7636_v55, 0.0  ;;  %v7888_v61 = vmax.f32 %v7641_v30, 0.0  ;;  %v1735_v30 = vsel %vm464_vm1, %v1707_v59, %v1693_v22 }
 0x23d   : > { %v1664_v55 = vrot.slane %v7885_v1, 1  ;;  %v1650_v32 = vrot.slane %v7888_v61, 1 }
 0x23f   : > { %1803 = vrot.lane.b32.xlu1 %v1685_v18, %s6770_s14  ;;  %1801 = vrot.lane.b32.xlu0 %v1671_v12, %s6770_s14  ;;  %v1679_v18 = vsel %vm399_vm2, %v1651_v45, %v1637_v9  ;;  %v1665_v12 = vsel %vm399_vm2, %v1637_v9, %v1651_v45  ;;  %v1692_v37 = vsel %vm399_vm2, %v1664_v55, %v1650_v32 }
 0x240   : > { %v1678_v38 = vsel %vm399_vm2, %v1650_v32, %v1664_v55 }
 0x243   : > { %1915 = vrot.lane.b32.xlu1 %v1741_v35, %s6771_s19  ;;  %1913 = vrot.lane.b32.xlu0 %v1727_v34, %s6771_s19  ;;  %v1720_v35 = vrot.slane %v7885_v1, 2  ;;  %v1706_v34 = vrot.slane %v7888_v61, 2 }
 0x247   : > { %1807 = vrot.lane.b32.xlu1 %v1686_v42, %s6770_s14  ;;  %1805 = vrot.lane.b32.xlu0 %v1672_v24, %s6770_s14  ;;  %v1748_v42 = vsel %vm464_vm1, %v1720_v35, %v1706_v34  ;;  %v1734_v24 = vsel %vm464_vm1, %v1706_v34, %v1720_v35  ;;  %v2035_v34 = vld [vmem:[%s10567_s3 + $0x20] sm:$0xff] }
 0x24b   : > { %1919 = vrot.lane.b32.xlu1 %v1742_v41, %s6771_s19  ;;  %1917 = vrot.lane.b32.xlu0 %v1728_v7, %s6771_s19 }
 0x24f   : > { %1823 = vrot.lane.b32.xlu1 %v1690_v57, %s6770_s14  ;;  %1821 = vrot.lane.b32.xlu0 %v1676_v3, %s6770_s14 }
 0x253   : > { %1935 = vrot.lane.b32.xlu1 %v1746_v46, %s6771_s19  ;;  %1933 = vrot.lane.b32.xlu0 %v1732_v8, %s6771_s19 }
 0x257   : > { %1827 = vrot.lane.b32.xlu1 %v1691_v48, %s6770_s14  ;;  %1825 = vrot.lane.b32.xlu0 %v1677_v10, %s6770_s14 }
 0x25b   : > { %1939 = vrot.lane.b32.xlu1 %v1747_v0, %s6771_s19  ;;  %1937 = vrot.lane.b32.xlu0 %v1733_v60, %s6771_s19 }
 0x25f   : > { %1779 = vrot.lane.b32.xlu1 %v1679_v18, %s6770_s14  ;;  %1777 = vrot.lane.b32.xlu0 %v1665_v12, %s6770_s14  ;;  %v2033_v18 = vld [vmem:[%s10567_s3 + $0x10] sm:$0xff] }
 0x263   : > { %1891 = vrot.lane.b32.xlu1 %v1735_v30, %s6771_s19  ;;  %1889 = vrot.lane.b32.xlu0 %v1721_v31, %s6771_s19 }
 0x267   : > { %1831 = vrot.lane.b32.xlu1 %v1692_v37, %s6770_s14  ;;  %1829 = vrot.lane.b32.xlu0 %v1678_v38, %s6770_s14 }
 0x26b   : > { %1943 = vrot.lane.b32.xlu1 %v1748_v42, %s6771_s19  ;;  %1941 = vrot.lane.b32.xlu0 %v1734_v24, %s6771_s19  ;;  %v2037_v42 = vld [vmem:[%s10567_s3 + $0x30] sm:$0xff]  ;;  %v2038_v24 = vld [vmem:[%s10567_s3 + $0x38] sm:$0xff] }
 0x26f   : > { %v1812_v49 = vpop.permute.xlu1 %1811  ;;  %v1810_v6 = vpop.permute.xlu0 %1809 }
 0x270   : > { %v1991_v41 = vsel %vm1973_vm6, %v7541_v36, %v1812_v49  ;;  %v1990_v7 = vsel %vm1973_vm6, %v7549_v52, %v1810_v6 }
 0x273   : > { %v1924_v40 = vpop.permute.xlu1 %1923  ;;  %v1922_v14 = vpop.permute.xlu0 %1921 }
 0x274   : > { %v7925_v57 = vsel %vm2002_vm7, %v1991_v41, %v1924_v40  ;;  %v7928_v3 = vsel %vm2002_vm7, %v1990_v7, %v1922_v14  ;;  %v6127_v14 = vpack.c.bf16 %v2038_v24, %v2037_v42 }
 0x277   : > { %v1816_v58 = vpop.permute.xlu1 %1815  ;;  %v1814_v11 = vpop.permute.xlu0 %1813 }
 0x278   : > { %v1993_v46 = vsel %vm1973_vm6, %v7555_v62, %v1816_v58  ;;  %v1992_v8 = vsel %vm1973_vm6, %v7559_v21, %v1814_v11 }
 0x27b   : > { %v1928_v36 = vpop.permute.xlu1 %1927  ;;  %v1926_v23 = vpop.permute.xlu0 %1925 }
 0x27c   : > { %v7935_v52 = vsel %vm2002_vm7, %v1993_v46, %v1928_v36  ;;  %v7938_v27 = vsel %vm2002_vm7, %v1992_v8, %v1926_v23  ;;  %v2041_v8 = vld [vmem:[%s10567_s3 + $0x50] sm:$0xff]  ;;  %v2042_v36 = vld [vmem:[%s10567_s3 + $0x58] sm:$0xff] }
 0x27f   : > { %v1820_v48 = vpop.permute.xlu1 %1819  ;;  %v1818_v10 = vpop.permute.xlu0 %1817 }
 0x280   : > { %v1995_v45 = vsel %vm1973_vm6, %v7596_v39, %v1820_v48  ;;  %v1994_v9 = vsel %vm1973_vm6, %v7600_v56, %v1818_v10  ;;  %v2034_v39 = vld [vmem:[%s10567_s3 + $0x18] sm:$0xff] }
 0x281   : > { %v6119_v35 = vpack.c.bf16 %v2034_v39, %v2033_v18 }
 0x283   : > { %v1932_v62 = vpop.permute.xlu1 %1931  ;;  %v1930_v0 = vpop.permute.xlu0 %1929 }
 0x284   : > { %v7945_v21 = vsel %vm2002_vm7, %v1995_v45, %v1932_v62  ;;  %v7948_v60 = vsel %vm2002_vm7, %v1994_v9, %v1930_v0  ;;  %v6135_v0 = vpack.c.bf16 %v2042_v36, %v2041_v8 }
 0x289   : > { %v1784_v59 = vpop.permute.xlu1 %1783  ;;  %v1782_v22 = vpop.permute.xlu0 %1781 }
 0x28a   : > { %v1977_v56 = vsel %vm1973_vm6, %v7669_v26, %v1784_v59  ;;  %v1976_v12 = vsel %vm1973_vm6, %v7673_v25, %v1782_v22  ;;  %v2036_v26 = vld [vmem:[%s10567_s3 + $0x28] sm:$0xff] }
 0x28b   : > { %v6123_v38 = vpack.c.bf16 %v2036_v26, %v2035_v34 }
 0x28d   : > { %v1896_v55 = vpop.permute.xlu1 %1895  ;;  %v1894_v32 = vpop.permute.xlu0 %1893 }
 0x28e   : > { %v7961_v30 = vsel %vm2002_vm7, %v1977_v56, %v1896_v55  ;;  %v7964_v31 = vsel %vm2002_vm7, %v1976_v12, %v1894_v32 }
 0x28f   : > { %5935 = vmatprep.mubr.msk.f32.mxu1 %vm2056_vm8, %v7964_v31 }
 0x290   : > { %5936 = vmatmul.mubr.msk.f32.vlgmr.msra.gmra.mrb[12].mxu1 %vm2056_vm8, %v7961_v30 }
 0x291   : > { %v1788_v25 = vpop.permute.xlu1 %1787  ;;  %v1786_v37 = vpop.permute.xlu0 %1785  ;;  %6118 = vmatpush3.bf16.msra.mxu1 %v7745_v54 }
 0x292   : > { %6120 = vmatprep.subr.bf16.mxu1 %v6119_v35  ;;  %v1979_v49 = vsel %vm1973_vm6, %v7681_v43, %v1788_v25  ;;  %v1978_v6 = vsel %vm1973_vm6, %v7683_v44, %v1786_v37  ;;  %v2039_v43 = vld [vmem:[%s10567_s3 + $0x40] sm:$0xff]  ;;  %v2040_v44 = vld [vmem:[%s10567_s3 + $0x48] sm:$0xff] }
 0x293   : > { %v6131_v46 = vpack.c.bf16 %v2040_v44, %v2039_v43 }
 0x295   : > { %v1900_v41 = vpop.permute.xlu1 %1899  ;;  %v1898_v7 = vpop.permute.xlu0 %1897  ;;  %6122 = vmatpush3.bf16.msra.mxu1 %v6119_v35 }
 0x296   : > { %v7988_v54 = vsel %vm2002_vm7, %v1979_v49, %v1900_v41  ;;  %v7991_v40 = vsel %vm2002_vm7, %v1978_v6, %v1898_v7  ;;  %6124 = vmatprep.subr.bf16.mxu1 %v6123_v38 }
 0x297   : > { %5938 = vmatprep.mubr.msk.f32.mxu1 %vm2056_vm8, %v7991_v40 }
 0x298   : > { %5939 = vmatmul.mubr.msk.f32.gmra.mrb[14].mxu1 %vm2056_vm8, %v7988_v54 }
 0x299   : > { %v1792_v58 = vpop.permute.xlu1 %1791  ;;  %v1790_v11 = vpop.permute.xlu0 %1789  ;;  %6126 = vmatpush3.bf16.msra.mxu1 %v6123_v38 }
 0x29a   : > { %6128 = vmatprep.subr.bf16.mxu1 %v6127_v14  ;;  %v1981_v23 = vsel %vm1973_vm6, %v7703_v33, %v1792_v58  ;;  %v1980_v48 = vsel %vm1973_vm6, %v7705_v4, %v1790_v11  ;;  %v5242_v33 = vld [vmem:[%s10567_s3 + $0xc0] sm:$0xff]  ;;  %v5243_v4 = vld [vmem:[%s10567_s3 + $0xc8] sm:$0xff] }
 0x29b   : > { %v8029_v18 = vpack.c.bf16 %v5243_v4, %v5242_v33 }
 0x29d   : > { %v1904_v10 = vpop.permute.xlu1 %1903  ;;  %v1902_v45 = vpop.permute.xlu0 %1901  ;;  %6130 = vmatpush3.bf16.msra.mxu1 %v6127_v14 }
 0x29e   : > { %v8014_v9 = vsel %vm2002_vm7, %v1981_v23, %v1904_v10  ;;  %v8017_v62 = vsel %vm2002_vm7, %v1980_v48, %v1902_v45  ;;  %6132 = vmatprep.subr.bf16.mxu1 %v6131_v46 }
 0x29f   : > { %5941 = vmatprep.mubr.msk.f32.mxu1 %vm2056_vm8, %v8017_v62 }
 0x2a0   : > { %5942 = vmatmul.mubr.msk.f32.gmra.mrb[16].mxu1 %vm2056_vm8, %v8014_v9 }
 0x2a1   : > { %v1796_v59 = vpop.permute.xlu1 %1795  ;;  %v1794_v22 = vpop.permute.xlu0 %1793  ;;  %6134 = vmatpush3.bf16.msra.mxu1 %v6131_v46 }
 0x2a2   : > { %6136 = vmatprep.subr.bf16.mxu1 %v6135_v0  ;;  %v1983_v39 = vsel %vm1973_vm6, %v7727_v15, %v1796_v59  ;;  %v1982_v56 = vsel %vm1973_vm6, %v7729_v16, %v1794_v22 }
 0x2a5   : > { %v1908_v12 = vpop.permute.xlu1 %1907  ;;  %v1906_v55 = vpop.permute.xlu0 %1905  ;;  %6138 = vmatpush3.bf16.msra.mxu1 %v6135_v0 }
 0x2a6   : > { %v8036_v32 = vsel %vm2002_vm7, %v1983_v39, %v1908_v12  ;;  %v8039_v35 = vsel %vm2002_vm7, %v1982_v56, %v1906_v55  ;;  %6140 = vmatprep.subr.bf16.mxu1 %v8029_v18 }
 0x2a7   : > { %5944 = vmatprep.mubr.msk.f32.mxu1 %vm2056_vm8, %v8039_v35 }
 0x2a8   : > { %5945 = vmatmul.mubr.msk.f32.gmra.mrb[18].mxu1 %vm2056_vm8, %v8036_v32 }
 0x2a9   : > { %v1800_v15 = vpop.permute.xlu1 %1799  ;;  %v1798_v34 = vpop.permute.xlu0 %1797 }
 0x2aa   : > { %v1985_v16 = vsel %vm1973_vm6, %v7760_v17, %v1800_v15  ;;  %v1984_v26 = vsel %vm1973_vm6, %v7762_v20, %v1798_v34  ;;  %v5245_v15 = vld [vmem:[%s10567_s3 + $0xd8] sm:$0xff] }
 0x2ad   : > { %v1912_v25 = vpop.permute.xlu1 %1911  ;;  %v1910_v37 = vpop.permute.xlu0 %1909 }
 0x2ae   : > { %v8051_v38 = vsel %vm2002_vm7, %v1985_v16, %v1912_v25  ;;  %v8054_v42 = vsel %vm2002_vm7, %v1984_v26, %v1910_v37 }
 0x2af   : > { %5947 = vmatprep.mubr.msk.f32.mxu1 %vm2056_vm8, %v8054_v42 }
 0x2b0   : > { %5948 = vmatmul.mubr.msk.f32.gmra.mrb[20].mxu1 %vm2056_vm8, %v8051_v38 }
 0x2b1   : > { %v1804_v24 = vpop.permute.xlu1 %1803  ;;  %v1802_v49 = vpop.permute.xlu0 %1801 }
 0x2b2   : > { %v1987_v17 = vsel %vm1973_vm6, %v7780_v53, %v1804_v24  ;;  %v1986_v20 = vsel %vm1973_vm6, %v7782_v51, %v1802_v49  ;;  %v5246_v49 = vld [vmem:[%s10567_s3 + $0xe0] sm:$0xff] }
 0x2b5   : > { %v1916_v6 = vpop.permute.xlu1 %1915  ;;  %v1914_v41 = vpop.permute.xlu0 %1913 }
 0x2b6   : > { %v8065_v7 = vsel %vm2002_vm7, %v1987_v17, %v1916_v6  ;;  %v8068_v14 = vsel %vm2002_vm7, %v1986_v20, %v1914_v41  ;;  %v5248_v17 = vld [vmem:[%s10567_s3 + $0xf0] sm:$0xff]  ;;  %v5249_v20 = vld [vmem:[%s10567_s3 + $0xf8] sm:$0xff]  ;;  %v5251_v6 = vld [vmem:[%s10567_s3 + $0x108] sm:$0xff] }
 0x2b7   : > { %5950 = vmatprep.mubr.msk.f32.mxu1 %vm2056_vm8, %v8068_v14  ;;  %v5252_v41 = vld [vmem:[%s10567_s3 + $0x110] sm:$0xff] }
 0x2b8   : > { %5951 = vmatmul.mubr.msk.f32.gmra.mrb[22].mxu1 %vm2056_vm8, %v8065_v7 }
 0x2b9   : > { %v1808_v43 = vpop.permute.xlu1 %1807  ;;  %v1806_v44 = vpop.permute.xlu0 %1805 }
 0x2ba   : > { %v1989_v53 = vsel %vm1973_vm6, %v7800_v19, %v1808_v43  ;;  %v1988_v51 = vsel %vm1973_vm6, %v7802_v13, %v1806_v44  ;;  %v5253_v43 = vld [vmem:[%s10567_s3 + $0x118] sm:$0xff] }
 0x2bb   : > { %v6159_v44 = vpack.c.bf16 %v5253_v43, %v5252_v41 }
 0x2bd   : > { %v1920_v58 = vpop.permute.xlu1 %1919  ;;  %v1918_v11 = vpop.permute.xlu0 %1917 }
 0x2be   : > { %v8079_v46 = vsel %vm2002_vm7, %v1989_v53, %v1920_v58  ;;  %v8082_v8 = vsel %vm2002_vm7, %v1988_v51, %v1918_v11  ;;  %v5285_v53 = vld [vmem:[%s10569_s5 + $0xf0] sm:$0xff]  ;;  %v5286_v51 = vld [vmem:[%s10569_s5 + $0xf8] sm:$0xff]  ;;  %v5287_v11 = vld [vmem:[%s10569_s5 + $0x100] sm:$0xff] }
 0x2bf   : > { %5953 = vmatprep.mubr.msk.f32.mxu1 %vm2056_vm8, %v8082_v8  ;;  %v6173_v58 = vpack.c.bf16 %v5286_v51, %v5285_v53 }
 0x2c0   : > { %5954 = vmatmul.mubr.msk.f32.gmra.mrb[24].mxu1 %vm2056_vm8, %v8079_v46 }
 0x2c1   : > { %v1824_v36 = vpop.permute.xlu1 %1823  ;;  %5956 = vmatprep.mubr.msk.f32.mxu1 %vm2056_vm8, %v7928_v3  ;;  %v1822_v19 = vpop.permute.xlu0 %1821 }
 0x2c2   : > { %v1996_v45 = vsel %vm1973_vm6, %v7822_v29, %v1822_v19  ;;  %v1997_v59 = vsel %vm1973_vm6, %v7819_v28, %v1824_v36  ;;  %v5289_v36 = vld [vmem:[%s10569_s5 + $0x110] sm:$0xff]  ;;  %v5290_v19 = vld [vmem:[%s10569_s5 + $0x118] sm:$0xff] }
 0x2c4   : > { %5957 = vmatmul.mubr.msk.f32.gmra.mrb[26].mxu1 %vm2056_vm8, %v7925_v57 }
 0x2c5   : > { %v1936_v13 = vpop.permute.xlu1 %1935  ;;  %5959 = vmatprep.mubr.msk.f32.mxu1 %vm2056_vm8, %v7938_v27  ;;  %v1934_v23 = vpop.permute.xlu0 %1933 }
 0x2c6   : > { %v8101_v0 = vsel %vm2002_vm7, %v1996_v45, %v1934_v23  ;;  %v8110_v22 = vsel %vm2002_vm7, %v1997_v59, %v1936_v13  ;;  %v6179_v13 = vpack.c.bf16 %v5290_v19, %v5289_v36  ;;  %v5291_v23 = vld [vmem:[%s10569_s5 + $0x120] sm:$0xff]  ;;  %v5293_v45 = vld [vmem:[%s10569_s5 + $0x130] sm:$0xff]  ;;  %v5296_v59 = vld [vmem:[%s10569_s5 + $0x148] sm:$0xff] }
 0x2c8   : > { %5960 = vmatmul.mubr.msk.f32.gmra.mrb[28].mxu1 %vm2056_vm8, %v7935_v52 }
 0x2c9   : > { %v1828_v48 = vpop.permute.xlu1 %1827  ;;  %5962 = vmatprep.mubr.msk.f32.mxu1 %vm2056_vm8, %v7948_v60  ;;  %v1826_v10 = vpop.permute.xlu0 %1825 }
 0x2ca   : > { %v1998_v29 = vsel %vm1973_vm6, %v7846_v5, %v1826_v10  ;;  %v1999_v28 = vsel %vm1973_vm6, %v7843_v63, %v1828_v48  ;;  %v5244_v5 = vld [vmem:[%s10567_s3 + $0xd0] sm:$0xff]  ;;  %v5292_v48 = vld [vmem:[%s10569_s5 + $0x128] sm:$0xff] }
 0x2cb   : > { %v6143_v24 = vpack.c.bf16 %v5245_v15, %v5244_v5  ;;  %v6182_v10 = vpack.c.bf16 %v5292_v48, %v5291_v23  ;;  %v5301_v5 = vld [vmem:[%s10569_s5 + $0x170] sm:$0xff]  ;;  %v5302_v15 = vld [vmem:[%s10569_s5 + $0x178] sm:$0xff] }
 0x2cc   : > { %5963 = vmatmul.mubr.msk.f32.gmra.mrb[30].mxu1 %vm2056_vm8, %v7945_v21 }
 0x2cd   : > { %v1940_v33 = vpop.permute.xlu1 %1939  ;;  %5965 = vmatprep.mubr.msk.f32.mxu1 %vm2056_vm8, %v8101_v0  ;;  %v1938_v4 = vpop.permute.xlu0 %1937 }
 0x2ce   : > { %v8115_v39 = vsel %vm2002_vm7, %v1998_v29, %v1938_v4  ;;  %v8124_v55 = vsel %vm2002_vm7, %v1999_v28, %v1940_v33  ;;  %v5295_v4 = vld [vmem:[%s10569_s5 + $0x140] sm:$0xff]  ;;  %v5297_v29 = vld [vmem:[%s10569_s5 + $0x150] sm:$0xff]  ;;  %v5300_v28 = vld [vmem:[%s10569_s5 + $0x168] sm:$0xff] }
 0x2d0   : > { %5966 = vmatmul.mubr.msk.f32.gmra.mrb[32].mxu1 %vm2056_vm8, %v8110_v22 }
 0x2d1   : > { %v1780_v56 = vpop.permute.xlu1 %1779  ;;  %5968 = vmatprep.mubr.msk.f32.mxu1 %vm2056_vm8, %v8115_v39  ;;  %v1778_v12 = vpop.permute.xlu0 %1777 }
 0x2d2   : > { %v1975_v34 = vsel %vm1973_vm6, %v7865_v47, %v1780_v56  ;;  %v1974_v63 = vsel %vm1973_vm6, %v7868_v50, %v1778_v12  ;;  %v5247_v47 = vld [vmem:[%s10567_s3 + $0xe8] sm:$0xff]  ;;  %v5299_v12 = vld [vmem:[%s10569_s5 + $0x160] sm:$0xff] }
 0x2d3   : > { %v6147_v50 = vpack.c.bf16 %v5247_v47, %v5246_v49 }
 0x2d4   : > { %5969 = vmatmul.mubr.msk.f32.gmra.mrb[34].mxu1 %vm2056_vm8, %v8124_v55 }
 0x2d5   : > { %v1892_v16 = vpop.permute.xlu1 %1891  ;;  %v1890_v26 = vpop.permute.xlu0 %1889 }
 0x2d6   : > { %v2004_v25 = vsel %vm2002_vm7, %v1975_v34, %v1892_v16  ;;  %v2003_v37 = vsel %vm2002_vm7, %v1974_v63, %v1890_v26  ;;  %v6197_v34 = vpack.c.bf16 %v5302_v15, %v5301_v5  ;;  %v8355_v26 = vld [vmem:[%s10568_s4] ss:$0 sm:$0xff] }
 0x2d7   : > { %5995 = vmatprep.mubr.msk.f32.mxu1 %vm2056_vm8, %v2003_v37 }
 0x2d8   : > { %5996 = vmatmul.mubr.msk.f32.vlgmr.msra.gmra.mrb[12].mxu1 %vm2056_vm8, %v2004_v25 }
 0x2d9   : > { %6142 = vmatpush3.bf16.msra.mxu1 %v8029_v18  ;;  %5998 = vmatprep.mubr.msk.f32.mxu1 %vm2056_vm8, %v7964_v31  ;;  %v6151_v18 = vpack.c.bf16 %v5249_v20, %v5248_v17  ;;  %v5250_v31 = vld [vmem:[%s10567_s3 + $0x100] sm:$0xff] }
 0x2da   : > { %6144 = vmatprep.subr.bf16.mxu1 %v6143_v24 }
 0x2dc   : > { %5999 = vmatmul.mubr.msk.f32.gmra.mrb[14].mxu1 %vm2056_vm8, %v7961_v30  ;;  %v6155_v30 = vpack.c.bf16 %v5251_v6, %v5250_v31 }
 0x2dd   : > { %6001 = vmatprep.mubr.msk.f32.mxu1 %vm2056_vm8, %v7991_v40  ;;  %6146 = vmatpush3.bf16.msra.mxu1 %v6143_v24 }
 0x2de   : > { %6148 = vmatprep.subr.bf16.mxu1 %v6147_v50 }
 0x2e0   : > { %6002 = vmatmul.mubr.msk.f32.gmra.mrb[16].mxu1 %vm2056_vm8, %v7988_v54 }
 0x2e1   : > { %6004 = vmatprep.mubr.msk.f32.mxu1 %vm2056_vm8, %v8017_v62  ;;  %6150 = vmatpush3.bf16.msra.mxu1 %v6147_v50 }
 0x2e2   : > { %6152 = vmatprep.subr.bf16.mxu1 %v6151_v18 }
 0x2e4   : > { %6005 = vmatmul.mubr.msk.f32.gmra.mrb[18].mxu1 %vm2056_vm8, %v8014_v9 }
 0x2e5   : > { %6007 = vmatprep.mubr.msk.f32.mxu1 %vm2056_vm8, %v8039_v35  ;;  %6154 = vmatpush3.bf16.msra.mxu1 %v6151_v18 }
 0x2e6   : > { %6156 = vmatprep.subr.bf16.mxu1 %v6155_v30 }
 0x2e8   : > { %6008 = vmatmul.mubr.msk.f32.gmra.mrb[20].mxu1 %vm2056_vm8, %v8036_v32 }
 0x2e9   : > { %6010 = vmatprep.mubr.msk.f32.mxu1 %vm2056_vm8, %v8054_v42  ;;  %6158 = vmatpush3.bf16.msra.mxu1 %v6155_v30 }
 0x2ea   : > { %6160 = vmatprep.subr.bf16.mxu1 %v6159_v44 }
 0x2ec   : > { %6011 = vmatmul.mubr.msk.f32.gmra.mrb[22].mxu1 %vm2056_vm8, %v8051_v38 }
 0x2ed   : > { %6013 = vmatprep.mubr.msk.f32.mxu1 %vm2056_vm8, %v8068_v14  ;;  %6162 = vmatpush3.bf16.msra.mxu1 %v6159_v44 }
 0x2f0   : > { %6014 = vmatmul.mubr.msk.f32.gmra.mrb[24].mxu1 %vm2056_vm8, %v8065_v7 }
 0x2f1   : > { %6016 = vmatprep.mubr.msk.f32.mxu1 %vm2056_vm8, %v8082_v8 }
 0x2f4   : > { %6017 = vmatmul.mubr.msk.f32.gmra.mrb[26].mxu1 %vm2056_vm8, %v8079_v46 }
 0x2f5   : > { %6019 = vmatprep.mubr.msk.f32.mxu1 %vm2056_vm8, %v7928_v3 }
 0x2f8   : > { %6020 = vmatmul.mubr.msk.f32.gmra.mrb[28].mxu1 %vm2056_vm8, %v7925_v57 }
 0x2f9   : > { %6022 = vmatprep.mubr.msk.f32.mxu1 %vm2056_vm8, %v7938_v27 }
 0x2fc   : > { %6023 = vmatmul.mubr.msk.f32.gmra.mrb[30].mxu1 %vm2056_vm8, %v7935_v52 }
 0x2fd   : > { %6025 = vmatprep.mubr.msk.f32.mxu1 %vm2056_vm8, %v7948_v60 }
 0x300   : > { %6026 = vmatmul.mubr.msk.f32.gmra.mrb[32].mxu1 %vm2056_vm8, %v7945_v21 }
 0x301   : > { %6028 = vmatprep.mubr.msk.f32.mxu1 %vm2056_vm8, %v8101_v0 }
 0x304   : > { %6029 = vmatmul.mubr.msk.f32.gmra.mrb[34].mxu1 %vm2056_vm8, %v8110_v22 }
 0x305   : > { %6055 = vmatprep.mubr.msk.f32.mxu1 %vm2056_vm8, %v7991_v40 }
 0x308   : > { %6056 = vmatmul.mubr.msk.f32.vlgmr.msra.gmra.mrb[12].mxu1 %vm2056_vm8, %v7988_v54  ;;  %v1830_v54 = vpop.permute.xlu0 %1829 }
 0x309   : > { %6058 = vmatprep.mubr.msk.f32.mxu1 %vm2056_vm8, %v8017_v62  ;;  %v5281_v62 = vld [vmem:[%s10569_s5 + $0xd0] sm:$0xff] }
 0x30c   : > { %6059 = vmatmul.mubr.msk.f32.gmra.mrb[14].mxu1 %vm2056_vm8, %v8014_v9  ;;  %v5279_v9 = vld [vmem:[%s10569_s5 + $0xc0] sm:$0xff] }
 0x30d   : > { %6061 = vmatprep.mubr.msk.f32.mxu1 %vm2056_vm8, %v8039_v35  ;;  %v5282_v35 = vld [vmem:[%s10569_s5 + $0xd8] sm:$0xff] }
 0x310   : > { %6062 = vmatmul.mubr.msk.f32.gmra.mrb[16].mxu1 %vm2056_vm8, %v8036_v32  ;;  %v6772_v32 = vmov 0.0|0.0  }
 0x311   : > { %6064 = vmatprep.mubr.msk.f32.mxu1 %vm2056_vm8, %v8054_v42  ;;  %6163 = vmatprep.subr.bf16.mxu1 %v6772_v32  ;;  %v5283_v42 = vld [vmem:[%s10569_s5 + $0xe0] sm:$0xff] }
 0x314   : > { %6065 = vmatmul.mubr.msk.f32.gmra.mrb[18].mxu1 %vm2056_vm8, %v8051_v38  ;;  %v6167_v38 = vpack.c.bf16 %v5282_v35, %v5281_v62 }
 0x315   : > { %6067 = vmatprep.mubr.msk.f32.mxu1 %vm2056_vm8, %v8068_v14 }
 0x318   : > { %6068 = vmatmul.mubr.msk.f32.gmra.mrb[20].mxu1 %vm2056_vm8, %v8065_v7  ;;  %v5284_v7 = vld [vmem:[%s10569_s5 + $0xe8] sm:$0xff] }
 0x319   : > { %6070 = vmatprep.mubr.msk.f32.mxu1 %vm2056_vm8, %v8082_v8  ;;  %v6170_v14 = vpack.c.bf16 %v5284_v7, %v5283_v42 }
 0x31c   : > { %6071 = vmatmul.mubr.msk.f32.gmra.mrb[22].mxu1 %vm2056_vm8, %v8079_v46  ;;  %v5288_v46 = vld [vmem:[%s10569_s5 + $0x108] sm:$0xff] }
 0x31d   : > { %6073 = vmatprep.mubr.msk.f32.mxu1 %vm2056_vm8, %v7928_v3  ;;  %v1832_v3 = vpop.permute.xlu1 %1831  ;;  %v6176_v8 = vpack.c.bf16 %v5288_v46, %v5287_v11 }
 0x320   : > { %6074 = vmatmul.mubr.msk.f32.gmra.mrb[24].mxu1 %vm2056_vm8, %v7925_v57  ;;  %v1942_v57 = vpop.permute.xlu0 %1941 }
 0x321   : > { %6076 = vmatprep.mubr.msk.f32.mxu1 %vm2056_vm8, %v7938_v27  ;;  %v1944_v27 = vpop.permute.xlu1 %1943 }
 0x324   : > { %6077 = vmatmul.mubr.msk.f32.gmra.mrb[26].mxu1 %vm2056_vm8, %v7935_v52  ;;  %v2000_v52 = vsel %vm1973_vm6, %v7888_v61, %v1830_v54  ;;  %v5280_v61 = vld [vmem:[%s10569_s5 + $0xc8] sm:$0xff] }
 0x325   : > { %6079 = vmatprep.mubr.msk.f32.mxu1 %vm2056_vm8, %v7948_v60  ;;  %v2029_v60 = vsel %vm2002_vm7, %v2000_v52, %v1942_v57 }
 0x328   : > { %6080 = vmatmul.mubr.msk.f32.gmra.mrb[28].mxu1 %vm2056_vm8, %v7945_v21  ;;  %v2001_v21 = vsel %vm1973_vm6, %v7885_v1, %v1832_v3  ;;  %v6164_v1 = vpack.c.bf16 %v5280_v61, %v5279_v9 }
 0x329   : > { %6082 = vmatprep.mubr.msk.f32.mxu1 %vm2056_vm8, %v8101_v0  ;;  %v2030_v40 = vsel %vm2002_vm7, %v2001_v21, %v1944_v27  ;;  %v5294_v0 = vld [vmem:[%s10569_s5 + $0x138] sm:$0xff] }
 0x32a   : > { %6165 = vmatpush1.bf16.msra.mxu1 %v6164_v1  ;;  %v6185_v33 = vpack.c.bf16 %v5294_v0, %v5293_v45 }
 0x32b   : > { %6166 = vmatprep.subr.bf16.mxu1 %v6772_v32 }
 0x32c   : > { %6083 = vmatmul.mubr.msk.f32.gmra.mrb[30].mxu1 %vm2056_vm8, %v8110_v22  ;;  %v6188_v22 = vpack.c.bf16 %v5296_v59, %v5295_v4 }
 0x32d   : > { %6085 = vmatprep.mubr.msk.f32.mxu1 %vm2056_vm8, %v8115_v39  ;;  %v5298_v39 = vld [vmem:[%s10569_s5 + $0x158] sm:$0xff] }
 0x32e   : > { %6168 = vmatpush1.bf16.msra.mxu1 %v6167_v38  ;;  %v6191_v56 = vpack.c.bf16 %v5298_v39, %v5297_v29 }
 0x32f   : > { %6169 = vmatprep.subr.bf16.mxu1 %v6772_v32 }
 0x330   : > { %6086 = vmatmul.mubr.msk.f32.gmra.mrb[32].mxu1 %vm2056_vm8, %v8124_v55  ;;  %v6194_v55 = vpack.c.bf16 %v5300_v28, %v5299_v12 }
 0x331   : > { %6088 = vmatprep.mubr.msk.f32.mxu1 %vm2056_vm8, %v2029_v60 }
 0x332   : > { %6171 = vmatpush1.bf16.msra.mxu1 %v6170_v14 }
 0x333   : > { %6172 = vmatprep.subr.bf16.mxu1 %v6772_v32 }
 0x334   : > { %6089 = vmatmul.mubr.msk.f32.gmra.mrb[34].mxu1 %vm2056_vm8, %v2030_v40 }
 0x336   : > { %6174 = vmatpush1.bf16.msra.mxu1 %v6173_v58 }
 0x337   : > { %6175 = vmatprep.subr.bf16.mxu1 %v6772_v32 }
 0x33a   : > { %6177 = vmatpush1.bf16.msra.mxu1 %v6176_v8 }
 0x33b   : > { %6178 = vmatprep.subr.bf16.mxu1 %v6772_v32 }
 0x33e   : > { %6180 = vmatpush1.bf16.msra.mxu1 %v6179_v13 }
 0x33f   : > { %6181 = vmatprep.subr.bf16.mxu1 %v6772_v32 }
 0x342   : > { %6183 = vmatpush1.bf16.msra.mxu1 %v6182_v10 }
 0x343   : > { %6184 = vmatprep.subr.bf16.mxu1 %v6772_v32 }
 0x346   : > { %6186 = vmatpush1.bf16.msra.mxu1 %v6185_v33 }
 0x347   : > { %6187 = vmatprep.subr.bf16.mxu1 %v6772_v32 }
 0x34a   : > { %6189 = vmatpush1.bf16.msra.mxu1 %v6188_v22 }
 0x34b   : > { %6190 = vmatprep.subr.bf16.mxu1 %v6772_v32 }
 0x34e   : > { %6192 = vmatpush1.bf16.msra.mxu1 %v6191_v56 }
 0x34f   : > { %6193 = vmatprep.subr.bf16.mxu1 %v6772_v32 }
 0x352   : > { %6195 = vmatpush1.bf16.msra.mxu1 %v6194_v55 }
 0x353   : > { %6196 = vmatprep.subr.bf16.mxu1 %v6772_v32 }
 0x356   : > { %6198 = vmatpush1.bf16.msra.mxu1 %v6197_v34 }
 0x357   : > { %6199 = vmatprep.subr.bf16.mxu1 %v6772_v32 }
 0x3db   : > { %v8348_v63 = vpop.f32.mrb[12].mxu1 }
 0x3dc   : > { %v8350_v16 = vpop.f32.mrb[13].mxu1 }
 0x3df   : > { %v6060_v25 = vpop.f32.mrb[14].mxu1 }
 0x3e0   : > { %v2743_v37 = vadd.f32 %v6060_v25, %v8355_v26  ;;  %v2600_v24 = vpop.f32.mrb[15].mxu1 }
 0x3e1   : > { %v2742_v49 = vadd.f32 %v8355_v26, %v2600_v24 }
 0x3e2   : > { %v8359_v47 = vmax.f32 %v2743_v37, 0.0 }
 0x3e3   : > { %v8361_v50 = vmax.f32 %v2742_v49, 0.0  ;;  %v6063_v17 = vpop.f32.mrb[16].mxu1 }
 0x3e4   : > { %v2801_v20 = vrot.slane %v8359_v47, 1  ;;  %v2849_v18 = vrot.slane %v8359_v47, 2  ;;  %v2745_v31 = vadd.f32 %v6063_v17, %v8355_v26  ;;  %v2610_v6 = vpop.f32.mrb[17].mxu1 }
 0x3e5   : > { %v2789_v30 = vrot.slane %v8361_v50, 1  ;;  %v2837_v41 = vrot.slane %v8361_v50, 2  ;;  %v2744_v43 = vadd.f32 %v8355_v26, %v2610_v6 }
 0x3e6   : > { %v8369_v44 = vmax.f32 %v2745_v31, 0.0 }
 0x3e7   : > { %v8371_v54 = vmax.f32 %v2744_v43, 0.0  ;;  %v6066_v3 = vpop.f32.mrb[18].mxu1  ;;  %v2825_v57 = vsel %vm399_vm2, %v2801_v20, %v2789_v30  ;;  %v2813_v52 = vsel %vm399_vm2, %v2789_v30, %v2801_v20  ;;  %v8379_v27 = vsel %vm464_vm1, %v2837_v41, %v2849_v18 }
 0x3e8   : > { %v2802_v60 = vrot.slane %v8369_v44, 1  ;;  %v2747_v21 = vadd.f32 %v6066_v3, %v8355_v26  ;;  %2914 = vrot.lane.b32.xlu1 %v2825_v57, %s6771_s19  ;;  %2912 = vrot.lane.b32.xlu0 %v2813_v52, %s6771_s19  ;;  %v2620_v40 = vpop.f32.mrb[19].mxu1  ;;  %v8387_v9 = vsel %vm464_vm1, %v2849_v18, %v2837_v41 }
 0x3e9   : > { %v2790_v61 = vrot.slane %v8371_v54, 1  ;;  %v2746_v62 = vadd.f32 %v8355_v26, %v2620_v40  ;;  %5303 = vmatprep.mubr.msk.f32.mxu1 %vm2002_vm7, %v8379_v27 }
 0x3ea   : > { %v8393_v1 = vmax.f32 %v2747_v21, 0.0 }
 0x3eb   : > { %v8395_v35 = vmax.f32 %v2746_v62, 0.0  ;;  %v6069_v38 = vpop.f32.mrb[20].mxu1  ;;  %v2826_v42 = vsel %vm399_vm2, %v2802_v60, %v2790_v61  ;;  %v2814_v7 = vsel %vm399_vm2, %v2790_v61, %v2802_v60 }
 0x3ec   : > { %v2803_v14 = vrot.slane %v8393_v1, 1  ;;  %v2749_v53 = vadd.f32 %v6069_v38, %v8355_v26  ;;  %2918 = vrot.lane.b32.xlu1 %v2826_v42, %s6771_s19  ;;  %2916 = vrot.lane.b32.xlu0 %v2814_v7, %s6771_s19  ;;  %v2630_v51 = vpop.f32.mrb[21].mxu1 }
 0x3ed   : > { %v2791_v58 = vrot.slane %v8395_v35, 1  ;;  %v2748_v11 = vadd.f32 %v8355_v26, %v2630_v51 }
 0x3ee   : > { %v8407_v46 = vmax.f32 %v2749_v53, 0.0 }
 0x3ef   : > { %v8409_v8 = vmax.f32 %v2748_v11, 0.0  ;;  %v6072_v36 = vpop.f32.mrb[22].mxu1  ;;  %v2827_v19 = vsel %vm399_vm2, %v2803_v14, %v2791_v58  ;;  %v2815_v13 = vsel %vm399_vm2, %v2791_v58, %v2803_v14  ;;  %v2741_v11 = vadd.f32 %v8348_v63, %v8355_v26 }
 0x3f0   : > { %v2804_v23 = vrot.slane %v8407_v46, 1  ;;  %v2751_v48 = vadd.f32 %v6072_v36, %v8355_v26  ;;  %2922 = vrot.lane.b32.xlu1 %v2827_v19, %s6771_s19  ;;  %2920 = vrot.lane.b32.xlu0 %v2815_v13, %s6771_s19  ;;  %v2640_v10 = vpop.f32.mrb[23].mxu1  ;;  %v2740_v36 = vadd.f32 %v8355_v26, %v8350_v16 }
 0x3f1   : > { %v2792_v45 = vrot.slane %v8409_v8, 1  ;;  %v2750_v0 = vadd.f32 %v8355_v26, %v2640_v10 }
 0x3f2   : > { %v8421_v33 = vmax.f32 %v2751_v48, 0.0 }
 0x3f3   : > { %v8423_v4 = vmax.f32 %v2750_v0, 0.0  ;;  %v6075_v59 = vpop.f32.mrb[24].mxu1  ;;  %v2828_v22 = vsel %vm399_vm2, %v2804_v23, %v2792_v45  ;;  %v2816_v29 = vsel %vm399_vm2, %v2792_v45, %v2804_v23 }
 0x3f4   : > { %v2805_v39 = vrot.slane %v8421_v33, 1  ;;  %v2753_v56 = vadd.f32 %v6075_v59, %v8355_v26  ;;  %2926 = vrot.lane.b32.xlu1 %v2828_v22, %s6771_s19  ;;  %2924 = vrot.lane.b32.xlu0 %v2816_v29, %s6771_s19  ;;  %v2650_v12 = vpop.f32.mrb[25].mxu1  ;;  %v8495_v22 = vmax.f32 %v2741_v11, 0.0  ;;  %v8497_v29 = vmax.f32 %v2740_v36, 0.0 }
 0x3f5   : > { %v2793_v28 = vrot.slane %v8423_v4, 1  ;;  %v2752_v55 = vadd.f32 %v8355_v26, %v2650_v12  ;;  %v2838_v11 = vrot.slane %v8371_v54, 2 }
 0x3f6   : > { %v8435_v5 = vmax.f32 %v2753_v56, 0.0 }
 0x3f7   : > { %v8437_v15 = vmax.f32 %v2752_v55, 0.0  ;;  %v6078_v34 = vpop.f32.mrb[26].mxu1  ;;  %v2829_v25 = vsel %vm399_vm2, %v2805_v39, %v2793_v28  ;;  %v2817_v37 = vsel %vm399_vm2, %v2793_v28, %v2805_v39 }
 0x3f8   : > { %v2806_v24 = vrot.slane %v8435_v5, 1  ;;  %v2755_v49 = vadd.f32 %v6078_v34, %v8355_v26  ;;  %2930 = vrot.lane.b32.xlu1 %v2829_v25, %s6771_s19  ;;  %2928 = vrot.lane.b32.xlu0 %v2817_v37, %s6771_s19  ;;  %v2660_v17 = vpop.f32.mrb[27].mxu1 }
 0x3f9   : > { %v2794_v20 = vrot.slane %v8437_v15, 1  ;;  %v2754_v18 = vadd.f32 %v8355_v26, %v2660_v17  ;;  %v2800_v17 = vrot.slane %v8495_v22, 1 }
 0x3fa   : > { %v8449_v31 = vmax.f32 %v2755_v49, 0.0 }
 0x3fb   : > { %v8451_v6 = vmax.f32 %v2754_v18, 0.0  ;;  %v6081_v30 = vpop.f32.mrb[28].mxu1  ;;  %v2830_v41 = vsel %vm399_vm2, %v2806_v24, %v2794_v20  ;;  %v2818_v43 = vsel %vm399_vm2, %v2794_v20, %v2806_v24  ;;  %v2788_v20 = vrot.slane %v8497_v29, 1 }
 0x3fc   : > { %v2807_v3 = vrot.slane %v8449_v31, 1  ;;  %v2757_v57 = vadd.f32 %v6081_v30, %v8355_v26  ;;  %2934 = vrot.lane.b32.xlu1 %v2830_v41, %s6771_s19  ;;  %2932 = vrot.lane.b32.xlu0 %v2818_v43, %s6771_s19  ;;  %v2670_v52 = vpop.f32.mrb[29].mxu1 }
 0x3fd   : > { %v2795_v60 = vrot.slane %v8451_v6, 1  ;;  %v2756_v21 = vadd.f32 %v8355_v26, %v2670_v52  ;;  %v2812_v52 = vsel %vm399_vm2, %v2788_v20, %v2800_v17 }
 0x3fe   : > { %v8463_v40 = vmax.f32 %v2757_v57, 0.0  ;;  %v2824_v57 = vsel %vm399_vm2, %v2800_v17, %v2788_v20 }
 0x3ff   : > { %v8465_v61 = vmax.f32 %v2756_v21, 0.0  ;;  %v6084_v62 = vpop.f32.mrb[30].mxu1  ;;  %v2831_v38 = vsel %vm399_vm2, %v2807_v3, %v2795_v60  ;;  %v2819_v42 = vsel %vm399_vm2, %v2795_v60, %v2807_v3 }
 0x400   : > { %v2808_v7 = vrot.slane %v8463_v40, 1  ;;  %v2759_v14 = vadd.f32 %v6084_v62, %v8355_v26  ;;  %2938 = vrot.lane.b32.xlu1 %v2831_v38, %s6771_s19  ;;  %2936 = vrot.lane.b32.xlu0 %v2819_v42, %s6771_s19  ;;  %v2680_v53 = vpop.f32.mrb[31].mxu1  ;;  %v3004_v62 = vld [vmem:[%s10569_s5] sm:$0xff]  ;;  %v3005_v38 = vld [vmem:[%s10569_s5 + $0x8] sm:$0xff] }
 0x401   : > { %v2796_v51 = vrot.slane %v8465_v61, 1  ;;  %v2758_v58 = vadd.f32 %v8355_v26, %v2680_v53  ;;  %v6200_v42 = vpack.c.bf16 %v3005_v38, %v3004_v62  ;;  %v3007_v53 = vld [vmem:[%s10569_s5 + $0x18] sm:$0xff] }
 0x402   : > { %v8481_v19 = vmax.f32 %v2759_v14, 0.0  ;;  %v3006_v14 = vld [vmem:[%s10569_s5 + $0x10] sm:$0xff] }
 0x403   : > { %v8483_v13 = vmax.f32 %v2758_v58, 0.0  ;;  %v6087_v23 = vpop.f32.mrb[32].mxu1  ;;  %v2832_v48 = vsel %vm399_vm2, %v2808_v7, %v2796_v51  ;;  %v2820_v10 = vsel %vm399_vm2, %v2796_v51, %v2808_v7  ;;  %v2850_v58 = vrot.slane %v8369_v44, 2 }
 0x404   : > { %v2809_v45 = vrot.slane %v8481_v19, 1  ;;  %v2761_v0 = vadd.f32 %v6087_v23, %v8355_v26  ;;  %2942 = vrot.lane.b32.xlu1 %v2832_v48, %s6771_s19  ;;  %2940 = vrot.lane.b32.xlu0 %v2820_v10, %s6771_s19  ;;  %v2690_v63 = vpop.f32.mrb[33].mxu1  ;;  %v6203_v23 = vpack.c.bf16 %v3007_v53, %v3006_v14  ;;  %v3008_v48 = vld [vmem:[%s10569_s5 + $0x20] sm:$0xff]  ;;  %v3018_v14 = vld [vmem:[%s10569_s5 + $0x70] sm:$0xff] }
 0x405   : > { %v2797_v16 = vrot.slane %v8483_v13, 1  ;;  %v2760_v59 = vadd.f32 %v8355_v26, %v2690_v63 }
 0x406   : > { %v8499_v39 = vmax.f32 %v2761_v0, 0.0  ;;  %v8574_v0 = vsel %vm464_vm1, %v2838_v11, %v2850_v58 }
 0x407   : > { %v8501_v56 = vmax.f32 %v2760_v59, 0.0  ;;  %v6090_v12 = vpop.f32.mrb[34].mxu1  ;;  %v2833_v28 = vsel %vm399_vm2, %v2809_v45, %v2797_v16  ;;  %v2821_v55 = vsel %vm399_vm2, %v2797_v16, %v2809_v45  ;;  %v3010_v16 = vld [vmem:[%s10569_s5 + $0x30] sm:$0xff] }
 0x408   : > { %v2810_v34 = vrot.slane %v8499_v39, 1  ;;  %v2763_v25 = vadd.f32 %v6090_v12, %v8355_v26  ;;  %2946 = vrot.lane.b32.xlu1 %v2833_v28, %s6771_s19  ;;  %2944 = vrot.lane.b32.xlu0 %v2821_v55, %s6771_s19  ;;  %v2700_v37 = vpop.f32.mrb[35].mxu1  ;;  %v2851_v12 = vrot.slane %v8393_v1, 2  ;;  %v2839_v28 = vrot.slane %v8395_v35, 2 }
 0x409   : > { %v2798_v24 = vrot.slane %v8501_v56, 1  ;;  %v2762_v49 = vadd.f32 %v8355_v26, %v2700_v37  ;;  %v3013_v37 = vld [vmem:[%s10569_s5 + $0x48] sm:$0xff] }
 0x40a   : > { %v8515_v18 = vmax.f32 %v2763_v25, 0.0  ;;  %v8612_v17 = vsel %vm464_vm1, %v2839_v28, %v2851_v12 }
 0x40b   : > { %v8517_v30 = vmax.f32 %v2762_v49, 0.0  ;;  %v2834_v41 = vsel %vm399_vm2, %v2810_v34, %v2798_v24  ;;  %v2822_v43 = vsel %vm399_vm2, %v2798_v24, %v2810_v34  ;;  %v8594_v34 = vsel %vm464_vm1, %v2850_v58, %v2838_v11 }
 0x40c   : > { %2950 = vrot.lane.b32.xlu1 %v2834_v41, %s6771_s19  ;;  %2948 = vrot.lane.b32.xlu0 %v2822_v43, %s6771_s19  ;;  %v2811_v26 = vrot.slane %v8515_v18, 1  ;;  %v3014_v41 = vld [vmem:[%s10569_s5 + $0x50] sm:$0xff]  ;;  %v2853_v58 = vrot.slane %v8421_v33, 2  ;;  %v2841_v11 = vrot.slane %v8423_v4, 2 }
 0x40d   : > { %v2799_v3 = vrot.slane %v8517_v30, 1 }
 0x40f   : > { %v2835_v60 = vsel %vm399_vm2, %v2811_v26, %v2799_v3  ;;  %v2823_v21 = vsel %vm399_vm2, %v2799_v3, %v2811_v26  ;;  %v2852_v26 = vrot.slane %v8407_v46, 2  ;;  %v2840_v3 = vrot.slane %v8409_v8, 2 }
 0x410   : > { %2910 = vrot.lane.b32.xlu1 %v2824_v57, %s6771_s19  ;;  %2908 = vrot.lane.b32.xlu0 %v2812_v52, %s6771_s19  ;;  %v8632_v52 = vsel %vm464_vm1, %v2851_v12, %v2839_v28  ;;  %v3022_v12 = vld [vmem:[%s10569_s5 + $0x90] sm:$0xff] }
 0x414   : > { %2954 = vrot.lane.b32.xlu1 %v2835_v60, %s6771_s19  ;;  %2952 = vrot.lane.b32.xlu0 %v2823_v21, %s6771_s19  ;;  %v3017_v21 = vld [vmem:[%s10569_s5 + $0x68] sm:$0xff] }
 0x45a   : > { %v2913_v7 = vpop.permute.xlu0 %2912  ;;  %v2915_v36 = vpop.permute.xlu1 %2914 }
 0x45b   : > { %v8553_v51 = vsel %vm2002_vm7, %v8361_v50, %v2913_v7  ;;  %v3009_v50 = vld [vmem:[%s10569_s5 + $0x28] sm:$0xff]  ;;  %v8569_v10 = vsel %vm2002_vm7, %v8359_v47, %v2915_v36  ;;  %v3011_v47 = vld [vmem:[%s10569_s5 + $0x38] sm:$0xff] }
 0x45c   : > { %3178 = vmatmul.mubr.f32.vlgmr.msra.gmra.mrb[36].mxu1 %v8553_v51  ;;  %v6206_v63 = vpack.c.bf16 %v3009_v50, %v3008_v48  ;;  %v6209_v25 = vpack.c.bf16 %v3011_v47, %v3010_v16  ;;  %v3021_v50 = vld [vmem:[%s10569_s5 + $0x88] sm:$0xff]  ;;  %v8688_v16 = vsel %vm464_vm1, %v2841_v11, %v2853_v58 }
 0x45d   : > { %6201 = vmatpush1.bf16.msra.mxu1 %v6200_v42  ;;  %5304 = vmatprep.mubr.msk.f32.mxu1 %vm2002_vm7, %v8387_v9  ;;  %v8650_v42 = vsel %vm464_vm1, %v2840_v3, %v2852_v26 }
 0x45e   : > { %6202 = vmatprep.subr.bf16.mxu1 %v6772_v32  ;;  %v2917_v45 = vpop.permute.xlu0 %2916  ;;  %v2919_v55 = vpop.permute.xlu1 %2918 }
 0x45f   : > { %v8587_v59 = vsel %vm2002_vm7, %v8371_v54, %v2917_v45  ;;  %v3012_v54 = vld [vmem:[%s10569_s5 + $0x40] sm:$0xff]  ;;  %v8607_v24 = vsel %vm2002_vm7, %v8369_v44, %v2919_v55  ;;  %v3015_v44 = vld [vmem:[%s10569_s5 + $0x58] sm:$0xff]  ;;  %v2854_v55 = vrot.slane %v8435_v5, 2 }
 0x460   : > { %3183 = vmatmul.mubr.f32.gmra.mrb[38].mxu1 %v8569_v10  ;;  %v6212_v20 = vpack.c.bf16 %v3013_v37, %v3012_v54  ;;  %v6215_v60 = vpack.c.bf16 %v3015_v44, %v3014_v41  ;;  %v8708_v37 = vsel %vm464_vm1, %v2853_v58, %v2841_v11 }
 0x461   : > { %5305 = vmatprep.mubr.msk.f32.mxu1 %vm2002_vm7, %v8574_v0  ;;  %6204 = vmatpush1.bf16.msra.mxu1 %v6203_v23  ;;  %v8670_v23 = vsel %vm464_vm1, %v2852_v26, %v2840_v3 }
 0x462   : > { %6205 = vmatprep.subr.bf16.mxu1 %v6772_v32  ;;  %v2921_v49 = vpop.permute.xlu0 %2920  ;;  %v2923_v57 = vpop.permute.xlu1 %2922 }
 0x463   : > { %v8625_v43 = vsel %vm2002_vm7, %v8395_v35, %v2921_v49  ;;  %v3016_v35 = vld [vmem:[%s10569_s5 + $0x60] sm:$0xff]  ;;  %v8645_v62 = vsel %vm2002_vm7, %v8393_v1, %v2923_v57  ;;  %v3019_v1 = vld [vmem:[%s10569_s5 + $0x78] sm:$0xff]  ;;  %v3026_v57 = vld [vmem:[%s10569_s5 + $0xb0] sm:$0xff] }
 0x464   : > { %3188 = vmatmul.mubr.f32.gmra.mrb[40].mxu1 %v8587_v59  ;;  %v6218_v7 = vpack.c.bf16 %v3017_v21, %v3016_v35  ;;  %v6221_v48 = vpack.c.bf16 %v3019_v1, %v3018_v14  ;;  %v2855_v35 = vrot.slane %v8449_v31, 2  ;;  %v2843_v21 = vrot.slane %v8451_v6, 2 }
 0x465   : > { %5306 = vmatprep.mubr.msk.f32.mxu1 %vm2002_vm7, %v8594_v34  ;;  %6207 = vmatpush1.bf16.msra.mxu1 %v6206_v63 }
 0x466   : > { %6208 = vmatprep.subr.bf16.mxu1 %v6772_v32  ;;  %v2925_v38 = vpop.permute.xlu0 %2924  ;;  %v2927_v36 = vpop.permute.xlu1 %2926  ;;  %v8758_v58 = vsel %vm464_vm1, %v2843_v21, %v2855_v35 }
 0x467   : > { %v8663_v53 = vsel %vm2002_vm7, %v8409_v8, %v2925_v38  ;;  %v3020_v8 = vld [vmem:[%s10569_s5 + $0x80] sm:$0xff]  ;;  %v8683_v45 = vsel %vm2002_vm7, %v8407_v46, %v2927_v36  ;;  %v3023_v46 = vld [vmem:[%s10569_s5 + $0x98] sm:$0xff]  ;;  %v2844_v36 = vrot.slane %v8465_v61, 2 }
 0x468   : > { %3193 = vmatmul.mubr.f32.gmra.mrb[42].mxu1 %v8607_v24  ;;  %v6224_v47 = vpack.c.bf16 %v3021_v50, %v3020_v8  ;;  %v6227_v49 = vpack.c.bf16 %v3023_v46, %v3022_v12  ;;  %v8772_v8 = vsel %vm464_vm1, %v2855_v35, %v2843_v21  ;;  %v2857_v12 = vrot.slane %v8481_v19, 2 }
 0x469   : > { %5307 = vmatprep.mubr.msk.f32.mxu1 %vm2002_vm7, %v8612_v17  ;;  %6210 = vmatpush1.bf16.msra.mxu1 %v6209_v25  ;;  %v2842_v25 = vrot.slane %v8437_v15, 2  ;;  %v2845_v46 = vrot.slane %v8483_v13, 2  ;;  %v2848_v35 = vrot.slane %v8495_v22, 2  ;;  %v2836_v21 = vrot.slane %v8497_v29, 2 }
 0x46a   : > { %6211 = vmatprep.subr.bf16.mxu1 %v6772_v32  ;;  %v2929_v63 = vpop.permute.xlu0 %2928  ;;  %v2931_v54 = vpop.permute.xlu1 %2930 }
 0x46b   : > { %v8701_v28 = vsel %vm2002_vm7, %v8423_v4, %v2929_v63  ;;  %v3024_v4 = vld [vmem:[%s10569_s5 + $0xa0] sm:$0xff]  ;;  %v8721_v41 = vsel %vm2002_vm7, %v8421_v33, %v2931_v54  ;;  %v8726_v26 = vsel %vm464_vm1, %v2842_v25, %v2854_v55  ;;  %v3027_v33 = vld [vmem:[%s10569_s5 + $0xb8] sm:$0xff]  ;;  %v8807_v54 = vsel %vm464_vm1, %v2845_v46, %v2857_v12 }
 0x46c   : > { %3198 = vmatmul.mubr.f32.gmra.mrb[44].mxu1 %v8625_v43  ;;  %v6233_v14 = vpack.c.bf16 %v3027_v33, %v3026_v57 }
 0x46d   : > { %5308 = vmatprep.mubr.msk.f32.mxu1 %vm2002_vm7, %v8632_v52  ;;  %6213 = vmatpush1.bf16.msra.mxu1 %v6212_v20  ;;  %v3025_v20 = vld [vmem:[%s10569_s5 + $0xa8] sm:$0xff] }
 0x46e   : > { %6214 = vmatprep.subr.bf16.mxu1 %v6772_v32  ;;  %v2933_v44 = vpop.permute.xlu0 %2932  ;;  %v6230_v3 = vpack.c.bf16 %v3025_v20, %v3024_v4  ;;  %v2935_v38 = vpop.permute.xlu1 %2934  ;;  %v2858_v4 = vrot.slane %v8499_v39, 2  ;;  %v2846_v20 = vrot.slane %v8501_v56, 2 }
 0x470   : > { %3203 = vmatmul.mubr.f32.gmra.mrb[46].mxu1 %v8645_v62  ;;  %v8831_v57 = vsel %vm464_vm1, %v2846_v20, %v2858_v4 }
 0x471   : > { %5309 = vmatprep.mubr.msk.f32.mxu1 %vm2002_vm7, %v8650_v42  ;;  %6216 = vmatpush1.bf16.msra.mxu1 %v6215_v60  ;;  %v8739_v60 = vsel %vm2002_vm7, %v8437_v15, %v2933_v44  ;;  %v8753_v15 = vsel %vm2002_vm7, %v8435_v5, %v2935_v38  ;;  %v2856_v5 = vrot.slane %v8463_v40, 2  ;;  %v8820_v44 = vsel %vm464_vm1, %v2857_v12, %v2845_v46  ;;  %v5346_v12 = vld [vmem:[%s10569_s5 + $0x198] sm:$0xff] }
 0x472   : > { %6217 = vmatprep.subr.bf16.mxu1 %v6772_v32  ;;  %v2937_v1 = vpop.permute.xlu0 %2936  ;;  %v8844_v38 = vsel %vm464_vm1, %v2858_v4, %v2846_v20  ;;  %v5347_v4 = vld [vmem:[%s10569_s5 + $0x1a0] sm:$0xff]  ;;  %v5348_v20 = vld [vmem:[%s10569_s5 + $0x1a8] sm:$0xff] }
 0x473   : > { %v8765_v11 = vsel %vm2002_vm7, %v8451_v6, %v2937_v1  ;;  %v8783_v63 = vsel %vm464_vm1, %v2844_v36, %v2856_v5 }
 0x474   : > { %3208 = vmatmul.mubr.f32.gmra.mrb[48].mxu1 %v8663_v53 }
 0x475   : > { %5310 = vmatprep.mubr.msk.f32.mxu1 %vm2002_vm7, %v8670_v23  ;;  %6219 = vmatpush1.bf16.msra.mxu1 %v6218_v7  ;;  %v8746_v7 = vsel %vm464_vm1, %v2854_v55, %v2842_v25  ;;  %v8796_v55 = vsel %vm464_vm1, %v2856_v5, %v2844_v36  ;;  %v2860_v36 = vsel %vm464_vm1, %v2836_v21, %v2848_v35 }
 0x476   : > { %6220 = vmatprep.subr.bf16.mxu1 %v6772_v32  ;;  %v2941_v6 = vpop.permute.xlu0 %2940 }
 0x478   : > { %3213 = vmatmul.mubr.f32.gmra.mrb[50].mxu1 %v8683_v45 }
 0x479   : > { %5311 = vmatprep.mubr.msk.f32.mxu1 %vm2002_vm7, %v8688_v16  ;;  %6222 = vmatpush1.bf16.msra.mxu1 %v6221_v48  ;;  %v2939_v48 = vpop.permute.xlu1 %2938 }
 0x47a   : > { %6223 = vmatprep.subr.bf16.mxu1 %v6772_v32  ;;  %v8778_v50 = vsel %vm2002_vm7, %v8449_v31, %v2939_v48 }
 0x47c   : > { %3218 = vmatmul.mubr.f32.gmra.mrb[52].mxu1 %v8701_v28 }
 0x47d   : > { %5312 = vmatprep.mubr.msk.f32.mxu1 %vm2002_vm7, %v8708_v37  ;;  %6225 = vmatpush1.bf16.msra.mxu1 %v6224_v47  ;;  %v8789_v47 = vsel %vm2002_vm7, %v8465_v61, %v2941_v6  ;;  %v2943_v31 = vpop.permute.xlu1 %2942  ;;  %v2945_v61 = vpop.permute.xlu0 %2944  ;;  %v5345_v6 = vld [vmem:[%s10569_s5 + $0x190] sm:$0xff] }
 0x47e   : > { %6226 = vmatprep.subr.bf16.mxu1 %v6772_v32  ;;  %v8802_v25 = vsel %vm2002_vm7, %v8463_v40, %v2943_v31  ;;  %v2872_v31 = vsel %vm464_vm1, %v2848_v35, %v2836_v21  ;;  %v5350_v35 = vld [vmem:[%s10569_s5 + $0x1b8] sm:$0xff]  ;;  %v5352_v21 = vld [vmem:[%s10569_s5 + $0x1c8] sm:$0xff] }
 0x480   : > { %3223 = vmatmul.mubr.f32.gmra.mrb[54].mxu1 %v8721_v41 }
 0x481   : > { %5313 = vmatprep.mubr.msk.f32.mxu1 %vm2002_vm7, %v8726_v26  ;;  %6228 = vmatpush1.bf16.msra.mxu1 %v6227_v49  ;;  %v8813_v49 = vsel %vm2002_vm7, %v8483_v13, %v2945_v61  ;;  %v2947_v40 = vpop.permute.xlu1 %2946  ;;  %v2949_v13 = vpop.permute.xlu0 %2948  ;;  %v6239_v61 = vpack.c.bf16 %v5346_v12, %v5345_v6  ;;  %v5359_v12 = vld [vmem:[%s10569_s5 + $0x200] sm:$0xff] }
 0x482   : > { %6229 = vmatprep.subr.bf16.mxu1 %v6772_v32  ;;  %v8837_v33 = vsel %vm2002_vm7, %v8501_v56, %v2949_v13  ;;  %v5344_v56 = vld [vmem:[%s10569_s5 + $0x188] sm:$0xff]  ;;  %v5349_v13 = vld [vmem:[%s10569_s5 + $0x1b0] sm:$0xff] }
 0x484   : > { %3228 = vmatmul.mubr.f32.gmra.mrb[56].mxu1 %v8739_v60 }
 0x485   : > { %5314 = vmatprep.mubr.msk.f32.mxu1 %vm2002_vm7, %v8746_v7  ;;  %6231 = vmatpush1.bf16.msra.mxu1 %v6230_v3  ;;  %v8826_v3 = vsel %vm2002_vm7, %v8481_v19, %v2947_v40  ;;  %v2951_v19 = vpop.permute.xlu1 %2950  ;;  %v2909_v5 = vpop.permute.xlu0 %2908  ;;  %v6242_v40 = vpack.c.bf16 %v5348_v20, %v5347_v4  ;;  %v5363_v20 = vld [vmem:[%s10569_s5 + $0x220] sm:$0xff] }
 0x486   : > { %6232 = vmatprep.subr.bf16.mxu1 %v6772_v32  ;;  %v8856_v1 = vsel %vm2002_vm7, %v8499_v39, %v2951_v19  ;;  %v2980_v39 = vsel %vm2002_vm7, %v8497_v29, %v2909_v5  ;;  %v5354_v19 = vld [vmem:[%s10569_s5 + $0x1d8] sm:$0xff] }
 0x488   : > { %3233 = vmatmul.mubr.f32.gmra.mrb[58].mxu1 %v8753_v15 }
 0x489   : > { %5315 = vmatprep.mubr.msk.f32.mxu1 %vm2002_vm7, %v8758_v58  ;;  %6234 = vmatpush1.bf16.msra.mxu1 %v6233_v14  ;;  %v5343_v14 = vld [vmem:[%s10569_s5 + $0x180] sm:$0xff]  ;;  %v2911_v46 = vpop.permute.xlu1 %2910 }
 0x48a   : > { %6235 = vmatprep.subr.bf16.mxu1 %v6772_v32  ;;  %v6236_v48 = vpack.c.bf16 %v5344_v56, %v5343_v14  ;;  %v2981_v29 = vsel %vm2002_vm7, %v8495_v22, %v2911_v46  ;;  %v6245_v22 = vpack.c.bf16 %v5350_v35, %v5349_v13  ;;  %v5355_v14 = vld [vmem:[%s10569_s5 + $0x1e0] sm:$0xff]  ;;  %v5356_v56 = vld [vmem:[%s10569_s5 + $0x1e8] sm:$0xff]  ;;  %v5365_v13 = vld [vmem:[%s10569_s5 + $0x230] sm:$0xff] }
 0x48b   : > { %v6254_v5 = vpack.c.bf16 %v5356_v56, %v5355_v14  ;;  %v5366_v35 = vld [vmem:[%s10569_s5 + $0x238] sm:$0xff]  ;;  %v5408_v56 = vld [vmem:[%s10571_s7 + $0x3a0] sm:$0xff] }
 0x48c   : > { %3238 = vmatmul.mubr.f32.gmra.mrb[60].mxu1 %v8765_v11 }
 0x48d   : > { %5316 = vmatprep.mubr.msk.f32.mxu1 %vm2002_vm7, %v8772_v8 }
 0x490   : > { %3243 = vmatmul.mubr.f32.gmra.mrb[62].mxu1 %v8778_v50 }
 0x491   : > { %5317 = vmatprep.mubr.msk.f32.mxu1 %vm2002_vm7, %v8783_v63 }
 0x494   : > { %3248 = vmatmul.mubr.f32.gmra.mrb[64].mxu1 %v8789_v47 }
 0x495   : > { %5318 = vmatprep.mubr.msk.f32.mxu1 %vm2002_vm7, %v8796_v55 }
 0x498   : > { %3253 = vmatmul.mubr.f32.gmra.mrb[66].mxu1 %v8802_v25 }
 0x499   : > { %5319 = vmatprep.mubr.msk.f32.mxu1 %vm2002_vm7, %v8807_v54 }
 0x49c   : > { %3258 = vmatmul.mubr.f32.gmra.mrb[68].mxu1 %v8813_v49 }
 0x49d   : > { %5320 = vmatprep.mubr.msk.f32.mxu1 %vm2002_vm7, %v8820_v44 }
 0x4a0   : > { %3263 = vmatmul.mubr.f32.gmra.mrb[70].mxu1 %v8826_v3 }
 0x4a1   : > { %5321 = vmatprep.mubr.msk.f32.mxu1 %vm2002_vm7, %v8831_v57 }
 0x4a4   : > { %3268 = vmatmul.mubr.f32.gmra.mrb[72].mxu1 %v8837_v33 }
 0x4a5   : > { %5322 = vmatprep.mubr.msk.f32.mxu1 %vm2002_vm7, %v8844_v38 }
 0x4a8   : > { %3273 = vmatmul.mubr.f32.gmra.mrb[74].mxu1 %v8856_v1 }
 0x4a9   : > { %5323 = vmatprep.mubr.msk.f32.mxu1 %vm2002_vm7, %v2860_v36  ;;  %v5357_v36 = vld [vmem:[%s10569_s5 + $0x1f0] sm:$0xff] }
 0x4ac   : > { %3349 = vmatmul.mubr.f32.vlgmr.msra.gmra.mrb[76].mxu1 %v2980_v39  ;;  %v5360_v39 = vld [vmem:[%s10569_s5 + $0x208] sm:$0xff] }
 0x4ad   : > { %6237 = vmatpush1.bf16.msra.mxu1 %v6236_v48  ;;  %5324 = vmatprep.mubr.msk.f32.mxu1 %vm2002_vm7, %v2872_v31  ;;  %v5358_v48 = vld [vmem:[%s10569_s5 + $0x1f8] sm:$0xff]  ;;  %v6260_v46 = vpack.c.bf16 %v5360_v39, %v5359_v12  ;;  %v5361_v31 = vld [vmem:[%s10569_s5 + $0x210] sm:$0xff] }
 0x4ae   : > { %6238 = vmatprep.subr.bf16.mxu1 %v6772_v32  ;;  %v6257_v6 = vpack.c.bf16 %v5358_v48, %v5357_v36  ;;  %v2859_v48 = vrot.slane %v8515_v18, 2  ;;  %v5415_v39 = vld [vmem:[%s10571_s7 + $0x3d8] sm:$0xff] }
 0x4b0   : > { %3354 = vmatmul.mubr.f32.gmra.mrb[78].mxu1 %v2981_v29  ;;  %v5364_v29 = vld [vmem:[%s10569_s5 + $0x228] sm:$0xff] }
 0x4b1   : > { %5325 = vmatprep.mubr.msk.f32.mxu1 %vm2002_vm7, %v8379_v27  ;;  %6240 = vmatpush1.bf16.msra.mxu1 %v6239_v61  ;;  %v5351_v27 = vld [vmem:[%s10569_s5 + $0x1c0] sm:$0xff]  ;;  %v5362_v61 = vld [vmem:[%s10569_s5 + $0x218] sm:$0xff] }
 0x4b2   : > { %6241 = vmatprep.subr.bf16.mxu1 %v6772_v32  ;;  %v6263_v4 = vpack.c.bf16 %v5362_v61, %v5361_v31  ;;  %v5412_v31 = vld [vmem:[%s10571_s7 + $0x3c0] sm:$0xff] }
 0x4b4   : > { %3359 = vmatmul.mubr.f32.gmra.mrb[80].mxu1 %v8553_v51  ;;  %v6248_v51 = vpack.c.bf16 %v5352_v21, %v5351_v27  ;;  %v5404_v21 = vld [vmem:[%s10571_s7 + $0x380] sm:$0xff] }
 0x4b5   : > { %5326 = vmatprep.mubr.msk.f32.mxu1 %vm2002_vm7, %v8387_v9  ;;  %6243 = vmatpush1.bf16.msra.mxu1 %v6242_v40  ;;  %v5353_v9 = vld [vmem:[%s10569_s5 + $0x1d0] sm:$0xff]  ;;  %v6266_v40 = vpack.c.bf16 %v5364_v29, %v5363_v20  ;;  %v2953_v20 = vpop.permute.xlu0 %2952 }
 0x4b6   : > { %6244 = vmatprep.subr.bf16.mxu1 %v6772_v32 }
 0x4b8   : > { %3364 = vmatmul.mubr.f32.gmra.mrb[82].mxu1 %v8569_v10  ;;  %v6251_v10 = vpack.c.bf16 %v5354_v19, %v5353_v9 }
 0x4b9   : > { %5327 = vmatprep.mubr.msk.f32.mxu1 %vm2002_vm7, %v8574_v0  ;;  %6246 = vmatpush1.bf16.msra.mxu1 %v6245_v22  ;;  %v6269_v22 = vpack.c.bf16 %v5366_v35, %v5365_v13  ;;  %v5419_v13 = vld [vmem:[%s10571_s7 + $0x3f8] sm:$0xff] }
 0x4ba   : > { %6247 = vmatprep.subr.bf16.mxu1 %v6772_v32 }
 0x4bc   : > { %3369 = vmatmul.mubr.f32.gmra.mrb[84].mxu1 %v8587_v59 }
 0x4bd   : > { %5328 = vmatprep.mubr.msk.f32.mxu1 %vm2002_vm7, %v8594_v34  ;;  %6249 = vmatpush1.bf16.msra.mxu1 %v6248_v51 }
 0x4be   : > { %6250 = vmatprep.subr.bf16.mxu1 %v6772_v32 }
 0x4c0   : > { %3374 = vmatmul.mubr.f32.gmra.mrb[86].mxu1 %v8607_v24 }
 0x4c1   : > { %5329 = vmatprep.mubr.msk.f32.mxu1 %vm2002_vm7, %v8612_v17  ;;  %6252 = vmatpush1.bf16.msra.mxu1 %v6251_v10  ;;  %v5411_v10 = vld [vmem:[%s10571_s7 + $0x3b8] sm:$0xff] }
 0x4c2   : > { %6253 = vmatprep.subr.bf16.mxu1 %v6772_v32 }
 0x4c4   : > { %3379 = vmatmul.mubr.f32.gmra.mrb[88].mxu1 %v8625_v43 }
 0x4c5   : > { %5330 = vmatprep.mubr.msk.f32.mxu1 %vm2002_vm7, %v8632_v52  ;;  %6255 = vmatpush1.bf16.msra.mxu1 %v6254_v5 }
 0x4c6   : > { %6256 = vmatprep.subr.bf16.mxu1 %v6772_v32 }
 0x4c8   : > { %3384 = vmatmul.mubr.f32.gmra.mrb[90].mxu1 %v8645_v62 }
 0x4c9   : > { %5331 = vmatprep.mubr.msk.f32.mxu1 %vm2002_vm7, %v8650_v42  ;;  %6258 = vmatpush1.bf16.msra.mxu1 %v6257_v6  ;;  %v2847_v6 = vrot.slane %v8517_v30, 2 }
 0x4ca   : > { %6259 = vmatprep.subr.bf16.mxu1 %v6772_v32 }
 0x4cc   : > { %3389 = vmatmul.mubr.f32.gmra.mrb[92].mxu1 %v8663_v53 }
 0x4cd   : > { %5332 = vmatprep.mubr.msk.f32.mxu1 %vm2002_vm7, %v8670_v23  ;;  %6261 = vmatpush1.bf16.msra.mxu1 %v6260_v46 }
 0x4ce   : > { %6262 = vmatprep.subr.bf16.mxu1 %v6772_v32 }
 0x4d0   : > { %3394 = vmatmul.mubr.f32.gmra.mrb[94].mxu1 %v8683_v45 }
 0x4d1   : > { %5333 = vmatprep.mubr.msk.f32.mxu1 %vm2002_vm7, %v8688_v16  ;;  %6264 = vmatpush1.bf16.msra.mxu1 %v6263_v4 }
 0x4d2   : > { %6265 = vmatprep.subr.bf16.mxu1 %v6772_v32 }
 0x4d4   : > { %3399 = vmatmul.mubr.f32.gmra.mrb[96].mxu1 %v8701_v28 }
 0x4d5   : > { %5334 = vmatprep.mubr.msk.f32.mxu1 %vm2002_vm7, %v8708_v37  ;;  %6267 = vmatpush1.bf16.msra.mxu1 %v6266_v40  ;;  %v5417_v40 = vld [vmem:[%s10571_s7 + $0x3e8] sm:$0xff] }
 0x4d6   : > { %6268 = vmatprep.subr.bf16.mxu1 %v6772_v32  ;;  %v5389_v32 = vld [vmem:[%s10571_s7 + $0x308] sm:$0xff]  ;;  %v6299_v35 = vpack.c.bf16 %v5419_v13, %v5417_v40  ;;  %v5466_v40 = vld [vmem:[%s10571_s7 + $0x570] sm:$0xff] }
 0x4d7   : > { %v5433_v13 = vld [vmem:[%s10571_s7 + $0x468] sm:$0xff] }
 0x4d8   : > { %3404 = vmatmul.mubr.f32.gmra.mrb[98].mxu1 %v8721_v41 }
 0x4d9   : > { %5335 = vmatprep.mubr.msk.f32.mxu1 %vm2002_vm7, %v8726_v26  ;;  %6270 = vmatpush1.bf16.msra.mxu1 %v6269_v22  ;;  %v5416_v22 = vld [vmem:[%s10571_s7 + $0x3e0] sm:$0xff] }
 0x4dc   : > { %3409 = vmatmul.mubr.f32.gmra.mrb[100].mxu1 %v8739_v60 }
 0x4dd   : > { %5336 = vmatprep.mubr.msk.f32.mxu1 %vm2002_vm7, %v8746_v7 }
 0x4e0   : > { %3414 = vmatmul.mubr.f32.gmra.mrb[102].mxu1 %v8753_v15 }
 0x4e1   : > { %5337 = vmatprep.mubr.msk.f32.mxu1 %vm2002_vm7, %v8758_v58 }
 0x4e4   : > { %3419 = vmatmul.mubr.f32.gmra.mrb[104].mxu1 %v8765_v11 }
 0x4e5   : > { %5338 = vmatprep.mubr.msk.f32.mxu1 %vm2002_vm7, %v8772_v8 }
 0x4e8   : > { %3424 = vmatmul.mubr.f32.gmra.mrb[106].mxu1 %v8778_v50 }
 0x4e9   : > { %5339 = vmatprep.mubr.msk.f32.mxu1 %vm2002_vm7, %v8783_v63 }
 0x4ec   : > { %3429 = vmatmul.mubr.f32.gmra.mrb[108].mxu1 %v8789_v47 }
 0x4ed   : > { %5340 = vmatprep.mubr.msk.f32.mxu1 %vm2002_vm7, %v8796_v55 }
 0x4f0   : > { %3434 = vmatmul.mubr.f32.gmra.mrb[110].mxu1 %v8802_v25 }
 0x4f1   : > { %5341 = vmatprep.mubr.msk.f32.mxu1 %vm2002_vm7, %v8807_v54 }
 0x4f4   : > { %3439 = vmatmul.mubr.f32.gmra.mrb[112].mxu1 %v8813_v49 }
 0x4f5   : > { %5342 = vmatprep.mubr.msk.f32.mxu1 %vm2002_vm7, %v8820_v44 }
 0x4f8   : > { %3444 = vmatmul.mubr.f32.gmra.mrb[114].mxu1 %v8826_v3 }
 0x4f9   : > { %5367 = vmatprep.mubr.msk.f32.mxu1 %vm2002_vm7, %v8574_v0  ;;  %v5391_v0 = vld [vmem:[%s10571_s7 + $0x318] sm:$0xff] }
 0x4fc   : > { %3545 = vmatmul.mubr.f32.vlgmr.msra.gmra.mrb[116].mxu1 %v8587_v59  ;;  %v6271_v59 = vpack.c.bf16 %v5391_v0, %v5389_v32  ;;  %v3002_v0 = vsel %vm2002_vm7, %v8517_v30, %v2953_v20  ;;  %v5452_v30 = vld [vmem:[%s10571_s7 + $0x500] sm:$0xff]  ;;  %v5467_v20 = vld [vmem:[%s10571_s7 + $0x578] sm:$0xff] }
 0x4fd   : > { %5368 = vmatprep.mubr.msk.f32.mxu1 %vm2002_vm7, %v8594_v34  ;;  %v5388_v34 = vld [vmem:[%s10571_s7 + $0x300] sm:$0xff] }
 0x4fe   : > { %6272 = vmatprep.subr.bf16.mxu1 %v6271_v59 }
 0x500   : > { %3550 = vmatmul.mubr.f32.gmra.mrb[118].mxu1 %v8607_v24  ;;  %v5390_v24 = vld [vmem:[%s10571_s7 + $0x310] sm:$0xff] }
 0x501   : > { %5369 = vmatprep.mubr.msk.f32.mxu1 %vm2002_vm7, %v8612_v17  ;;  %v6273_v17 = vpack.c.bf16 %v5390_v24, %v5388_v34  ;;  %v2955_v34 = vpop.permute.xlu1 %2954 }
 0x503   : > { %6274 = vmatpush1.bf16.msra.mxu1 %v6273_v17  ;;  %v2883_v17 = vsel %vm464_vm1, %v2859_v48, %v2847_v6 }
 0x504   : > { %3555 = vmatmul.mubr.f32.gmra.mrb[120].mxu1 %v8625_v43  ;;  %v5393_v43 = vld [vmem:[%s10571_s7 + $0x328] sm:$0xff] }
 0x505   : > { %5370 = vmatprep.mubr.msk.f32.mxu1 %vm2002_vm7, %v8632_v52  ;;  %v5395_v52 = vld [vmem:[%s10571_s7 + $0x338] sm:$0xff] }
 0x508   : > { %3560 = vmatmul.mubr.f32.gmra.mrb[122].mxu1 %v8645_v62  ;;  %v6275_v62 = vpack.c.bf16 %v5395_v52, %v5393_v43  ;;  %v5453_v43 = vld [vmem:[%s10571_s7 + $0x508] sm:$0xff]  ;;  %v5455_v52 = vld [vmem:[%s10571_s7 + $0x518] sm:$0xff] }
 0x509   : > { %5371 = vmatprep.mubr.msk.f32.mxu1 %vm2002_vm7, %v8650_v42  ;;  %v5392_v42 = vld [vmem:[%s10571_s7 + $0x320] sm:$0xff] }
 0x50a   : > { %6276 = vmatprep.subr.bf16.mxu1 %v6275_v62  ;;  %v6335_v62 = vpack.c.bf16 %v5455_v52, %v5453_v43  ;;  %v5469_v43 = vld [vmem:[%s10571_s7 + $0x588] sm:$0xff]  ;;  %v5471_v52 = vld [vmem:[%s10571_s7 + $0x598] sm:$0xff] }
 0x50c   : > { %3565 = vmatmul.mubr.f32.gmra.mrb[124].mxu1 %v8663_v53  ;;  %v5394_v53 = vld [vmem:[%s10571_s7 + $0x330] sm:$0xff]  ;;  %6336 = vmatprep.subr.bf16.mxu0 %v6335_v62  ;;  %v5468_v62 = vld [vmem:[%s10571_s7 + $0x580] sm:$0xff] }
 0x50d   : > { %5372 = vmatprep.mubr.msk.f32.mxu1 %vm2002_vm7, %v8670_v23  ;;  %v6277_v23 = vpack.c.bf16 %v5394_v53, %v5392_v42  ;;  %v5454_v42 = vld [vmem:[%s10571_s7 + $0x510] sm:$0xff]  ;;  %v5421_v53 = vld [vmem:[%s10571_s7 + $0x408] sm:$0xff] }
 0x50f   : > { %6278 = vmatpush1.bf16.msra.mxu1 %v6277_v23  ;;  %v5423_v23 = vld [vmem:[%s10571_s7 + $0x418] sm:$0xff] }
 0x510   : > { %3570 = vmatmul.mubr.f32.gmra.mrb[126].mxu1 %v8683_v45  ;;  %v5397_v45 = vld [vmem:[%s10571_s7 + $0x348] sm:$0xff] }
 0x511   : > { %5373 = vmatprep.mubr.msk.f32.mxu1 %vm2002_vm7, %v8688_v16  ;;  %v5399_v16 = vld [vmem:[%s10571_s7 + $0x358] sm:$0xff] }
 0x514   : > { %3575 = vmatmul.mubr.f32.gmra.mrb[128].mxu1 %v8701_v28  ;;  %v6279_v28 = vpack.c.bf16 %v5399_v16, %v5397_v45  ;;  %v6337_v45 = vpack.c.bf16 %v5454_v42, %v5452_v30  ;;  %v6303_v16 = vpack.c.bf16 %v5423_v23, %v5421_v53  ;;  %v6351_v30 = vpack.c.bf16 %v5471_v52, %v5469_v43  ;;  %v5470_v42 = vld [vmem:[%s10571_s7 + $0x590] sm:$0xff]  ;;  %v5437_v53 = vld [vmem:[%s10571_s7 + $0x488] sm:$0xff] }
 0x515   : > { %5374 = vmatprep.mubr.msk.f32.mxu1 %vm2002_vm7, %v8708_v37  ;;  %v5396_v37 = vld [vmem:[%s10571_s7 + $0x340] sm:$0xff]  ;;  %v6353_v23 = vpack.c.bf16 %v5470_v42, %v5468_v62  ;;  %v3793_v62 = vld [vmem:[%s10571_s7 + $0x8] sm:$0xff]  ;;  %v3795_v42 = vld [vmem:[%s10571_s7 + $0x18] sm:$0xff] }
 0x516   : > { %6280 = vmatprep.subr.bf16.mxu1 %v6279_v28  ;;  %v5420_v28 = vld [vmem:[%s10571_s7 + $0x400] sm:$0xff]  ;;  %6338 = vmatpush1.bf16.msra.mxu0 %v6337_v45  ;;  %v5439_v45 = vld [vmem:[%s10571_s7 + $0x498] sm:$0xff] }
 0x518   : > { %3580 = vmatmul.mubr.f32.gmra.mrb[130].mxu1 %v8721_v41  ;;  %v5398_v41 = vld [vmem:[%s10571_s7 + $0x350] sm:$0xff] }
 0x519   : > { %5375 = vmatprep.mubr.msk.f32.mxu1 %vm2002_vm7, %v8726_v26 }
 0x51c   : > { %3585 = vmatmul.mubr.f32.gmra.mrb[132].mxu1 %v8739_v60  ;;  %v6281_v60 = vpack.c.bf16 %v5398_v41, %v5396_v37  ;;  %v5422_v37 = vld [vmem:[%s10571_s7 + $0x410] sm:$0xff] }
 0x51d   : > { %5376 = vmatprep.mubr.msk.f32.mxu1 %vm2002_vm7, %v8746_v7 }
 0x51e   : > { %6282 = vmatpush1.bf16.msra.mxu1 %v6281_v60  ;;  %v3003_v60 = vsel %vm2002_vm7, %v8515_v18, %v2955_v34  ;;  %v5458_v18 = vld [vmem:[%s10571_s7 + $0x530] sm:$0xff] }
 0x520   : > { %3590 = vmatmul.mubr.f32.gmra.mrb[134].mxu1 %v8753_v15  ;;  %v5401_v15 = vld [vmem:[%s10571_s7 + $0x368] sm:$0xff] }
 0x521   : > { %5377 = vmatprep.mubr.msk.f32.mxu1 %vm2002_vm7, %v8758_v58  ;;  %v5403_v58 = vld [vmem:[%s10571_s7 + $0x378] sm:$0xff] }
 0x524   : > { %3595 = vmatmul.mubr.f32.gmra.mrb[136].mxu1 %v8765_v11  ;;  %v6283_v11 = vpack.c.bf16 %v5403_v58, %v5401_v15  ;;  %v5457_v58 = vld [vmem:[%s10571_s7 + $0x528] sm:$0xff] }
 0x525   : > { %5378 = vmatprep.mubr.msk.f32.mxu1 %vm2002_vm7, %v8772_v8  ;;  %v5400_v8 = vld [vmem:[%s10571_s7 + $0x360] sm:$0xff] }
 0x526   : > { %6284 = vmatprep.subr.bf16.mxu1 %v6283_v11  ;;  %v5459_v11 = vld [vmem:[%s10571_s7 + $0x538] sm:$0xff] }
 0x528   : > { %3600 = vmatmul.mubr.f32.gmra.mrb[138].mxu1 %v8778_v50  ;;  %v5402_v50 = vld [vmem:[%s10571_s7 + $0x370] sm:$0xff] }
 0x529   : > { %5379 = vmatprep.mubr.msk.f32.mxu1 %vm2002_vm7, %v8783_v63 }
 0x52c   : > { %3605 = vmatmul.mubr.f32.gmra.mrb[140].mxu1 %v8789_v47  ;;  %v6285_v47 = vpack.c.bf16 %v5402_v50, %v5400_v8  ;;  %v5456_v8 = vld [vmem:[%s10571_s7 + $0x520] sm:$0xff]  ;;  %v6339_v50 = vpack.c.bf16 %v5459_v11, %v5457_v58  ;;  %v5473_v58 = vld [vmem:[%s10571_s7 + $0x5a8] sm:$0xff]  ;;  %v5475_v11 = vld [vmem:[%s10571_s7 + $0x5b8] sm:$0xff] }
 0x52d   : > { %5380 = vmatprep.mubr.msk.f32.mxu1 %vm2002_vm7, %v8796_v55 }
 0x52e   : > { %6286 = vmatpush1.bf16.msra.mxu1 %v6285_v47  ;;  %v5425_v47 = vld [vmem:[%s10571_s7 + $0x428] sm:$0xff]  ;;  %6340 = vmatprep.subr.bf16.mxu0 %v6339_v50  ;;  %v5472_v50 = vld [vmem:[%s10571_s7 + $0x5a0] sm:$0xff] }
 0x52f   : > { %v9077_v26 = vpop.f32.mrb[36].mxu1 }
 0x530   : > { %v3181_v7 = vpop.f32.mrb[37].mxu1  ;;  %3610 = vmatmul.mubr.f32.gmra.mrb[142].mxu1 %v8802_v25  ;;  %v5405_v25 = vld [vmem:[%s10571_s7 + $0x388] sm:$0xff] }
 0x531   : > { %5381 = vmatprep.mubr.msk.f32.mxu1 %vm2002_vm7, %v8807_v54  ;;  %v5407_v54 = vld [vmem:[%s10571_s7 + $0x398] sm:$0xff]  ;;  %v6305_v7 = vpack.c.bf16 %v5422_v37, %v5420_v28  ;;  %v5438_v28 = vld [vmem:[%s10571_s7 + $0x490] sm:$0xff] }
 0x532   : > { %v6287_v27 = vpack.c.bf16 %v5407_v54, %v5405_v25  ;;  %v6341_v25 = vpack.c.bf16 %v5458_v18, %v5456_v8  ;;  %v6355_v8 = vpack.c.bf16 %v5475_v11, %v5473_v58  ;;  %v5474_v18 = vld [vmem:[%s10571_s7 + $0x5b0] sm:$0xff] }
 0x533   : > { %v9094_v63 = vpop.f32.mrb[38].mxu1 }
 0x534   : > { %v3186_v55 = vpop.f32.mrb[39].mxu1  ;;  %3615 = vmatmul.mubr.f32.gmra.mrb[144].mxu1 %v8813_v49  ;;  %v5406_v49 = vld [vmem:[%s10571_s7 + $0x390] sm:$0xff]  ;;  %6288 = vmatprep.subr.bf16.mxu1 %v6287_v27  ;;  %v5424_v27 = vld [vmem:[%s10571_s7 + $0x420] sm:$0xff] }
 0x535   : > { %5382 = vmatprep.mubr.msk.f32.mxu1 %vm2002_vm7, %v8820_v44  ;;  %v6289_v9 = vpack.c.bf16 %v5406_v49, %v5404_v21  ;;  %v5409_v44 = vld [vmem:[%s10571_s7 + $0x3a8] sm:$0xff]  ;;  %v5427_v55 = vld [vmem:[%s10571_s7 + $0x438] sm:$0xff]  ;;  %v5426_v21 = vld [vmem:[%s10571_s7 + $0x430] sm:$0xff]  ;;  %6342 = vmatpush1.bf16.msra.mxu0 %v6341_v25 }
 0x536   : > { %v6291_v14 = vpack.c.bf16 %v5411_v10, %v5409_v44  ;;  %v6307_v54 = vpack.c.bf16 %v5427_v55, %v5425_v47  ;;  %v5461_v44 = vld [vmem:[%s10571_s7 + $0x548] sm:$0xff]  ;;  %v5463_v10 = vld [vmem:[%s10571_s7 + $0x558] sm:$0xff]  ;;  %v6357_v55 = vpack.c.bf16 %v5474_v18, %v5472_v50 }
 0x537   : > { %v9111_v51 = vpop.f32.mrb[40].mxu1  ;;  %6290 = vmatpush1.bf16.msra.mxu1 %v6289_v9  ;;  %v6309_v9 = vpack.c.bf16 %v5426_v21, %v5424_v27  ;;  %v5441_v47 = vld [vmem:[%s10571_s7 + $0x4a8] sm:$0xff]  ;;  %v5443_v25 = vld [vmem:[%s10571_s7 + $0x4b8] sm:$0xff]  ;;  %v5442_v27 = vld [vmem:[%s10571_s7 + $0x4b0] sm:$0xff] }
 0x538   : > { %v3191_v19 = vpop.f32.mrb[41].mxu1  ;;  %3620 = vmatmul.mubr.f32.gmra.mrb[146].mxu1 %v8826_v3  ;;  %v5410_v3 = vld [vmem:[%s10571_s7 + $0x3b0] sm:$0xff]  ;;  %6292 = vmatprep.subr.bf16.mxu1 %v6291_v14  ;;  %v5460_v14 = vld [vmem:[%s10571_s7 + $0x540] sm:$0xff] }
 0x539   : > { %5383 = vmatprep.mubr.msk.f32.mxu1 %vm2002_vm7, %v8831_v57  ;;  %v6293_v36 = vpack.c.bf16 %v5410_v3, %v5408_v56  ;;  %v5413_v57 = vld [vmem:[%s10571_s7 + $0x3c8] sm:$0xff]  ;;  %v6343_v56 = vpack.c.bf16 %v5463_v10, %v5461_v44  ;;  %v5462_v3 = vld [vmem:[%s10571_s7 + $0x550] sm:$0xff] }
 0x53a   : > { %v6295_v46 = vpack.c.bf16 %v5415_v39, %v5413_v57  ;;  %v5428_v57 = vld [vmem:[%s10571_s7 + $0x440] sm:$0xff]  ;;  %v5430_v39 = vld [vmem:[%s10571_s7 + $0x450] sm:$0xff]  ;;  %v5477_v10 = vld [vmem:[%s10571_s7 + $0x5c8] sm:$0xff] }
 0x53b   : > { %v9128_v5 = vpop.f32.mrb[42].mxu1  ;;  %6294 = vmatpush1.bf16.msra.mxu1 %v6293_v36  ;;  %v5429_v36 = vld [vmem:[%s10571_s7 + $0x448] sm:$0xff]  ;;  %6344 = vmatprep.subr.bf16.mxu0 %v6343_v56 }
 0x53c   : > { %v3196_v12 = vpop.f32.mrb[43].mxu1  ;;  %3625 = vmatmul.mubr.f32.gmra.mrb[148].mxu1 %v8837_v33  ;;  %v5414_v33 = vld [vmem:[%s10571_s7 + $0x3d0] sm:$0xff]  ;;  %6296 = vmatprep.subr.bf16.mxu1 %v6295_v46 }
 0x53d   : > { %5384 = vmatprep.mubr.msk.f32.mxu1 %vm2002_vm7, %v8844_v38  ;;  %v6297_v4 = vpack.c.bf16 %v5414_v33, %v5412_v31  ;;  %v2871_v38 = vsel %vm464_vm1, %v2847_v6, %v2859_v48  ;;  %v5431_v48 = vld [vmem:[%s10571_s7 + $0x458] sm:$0xff]  ;;  %v6345_v6 = vpack.c.bf16 %v5462_v3, %v5460_v14  ;;  %v6313_v31 = vpack.c.bf16 %v5430_v39, %v5428_v57  ;;  %v5476_v3 = vld [vmem:[%s10571_s7 + $0x5c0] sm:$0xff]  ;;  %v5446_v39 = vld [vmem:[%s10571_s7 + $0x4d0] sm:$0xff] }
 0x53e   : > { %v6311_v12 = vpack.c.bf16 %v5431_v48, %v5429_v36  ;;  %v5479_v14 = vld [vmem:[%s10571_s7 + $0x5d8] sm:$0xff]  ;;  %v5478_v36 = vld [vmem:[%s10571_s7 + $0x5d0] sm:$0xff]  ;;  %v5445_v48 = vld [vmem:[%s10571_s7 + $0x4c8] sm:$0xff] }
 0x53f   : > { %v9147_v61 = vpop.f32.mrb[44].mxu1  ;;  %6298 = vmatpush1.bf16.msra.mxu1 %v6297_v4  ;;  %6346 = vmatpush1.bf16.msra.mxu0 %v6345_v6  ;;  %v5465_v4 = vld [vmem:[%s10571_s7 + $0x568] sm:$0xff]  ;;  %v6359_v56 = vpack.c.bf16 %v5479_v14, %v5477_v10  ;;  %v6361_v6 = vpack.c.bf16 %v5478_v36, %v5476_v3  ;;  %v5444_v57 = vld [vmem:[%s10571_s7 + $0x4c0] sm:$0xff] }
 0x540   : > { %v3201_v29 = vpop.f32.mrb[45].mxu1  ;;  %3630 = vmatmul.mubr.f32.gmra.mrb[150].mxu1 %v8856_v1  ;;  %v5418_v1 = vld [vmem:[%s10571_s7 + $0x3f0] sm:$0xff]  ;;  %6300 = vmatprep.subr.bf16.mxu1 %v6299_v35 }
 0x541   : > { %5385 = vmatprep.mubr.msk.f32.mxu1 %vm2002_vm7, %v2871_v38  ;;  %v6301_v59 = vpack.c.bf16 %v5418_v1, %v5416_v22  ;;  %v6347_v29 = vpack.c.bf16 %v5467_v20, %v5465_v4  ;;  %v5464_v38 = vld [vmem:[%s10571_s7 + $0x560] sm:$0xff]  ;;  %v5435_v22 = vld [vmem:[%s10571_s7 + $0x478] sm:$0xff]  ;;  %v6329_v4 = vpack.c.bf16 %v5446_v39, %v5444_v57 }
 0x542   : > { %v6349_v35 = vpack.c.bf16 %v5466_v40, %v5464_v38  ;;  %v5432_v1 = vld [vmem:[%s10571_s7 + $0x460] sm:$0xff]  ;;  %v6315_v34 = vpack.c.bf16 %v5435_v22, %v5433_v13  ;;  %v5483_v38 = vld [vmem:[%s10571_s7 + $0x5f8] sm:$0xff]  ;;  %v5449_v22 = vld [vmem:[%s10571_s7 + $0x4e8] sm:$0xff] }
 0x543   : > { %v9165_v32 = vpop.f32.mrb[46].mxu1  ;;  %6302 = vmatpush1.bf16.msra.mxu1 %v6301_v59  ;;  %6348 = vmatprep.subr.bf16.mxu0 %v6347_v29  ;;  %v5481_v29 = vld [vmem:[%s10571_s7 + $0x5e8] sm:$0xff]  ;;  %v5480_v13 = vld [vmem:[%s10571_s7 + $0x5e0] sm:$0xff] }
 0x544   : > { %v3206_v24 = vpop.f32.mrb[47].mxu1  ;;  %3635 = vmatmul.mubr.f32.gmra.mrb[152].mxu1 %v3002_v0  ;;  %6304 = vmatprep.subr.bf16.mxu1 %v6303_v16  ;;  %v5434_v0 = vld [vmem:[%s10571_s7 + $0x470] sm:$0xff]  ;;  %v5436_v16 = vld [vmem:[%s10571_s7 + $0x480] sm:$0xff]  ;;  %v6363_v40 = vpack.c.bf16 %v5483_v38, %v5481_v29 }
 0x545   : > { %5386 = vmatprep.mubr.msk.f32.mxu1 %vm2002_vm7, %v2883_v17  ;;  %v6317_v24 = vpack.c.bf16 %v5434_v0, %v5432_v1  ;;  %6350 = vmatpush1.bf16.msra.mxu0 %v6349_v35  ;;  %v5482_v35 = vld [vmem:[%s10571_s7 + $0x5f0] sm:$0xff]  ;;  %v5451_v0 = vld [vmem:[%s10571_s7 + $0x4f8] sm:$0xff] }
 0x546   : > { %6352 = vmatprep.subr.bf16.mxu0 %v6351_v30  ;;  %v6365_v1 = vpack.c.bf16 %v5482_v35, %v5480_v13  ;;  %v6331_v43 = vpack.c.bf16 %v5451_v0, %v5449_v22 }
 0x547   : > { %v9196_v41 = vpop.f32.mrb[48].mxu1  ;;  %6306 = vmatpush1.bf16.msra.mxu1 %v6305_v7  ;;  %v6321_v7 = vpack.c.bf16 %v5438_v28, %v5436_v16 }
 0x548   : > { %v3211_v15 = vpop.f32.mrb[49].mxu1  ;;  %3640 = vmatmul.mubr.f32.gmra.mrb[154].mxu1 %v3003_v60  ;;  %6308 = vmatprep.subr.bf16.mxu1 %v6307_v54  ;;  %v6319_v60 = vpack.c.bf16 %v5439_v45, %v5437_v53  ;;  %v5440_v54 = vld [vmem:[%s10571_s7 + $0x4a0] sm:$0xff]  ;;  %v6367_v53 = vpack.c.bf16 %v3795_v42, %v3793_v62 }
 0x549   : > { %6354 = vmatpush1.bf16.msra.mxu0 %v6353_v23  ;;  %v10574_v23 = vmov 0.0  }
 0x54a   : > { %6356 = vmatprep.subr.bf16.mxu0 %v6355_v8  ;;  %4194 = vmatprep.mubr.f32.mxu0 %v10574_v23 }
 0x54b   : > { %v9224_v49 = vpop.f32.mrb[50].mxu1  ;;  %6310 = vmatpush1.bf16.msra.mxu1 %v6309_v9  ;;  %v6323_v9 = vpack.c.bf16 %v5443_v25, %v5441_v47 }
 0x54c   : > { %v3216_v19 = vpop.f32.mrb[51].mxu1  ;;  %6312 = vmatprep.subr.bf16.mxu1 %v6311_v12  ;;  %v5447_v12 = vld [vmem:[%s10571_s7 + $0x4d8] sm:$0xff] }
 0x54d   : > { %v6325_v19 = vpack.c.bf16 %v5442_v27, %v5440_v54  ;;  %6358 = vmatpush1.bf16.msra.mxu0 %v6357_v55 }
 0x54e   : > { %6360 = vmatprep.subr.bf16.mxu0 %v6359_v56 }
 0x54f   : > { %v9250_v46 = vpop.f32.mrb[52].mxu1  ;;  %6314 = vmatpush1.bf16.msra.mxu1 %v6313_v31 }
 0x550   : > { %v3221_v33 = vpop.f32.mrb[53].mxu1  ;;  %6316 = vmatprep.subr.bf16.mxu1 %v6315_v34  ;;  %v5448_v34 = vld [vmem:[%s10571_s7 + $0x4e0] sm:$0xff] }
 0x551   : > { %v6327_v33 = vpack.c.bf16 %v5447_v12, %v5445_v48  ;;  %6362 = vmatpush1.bf16.msra.mxu0 %v6361_v6 }
 0x552   : > { %6364 = vmatprep.subr.bf16.mxu0 %v6363_v40 }
 0x553   : > { %v9276_v59 = vpop.f32.mrb[54].mxu1  ;;  %6318 = vmatpush1.bf16.msra.mxu1 %v6317_v24  ;;  %v5450_v24 = vld [vmem:[%s10571_s7 + $0x4f0] sm:$0xff] }
 0x554   : > { %v3226_v17 = vpop.f32.mrb[55].mxu1  ;;  %6320 = vmatprep.subr.bf16.mxu1 %v6319_v60  ;;  %v6333_v52 = vpack.c.bf16 %v5450_v24, %v5448_v34 }
 0x555   : > { %6366 = vmatpush1.bf16.msra.mxu0 %v6365_v1 }
 0x556   : > { %6368 = vmatprep.subr.bf16.mxu0 %v6367_v53 }
 0x557   : > { %v9302_v37 = vpop.f32.mrb[56].mxu1  ;;  %6322 = vmatpush1.bf16.msra.mxu1 %v6321_v7 }
 0x558   : > { %v3231_v15 = vpop.f32.mrb[57].mxu1  ;;  %6324 = vmatprep.subr.bf16.mxu1 %v6323_v9 }
 0x55b   : > { %v9328_v21 = vpop.f32.mrb[58].mxu1  ;;  %6326 = vmatpush1.bf16.msra.mxu1 %v6325_v19 }
 0x55c   : > { %v3236_v44 = vpop.f32.mrb[59].mxu1  ;;  %6328 = vmatprep.subr.bf16.mxu1 %v6327_v33 }
 0x55f   : > { %v9354_v31 = vpop.f32.mrb[60].mxu1  ;;  %6330 = vmatpush1.bf16.msra.mxu1 %v6329_v4 }
 0x560   : > { %v3241_v20 = vpop.f32.mrb[61].mxu1  ;;  %6332 = vmatprep.subr.bf16.mxu1 %v6331_v43 }
 0x563   : > { %v9380_v17 = vpop.f32.mrb[62].mxu1  ;;  %6334 = vmatpush1.bf16.msra.mxu1 %v6333_v52 }
 0x564   : > { %v3246_v30 = vpop.f32.mrb[63].mxu1 }
 0x567   : > { %v3249_v45 = vpop.f32.mrb[64].mxu1 }
 0x568   : > { %v3251_v16 = vpop.f32.mrb[65].mxu1 }
 0x56b   : > { %v3254_v28 = vpop.f32.mrb[66].mxu1 }
 0x56c   : > { %v3256_v60 = vpop.f32.mrb[67].mxu1 }
 0x56f   : > { %v3259_v7 = vpop.f32.mrb[68].mxu1 }
 0x570   : > { %v3261_v15 = vpop.f32.mrb[69].mxu1 }
 0x573   : > { %v3264_v58 = vpop.f32.mrb[70].mxu1 }
 0x574   : > { %v3266_v11 = vpop.f32.mrb[71].mxu1 }
 0x577   : > { %v3269_v8 = vpop.f32.mrb[72].mxu1 }
 0x578   : > { %v3271_v50 = vpop.f32.mrb[73].mxu1 }
 0x57b   : > { %v3274_v18 = vpop.f32.mrb[74].mxu1 }
 0x57c   : > { %v3276_v47 = vpop.f32.mrb[75].mxu1 }
 0x57f   : > { %v3350_v55 = vpop.f32.mrb[76].mxu1 }
 0x580   : > { %v3351_v25 = vadd.f32 %v3350_v55, %v9077_v26  ;;  %v3352_v54 = vpop.f32.mrb[77].mxu1 }
 0x583   : > { %v3355_v27 = vpop.f32.mrb[78].mxu1 }
 0x584   : > { %v3356_v9 = vadd.f32 %v3355_v27, %v9094_v63  ;;  %v3357_v19 = vpop.f32.mrb[79].mxu1 }
 0x587   : > { %v3360_v44 = vpop.f32.mrb[80].mxu1 }
 0x588   : > { %v3361_v10 = vadd.f32 %v3360_v44, %v9111_v51  ;;  %v3362_v14 = vpop.f32.mrb[81].mxu1 }
 0x58b   : > { %v3365_v56 = vpop.f32.mrb[82].mxu1 }
 0x58c   : > { %v3366_v3 = vadd.f32 %v3365_v56, %v9128_v5  ;;  %v3367_v36 = vpop.f32.mrb[83].mxu1 }
 0x58f   : > { %v3370_v48 = vpop.f32.mrb[84].mxu1 }
 0x590   : > { %v9394_v6 = vadd.f32 %v3370_v48, %v9147_v61  ;;  %v3372_v12 = vpop.f32.mrb[85].mxu1 }
 0x593   : > { %v3375_v57 = vpop.f32.mrb[86].mxu1 }
 0x594   : > { %v9397_v26 = vadd.f32 %v3375_v57, %v9165_v32  ;;  %v3377_v39 = vpop.f32.mrb[87].mxu1 }
 0x597   : > { %v3380_v63 = vpop.f32.mrb[88].mxu1 }
 0x598   : > { %v9400_v33 = vadd.f32 %v3380_v63, %v9196_v41  ;;  %v3382_v51 = vpop.f32.mrb[89].mxu1 }
 0x59b   : > { %v3385_v4 = vpop.f32.mrb[90].mxu1 }
 0x59c   : > { %v9403_v20 = vadd.f32 %v3385_v4, %v9224_v49  ;;  %v3387_v5 = vpop.f32.mrb[91].mxu1 }
 0x59f   : > { %v3390_v29 = vpop.f32.mrb[92].mxu1 }
 0x5a0   : > { %v9406_v61 = vadd.f32 %v3390_v29, %v9250_v46  ;;  %v3392_v38 = vpop.f32.mrb[93].mxu1 }
 0x5a3   : > { %v3395_v40 = vpop.f32.mrb[94].mxu1 }
 0x5a4   : > { %v9409_v32 = vadd.f32 %v3395_v40, %v9276_v59  ;;  %v3397_v13 = vpop.f32.mrb[95].mxu1  ;;  %v3797_v40 = vld [vmem:[%s10571_s7 + $0x28] sm:$0xff] }
 0x5a5   : > { %v3799_v13 = vld [vmem:[%s10571_s7 + $0x38] sm:$0xff] }
 0x5a7   : > { %v3400_v35 = vpop.f32.mrb[96].mxu1 }
 0x5a8   : > { %v9412_v41 = vadd.f32 %v3400_v35, %v9302_v37  ;;  %v3402_v22 = vpop.f32.mrb[97].mxu1 }
 0x5ab   : > { %v3405_v1 = vpop.f32.mrb[98].mxu1 }
 0x5ac   : > { %v9415_v49 = vadd.f32 %v3405_v1, %v9328_v21  ;;  %v3407_v0 = vpop.f32.mrb[99].mxu1 }
 0x5af   : > { %v3410_v34 = vpop.f32.mrb[100].mxu1 }
 0x5b0   : > { %v9418_v46 = vadd.f32 %v3410_v34, %v9354_v31  ;;  %v3412_v24 = vpop.f32.mrb[101].mxu1  ;;  %v3796_v34 = vld [vmem:[%s10571_s7 + $0x20] sm:$0xff] }
 0x5b1   : > { %v3798_v24 = vld [vmem:[%s10571_s7 + $0x30] sm:$0xff] }
 0x5b3   : > { %v3415_v43 = vpop.f32.mrb[102].mxu1 }
 0x5b4   : > { %v9421_v59 = vadd.f32 %v3415_v43, %v9380_v17  ;;  %v3417_v52 = vpop.f32.mrb[103].mxu1 }
 0x5b7   : > { %v3420_v30 = vpop.f32.mrb[104].mxu1 }
 0x5b8   : > { %v9423_v62 = vadd.f32 %v3420_v30, %v3249_v45  ;;  %v3422_v37 = vpop.f32.mrb[105].mxu1 }
 0x5bb   : > { %v3425_v42 = vpop.f32.mrb[106].mxu1 }
 0x5bc   : > { %v9425_v53 = vadd.f32 %v3425_v42, %v3254_v28  ;;  %v3427_v21 = vpop.f32.mrb[107].mxu1  ;;  %v6371_v42 = vpack.c.bf16 %v3799_v13, %v3797_v40  ;;  %v3809_v40 = vld [vmem:[%s10571_s7 + $0x88] sm:$0xff]  ;;  %v3811_v13 = vld [vmem:[%s10571_s7 + $0x98] sm:$0xff] }
 0x5bd   : > { %v3801_v21 = vld [vmem:[%s10571_s7 + $0x48] sm:$0xff] }
 0x5bf   : > { %v3430_v16 = vpop.f32.mrb[108].mxu1 }
 0x5c0   : > { %v9427_v60 = vadd.f32 %v3430_v16, %v3259_v7  ;;  %v3432_v15 = vpop.f32.mrb[109].mxu1  ;;  %v3803_v16 = vld [vmem:[%s10571_s7 + $0x58] sm:$0xff] }
 0x5c3   : > { %v3435_v31 = vpop.f32.mrb[110].mxu1 }
 0x5c4   : > { %v9429_v11 = vadd.f32 %v3435_v31, %v3264_v58  ;;  %v3437_v50 = vpop.f32.mrb[111].mxu1 }
 0x5c5   : > { %v6373_v50 = vpack.c.bf16 %v3798_v24, %v3796_v34  ;;  %v6383_v24 = vpack.c.bf16 %v3811_v13, %v3809_v40 }
 0x5c7   : > { %v3440_v47 = vpop.f32.mrb[112].mxu1 }
 0x5c8   : > { %v9431_v17 = vadd.f32 %v3440_v47, %v3269_v8  ;;  %v3442_v55 = vpop.f32.mrb[113].mxu1  ;;  %v9442_v8 = vld [vmem:[%s10570_s6] ss:$0 sm:$0xff] }
 0x5c9   : > { %v3800_v47 = vld [vmem:[%s10571_s7 + $0x40] sm:$0xff]  ;;  %v3802_v55 = vld [vmem:[%s10571_s7 + $0x50] sm:$0xff] }
 0x5cb   : > { %v3445_v54 = vpop.f32.mrb[114].mxu1 }
 0x5cc   : > { %v9433_v45 = vadd.f32 %v3445_v54, %v3274_v18  ;;  %v3447_v27 = vpop.f32.mrb[115].mxu1 }
 0x5cd   : > { %v6375_v27 = vpack.c.bf16 %v3803_v16, %v3801_v21 }
 0x5cf   : > { %v3546_v19 = vpop.f32.mrb[116].mxu1 }
 0x5d0   : > { %v9435_v28 = vadd.f32 %v3546_v19, %v3351_v25  ;;  %v3548_v44 = vpop.f32.mrb[117].mxu1 }
 0x5d3   : > { %v3551_v14 = vpop.f32.mrb[118].mxu1 }
 0x5d4   : > { %v9437_v7 = vadd.f32 %v3551_v14, %v3356_v9  ;;  %v3553_v56 = vpop.f32.mrb[119].mxu1  ;;  %v3792_v9 = vld [vmem:[%s10571_s7] sm:$0xff] }
 0x5d7   : > { %v3556_v36 = vpop.f32.mrb[120].mxu1 }
 0x5d8   : > { %v3647_v58 = vadd.f32 %v3556_v36, %v3361_v10  ;;  %v3558_v48 = vpop.f32.mrb[121].mxu1  ;;  %v3794_v10 = vld [vmem:[%s10571_s7 + $0x10] sm:$0xff] }
 0x5d9   : > { %v6369_v38 = vpack.c.bf16 %v3794_v10, %v3792_v9  ;;  %v3805_v48 = vld [vmem:[%s10571_s7 + $0x68] sm:$0xff]  ;;  %v3804_v9 = vld [vmem:[%s10571_s7 + $0x60] sm:$0xff]  ;;  %v3806_v10 = vld [vmem:[%s10571_s7 + $0x70] sm:$0xff] }
 0x5da   : > { %v3674_v18 = vadd.f32 %v9442_v8, %v3647_v58  ;;  %v6377_v58 = vpack.c.bf16 %v3802_v55, %v3800_v47  ;;  %v3815_v47 = vld [vmem:[%s10571_s7 + $0xb8] sm:$0xff] }
 0x5db   : > { %v3561_v12 = vpop.f32.mrb[122].mxu1 }
 0x5dc   : > { %v3648_v57 = vadd.f32 %v3561_v12, %v3366_v3  ;;  %v3563_v39 = vpop.f32.mrb[123].mxu1  ;;  %v9445_v25 = vmax.f32 %v3674_v18, 0.0  ;;  %v3807_v18 = vld [vmem:[%s10571_s7 + $0x78] sm:$0xff] }
 0x5de   : > { %v3675_v63 = vadd.f32 %v9442_v8, %v3648_v57  ;;  %v3713_v3 = vrot.slane %v9445_v25, 1  ;;  %v3753_v1 = vrot.slane %v9445_v25, 2 }
 0x5df   : > { %v3566_v51 = vpop.f32.mrb[124].mxu1 }
 0x5e0   : > { %v9454_v4 = vmax.f32 %v3675_v63, 0.0  ;;  %v3649_v5 = vadd.f32 %v3566_v51, %v9394_v6  ;;  %v3568_v29 = vpop.f32.mrb[125].mxu1 }
 0x5e2   : > { %v3676_v35 = vadd.f32 %v9442_v8, %v3649_v5  ;;  %v3723_v22 = vrot.slane %v9454_v4, 1  ;;  %v3763_v6 = vrot.slane %v9454_v4, 2 }
 0x5e3   : > { %v3571_v0 = vpop.f32.mrb[126].mxu1 }
 0x5e4   : > { %v3650_v43 = vadd.f32 %v3571_v0, %v9397_v26  ;;  %v3573_v52 = vpop.f32.mrb[127].mxu1  ;;  %v9477_v30 = vsel %vm399_vm2, %v3713_v3, %v3723_v22  ;;  %v9481_v37 = vsel %vm464_vm1, %v3753_v1, %v3763_v6  ;;  %v9489_v15 = vmax.f32 %v3676_v35, 0.0  ;;  %v3810_v0 = vld [vmem:[%s10571_s7 + $0x90] sm:$0xff] }
 0x5e5   : > { %4049 = vmatprep.mubr.f32.mxu1 %v9477_v30  ;;  %4195 = vmatmul.mubr.f32.vlgmr.msra.gmra.mrb[28].mxu0 %v9481_v37  ;;  %v9497_v31 = vsel %vm399_vm2, %v3723_v22, %v3713_v3  ;;  %v9512_v56 = vsel %vm464_vm1, %v3763_v6, %v3753_v1  ;;  %v6381_v1 = vpack.c.bf16 %v3806_v10, %v3804_v9  ;;  %v3808_v6 = vld [vmem:[%s10571_s7 + $0x80] sm:$0xff] }
 0x5e6   : > { %v3677_v26 = vadd.f32 %v9442_v8, %v3650_v43  ;;  %6370 = vmatpush1.bf16.msra.mxu0 %v6369_v38  ;;  %4050 = vmatmul.mubr.f32.vlgmr.msra.gmra.mrb[156].mxu1 %v9445_v25  ;;  %v3714_v36 = vrot.slane %v9489_v15, 1  ;;  %v3754_v57 = vrot.slane %v9489_v15, 2  ;;  %v6379_v38 = vpack.c.bf16 %v3807_v18, %v3805_v48 }
 0x5e7   : > { %v3576_v54 = vpop.f32.mrb[128].mxu1  ;;  %4055 = vmatprep.mubr.f32.mxu1 %v9497_v31  ;;  %4200 = vmatprep.mubr.f32.mxu0 %v10574_v23 }
 0x5e8   : > { %v9507_v19 = vmax.f32 %v3677_v26, 0.0  ;;  %v3651_v44 = vadd.f32 %v3576_v54, %v9400_v33  ;;  %v3578_v14 = vpop.f32.mrb[129].mxu1  ;;  %6372 = vmatprep.subr.bf16.mxu0 %v6371_v42  ;;  %v6385_v26 = vpack.c.bf16 %v3810_v0, %v3808_v6 }
 0x5e9   : > { %4201 = vmatmul.mubr.f32.gmra.mrb[30].mxu0 %v9512_v56  ;;  %v3812_v14 = vld [vmem:[%s10571_s7 + $0xa0] sm:$0xff] }
 0x5ea   : > { %v3678_v33 = vadd.f32 %v9442_v8, %v3651_v44  ;;  %6374 = vmatpush1.bf16.msra.mxu0 %v6373_v50  ;;  %4056 = vmatmul.mubr.f32.gmra.mrb[158].mxu1 %v9454_v4  ;;  %v3724_v12 = vrot.slane %v9507_v19, 1  ;;  %v3764_v39 = vrot.slane %v9507_v19, 2  ;;  %v3813_v50 = vld [vmem:[%s10571_s7 + $0xa8] sm:$0xff] }
 0x5eb   : > { %v3581_v63 = vpop.f32.mrb[130].mxu1  ;;  %4204 = vmatprep.mubr.f32.mxu0 %v10574_v23  ;;  %6376 = vmatprep.subr.bf16.mxu0 %v6375_v27 }
 0x5ec   : > { %v3652_v51 = vadd.f32 %v3581_v63, %v9403_v20  ;;  %v3583_v5 = vpop.f32.mrb[131].mxu1  ;;  %v9537_v29 = vsel %vm399_vm2, %v3714_v36, %v3724_v12  ;;  %v9541_v3 = vsel %vm464_vm1, %v3754_v57, %v3764_v39  ;;  %v9549_v35 = vmax.f32 %v3678_v33, 0.0 }
 0x5ed   : > { %4059 = vmatprep.mubr.f32.mxu1 %v9537_v29  ;;  %4205 = vmatmul.mubr.f32.gmra.mrb[32].mxu0 %v9541_v3  ;;  %v9557_v22 = vsel %vm399_vm2, %v3724_v12, %v3714_v36  ;;  %v9572_v21 = vsel %vm464_vm1, %v3764_v39, %v3754_v57  ;;  %v3814_v36 = vld [vmem:[%s10571_s7 + $0xb0] sm:$0xff]  ;;  %v6387_v12 = vpack.c.bf16 %v3815_v47, %v3813_v50  ;;  %v3817_v57 = vld [vmem:[%s10571_s7 + $0xc8] sm:$0xff]  ;;  %v3819_v39 = vld [vmem:[%s10571_s7 + $0xd8] sm:$0xff] }
 0x5ee   : > { %v3679_v20 = vadd.f32 %v9442_v8, %v3652_v51  ;;  %6378 = vmatpush1.bf16.msra.mxu0 %v6377_v58  ;;  %4060 = vmatmul.mubr.f32.gmra.mrb[160].mxu1 %v9489_v15  ;;  %v3715_v16 = vrot.slane %v9549_v35, 1  ;;  %v3755_v54 = vrot.slane %v9549_v35, 2  ;;  %v6389_v10 = vpack.c.bf16 %v3814_v36, %v3812_v14  ;;  %v3816_v51 = vld [vmem:[%s10571_s7 + $0xc0] sm:$0xff]  ;;  %v3818_v5 = vld [vmem:[%s10571_s7 + $0xd0] sm:$0xff]  ;;  %v3825_v36 = vld [vmem:[%s10571_s7 + $0x108] sm:$0xff] }
 0x5ef   : > { %v3586_v34 = vpop.f32.mrb[132].mxu1  ;;  %4065 = vmatprep.mubr.f32.mxu1 %v9557_v22  ;;  %4210 = vmatprep.mubr.f32.mxu0 %v10574_v23  ;;  %v6391_v40 = vpack.c.bf16 %v3819_v39, %v3817_v57  ;;  %v3820_v47 = vld [vmem:[%s10571_s7 + $0xe0] sm:$0xff] }
 0x5f0   : > { %v9567_v43 = vmax.f32 %v3679_v20, 0.0  ;;  %v3653_v52 = vadd.f32 %v3586_v34, %v9406_v61  ;;  %v3588_v42 = vpop.f32.mrb[133].mxu1  ;;  %6380 = vmatprep.subr.bf16.mxu0 %v6379_v38  ;;  %v6393_v34 = vpack.c.bf16 %v3818_v5, %v3816_v51  ;;  %v3824_v39 = vld [vmem:[%s10571_s7 + $0x100] sm:$0xff] }
 0x5f1   : > { %4211 = vmatmul.mubr.f32.gmra.mrb[34].mxu0 %v9572_v21 }
 0x5f2   : > { %v3680_v61 = vadd.f32 %v9442_v8, %v3653_v52  ;;  %6382 = vmatpush1.bf16.msra.mxu0 %v6381_v1  ;;  %4066 = vmatmul.mubr.f32.gmra.mrb[162].mxu1 %v9507_v19  ;;  %v3725_v55 = vrot.slane %v9567_v43, 1  ;;  %v3765_v27 = vrot.slane %v9567_v43, 2  ;;  %v3823_v52 = vld [vmem:[%s10571_s7 + $0xf8] sm:$0xff] }
 0x5f3   : > { %v3591_v44 = vpop.f32.mrb[134].mxu1  ;;  %4214 = vmatprep.mubr.f32.mxu0 %v10574_v23  ;;  %6384 = vmatprep.subr.bf16.mxu0 %v6383_v24  ;;  %v3821_v24 = vld [vmem:[%s10571_s7 + $0xe8] sm:$0xff] }
 0x5f4   : > { %v3654_v58 = vadd.f32 %v3591_v44, %v9409_v32  ;;  %v3593_v48 = vpop.f32.mrb[135].mxu1  ;;  %v9597_v18 = vsel %vm399_vm2, %v3715_v16, %v3725_v55  ;;  %v9601_v33 = vsel %vm464_vm1, %v3755_v54, %v3765_v27  ;;  %v9609_v63 = vmax.f32 %v3680_v61, 0.0  ;;  %v3822_v61 = vld [vmem:[%s10571_s7 + $0xf0] sm:$0xff] }
 0x5f5   : > { %4069 = vmatprep.mubr.f32.mxu1 %v9597_v18  ;;  %4215 = vmatmul.mubr.f32.gmra.mrb[36].mxu0 %v9601_v33  ;;  %v9617_v9 = vsel %vm399_vm2, %v3725_v55, %v3715_v16  ;;  %v9632_v6 = vsel %vm464_vm1, %v3765_v27, %v3755_v54  ;;  %v6395_v14 = vpack.c.bf16 %v3823_v52, %v3821_v24  ;;  %v3831_v24 = vld [vmem:[%s10571_s7 + $0x138] sm:$0xff] }
 0x5f6   : > { %v3681_v32 = vadd.f32 %v9442_v8, %v3654_v58  ;;  %6386 = vmatpush1.bf16.msra.mxu0 %v6385_v26  ;;  %4070 = vmatmul.mubr.f32.gmra.mrb[164].mxu1 %v9549_v35  ;;  %v3716_v0 = vrot.slane %v9609_v63, 1  ;;  %v3756_v16 = vrot.slane %v9609_v63, 2  ;;  %v3827_v58 = vld [vmem:[%s10571_s7 + $0x118] sm:$0xff]  ;;  %v6397_v57 = vpack.c.bf16 %v3822_v61, %v3820_v47 }
 0x5f7   : > { %v3596_v38 = vpop.f32.mrb[136].mxu1  ;;  %4075 = vmatprep.mubr.f32.mxu1 %v9617_v9  ;;  %4220 = vmatprep.mubr.f32.mxu0 %v10574_v23  ;;  %v6399_v51 = vpack.c.bf16 %v3827_v58, %v3825_v36  ;;  %v3833_v36 = vld [vmem:[%s10571_s7 + $0x148] sm:$0xff]  ;;  %v3835_v58 = vld [vmem:[%s10571_s7 + $0x158] sm:$0xff] }
 0x5f8   : > { %v9627_v13 = vmax.f32 %v3681_v32, 0.0  ;;  %v3655_v20 = vadd.f32 %v3596_v38, %v9412_v41  ;;  %v3598_v1 = vpop.f32.mrb[137].mxu1  ;;  %6388 = vmatprep.subr.bf16.mxu0 %v6387_v12  ;;  %v3826_v32 = vld [vmem:[%s10571_s7 + $0x110] sm:$0xff] }
 0x5f9   : > { %4221 = vmatmul.mubr.f32.gmra.mrb[38].mxu0 %v9632_v6 }
 0x5fa   : > { %v3682_v41 = vadd.f32 %v9442_v8, %v3655_v20  ;;  %6390 = vmatpush1.bf16.msra.mxu0 %v6389_v10  ;;  %4076 = vmatmul.mubr.f32.gmra.mrb[166].mxu1 %v9567_v43  ;;  %v3726_v42 = vrot.slane %v9627_v13, 1  ;;  %v3766_v26 = vrot.slane %v9627_v13, 2 }
 0x5fb   : > { %v3601_v50 = vpop.f32.mrb[138].mxu1  ;;  %4224 = vmatprep.mubr.f32.mxu0 %v10574_v23  ;;  %6392 = vmatprep.subr.bf16.mxu0 %v6391_v40 }
 0x5fc   : > { %v3656_v55 = vadd.f32 %v3601_v50, %v9415_v49  ;;  %v3603_v54 = vpop.f32.mrb[139].mxu1  ;;  %v9657_v27 = vsel %vm399_vm2, %v3716_v0, %v3726_v42  ;;  %v9661_v44 = vsel %vm464_vm1, %v3756_v16, %v3766_v26  ;;  %v9669_v48 = vmax.f32 %v3682_v41, 0.0  ;;  %v3830_v50 = vld [vmem:[%s10571_s7 + $0x130] sm:$0xff] }
 0x5fd   : > { %4079 = vmatprep.mubr.f32.mxu1 %v9657_v27  ;;  %4225 = vmatmul.mubr.f32.gmra.mrb[40].mxu0 %v9661_v44  ;;  %v9677_v12 = vsel %vm399_vm2, %v3726_v42, %v3716_v0  ;;  %v9692_v20 = vsel %vm464_vm1, %v3766_v26, %v3756_v16  ;;  %v6401_v0 = vpack.c.bf16 %v3826_v32, %v3824_v39  ;;  %v3828_v26 = vld [vmem:[%s10571_s7 + $0x120] sm:$0xff] }
 0x5fe   : > { %v3683_v49 = vadd.f32 %v9442_v8, %v3656_v55  ;;  %6394 = vmatpush1.bf16.msra.mxu0 %v6393_v34  ;;  %4080 = vmatmul.mubr.f32.gmra.mrb[168].mxu1 %v9609_v63  ;;  %v3717_v1 = vrot.slane %v9669_v48, 1  ;;  %v3829_v34 = vld [vmem:[%s10571_s7 + $0x128] sm:$0xff]  ;;  %v3757_v41 = vrot.slane %v9669_v48, 2  ;;  %v6405_v39 = vpack.c.bf16 %v3830_v50, %v3828_v26  ;;  %v3832_v32 = vld [vmem:[%s10571_s7 + $0x140] sm:$0xff] }
 0x5ff   : > { %v3606_v10 = vpop.f32.mrb[140].mxu1  ;;  %4085 = vmatprep.mubr.f32.mxu1 %v9677_v12  ;;  %4230 = vmatprep.mubr.f32.mxu0 %v10574_v23 }
 0x600   : > { %v9687_v5 = vmax.f32 %v3683_v49, 0.0  ;;  %v3657_v38 = vadd.f32 %v3606_v10, %v9418_v46  ;;  %v3608_v40 = vpop.f32.mrb[141].mxu1  ;;  %6396 = vmatprep.subr.bf16.mxu0 %v6395_v14  ;;  %v6403_v14 = vpack.c.bf16 %v3831_v24, %v3829_v34  ;;  %v3834_v10 = vld [vmem:[%s10571_s7 + $0x150] sm:$0xff] }
 0x601   : > { %4231 = vmatmul.mubr.f32.gmra.mrb[42].mxu0 %v9692_v20 }
 0x602   : > { %v3684_v46 = vadd.f32 %v9442_v8, %v3657_v38  ;;  %6398 = vmatpush1.bf16.msra.mxu0 %v6397_v57  ;;  %4086 = vmatmul.mubr.f32.gmra.mrb[170].mxu1 %v9627_v13  ;;  %v3727_v52 = vrot.slane %v9687_v5, 1  ;;  %v3767_v42 = vrot.slane %v9687_v5, 2  ;;  %v6407_v38 = vpack.c.bf16 %v3835_v58, %v3833_v36 }
 0x603   : > { %v3611_v16 = vpop.f32.mrb[142].mxu1  ;;  %4234 = vmatprep.mubr.f32.mxu0 %v10574_v23  ;;  %6400 = vmatprep.subr.bf16.mxu0 %v6399_v51 }
 0x604   : > { %v3658_v47 = vadd.f32 %v3611_v16, %v9421_v59  ;;  %v3613_v61 = vpop.f32.mrb[143].mxu1  ;;  %v9717_v55 = vsel %vm399_vm2, %v3717_v1, %v3727_v52  ;;  %v9721_v54 = vsel %vm464_vm1, %v3757_v41, %v3767_v42  ;;  %v9729_v49 = vmax.f32 %v3684_v46, 0.0  ;;  %v3839_v16 = vld [vmem:[%s10571_s7 + $0x178] sm:$0xff] }
 0x605   : > { %4089 = vmatprep.mubr.f32.mxu1 %v9717_v55  ;;  %4235 = vmatmul.mubr.f32.gmra.mrb[44].mxu0 %v9721_v54  ;;  %v9737_v57 = vsel %vm399_vm2, %v3727_v52, %v3717_v1  ;;  %v9752_v34 = vsel %vm464_vm1, %v3767_v42, %v3757_v41  ;;  %v6409_v46 = vpack.c.bf16 %v3834_v10, %v3832_v32  ;;  %v3837_v52 = vld [vmem:[%s10571_s7 + $0x168] sm:$0xff]  ;;  %v3838_v61 = vld [vmem:[%s10571_s7 + $0x170] sm:$0xff]  ;;  %v3843_v10 = vld [vmem:[%s10571_s7 + $0x198] sm:$0xff] }
 0x606   : > { %v3685_v59 = vadd.f32 %v9442_v8, %v3658_v47  ;;  %6402 = vmatpush1.bf16.msra.mxu0 %v6401_v0  ;;  %4090 = vmatmul.mubr.f32.gmra.mrb[172].mxu1 %v9669_v48  ;;  %v3718_v24 = vrot.slane %v9729_v49, 1  ;;  %v3758_v42 = vrot.slane %v9729_v49, 2  ;;  %v3836_v47 = vld [vmem:[%s10571_s7 + $0x160] sm:$0xff]  ;;  %v3841_v32 = vld [vmem:[%s10571_s7 + $0x188] sm:$0xff] }
 0x607   : > { %v3616_v51 = vpop.f32.mrb[144].mxu1  ;;  %4095 = vmatprep.mubr.f32.mxu1 %v9737_v57  ;;  %4240 = vmatprep.mubr.f32.mxu0 %v10574_v23 }
 0x608   : > { %v9747_v40 = vmax.f32 %v3685_v59, 0.0  ;;  %v3659_v1 = vadd.f32 %v3616_v51, %v9423_v62  ;;  %v3618_v0 = vpop.f32.mrb[145].mxu1  ;;  %6404 = vmatprep.subr.bf16.mxu0 %v6403_v14 }
 0x609   : > { %4241 = vmatmul.mubr.f32.gmra.mrb[46].mxu0 %v9752_v34  ;;  %v3840_v0 = vld [vmem:[%s10571_s7 + $0x180] sm:$0xff] }
 0x60a   : > { %v3686_v62 = vadd.f32 %v9442_v8, %v3659_v1  ;;  %6406 = vmatpush1.bf16.msra.mxu0 %v6405_v39  ;;  %4096 = vmatmul.mubr.f32.gmra.mrb[174].mxu1 %v9687_v5  ;;  %v3728_v41 = vrot.slane %v9747_v40, 1  ;;  %v3768_v26 = vrot.slane %v9747_v40, 2  ;;  %v6411_v39 = vpack.c.bf16 %v3839_v16, %v3837_v52  ;;  %v3842_v52 = vld [vmem:[%s10571_s7 + $0x190] sm:$0xff] }
 0x60b   : > { %v3621_v50 = vpop.f32.mrb[146].mxu1  ;;  %4244 = vmatprep.mubr.f32.mxu0 %v10574_v23  ;;  %6408 = vmatprep.subr.bf16.mxu0 %v6407_v38  ;;  %v6413_v1 = vpack.c.bf16 %v3838_v61, %v3836_v47  ;;  %v6417_v61 = vpack.c.bf16 %v3842_v52, %v3840_v0 }
 0x60c   : > { %v3660_v14 = vadd.f32 %v3621_v50, %v9425_v53  ;;  %v3623_v36 = vpop.f32.mrb[147].mxu1  ;;  %v9777_v58 = vsel %vm399_vm2, %v3718_v24, %v3728_v41  ;;  %v9781_v59 = vsel %vm464_vm1, %v3758_v42, %v3768_v26  ;;  %v9789_v51 = vmax.f32 %v3686_v62, 0.0 }
 0x60d   : > { %4099 = vmatprep.mubr.f32.mxu1 %v9777_v58  ;;  %4245 = vmatmul.mubr.f32.gmra.mrb[48].mxu0 %v9781_v59  ;;  %v9797_v38 = vsel %vm399_vm2, %v3728_v41, %v3718_v24  ;;  %v9812_v50 = vsel %vm464_vm1, %v3768_v26, %v3758_v42  ;;  %v3847_v36 = vld [vmem:[%s10571_s7 + $0x1b8] sm:$0xff] }
 0x60e   : > { %v3687_v53 = vadd.f32 %v9442_v8, %v3660_v14  ;;  %6410 = vmatpush1.bf16.msra.mxu0 %v6409_v46  ;;  %4100 = vmatmul.mubr.f32.gmra.mrb[176].mxu1 %v9729_v49  ;;  %v6415_v46 = vpack.c.bf16 %v3843_v10, %v3841_v32  ;;  %10582 = vst [vmem:[#allocation2_spill] sm:$0xff] %v9812_v50  ;;  %v3719_v47 = vrot.slane %v9789_v51, 1  ;;  %v3845_v14 = vld [vmem:[%s10571_s7 + $0x1a8] sm:$0xff]  ;;  %v3759_v26 = vrot.slane %v9789_v51, 2  ;;  %v3844_v10 = vld [vmem:[%s10571_s7 + $0x1a0] sm:$0xff] }
 0x60f   : > { %v3626_v16 = vpop.f32.mrb[148].mxu1  ;;  %4105 = vmatprep.mubr.f32.mxu1 %v9797_v38  ;;  %4250 = vmatprep.mubr.f32.mxu0 %v10574_v23 }
 0x610   : > { %v9807_v62 = vmax.f32 %v3687_v53, 0.0  ;;  %v3661_v24 = vadd.f32 %v3626_v16, %v9427_v60  ;;  %v3628_v41 = vpop.f32.mrb[149].mxu1  ;;  %6412 = vmatprep.subr.bf16.mxu0 %v6411_v39  ;;  %v3846_v53 = vld [vmem:[%s10571_s7 + $0x1b0] sm:$0xff] }
 0x611   : > { %4251 = vmatmul.mubr.f32.gmra.mrb[50].mxu0 %v9812_v50  ;;  %v3851_v41 = vld [vmem:[%s10571_s7 + $0x1d8] sm:$0xff]  ;;  %v3853_v50 = vld [vmem:[%s10571_s7 + $0x1e8] sm:$0xff] }
 0x612   : > { %v3688_v60 = vadd.f32 %v9442_v8, %v3661_v24  ;;  %6414 = vmatpush1.bf16.msra.mxu0 %v6413_v1  ;;  %4106 = vmatmul.mubr.f32.gmra.mrb[178].mxu1 %v9747_v40  ;;  %v3729_v42 = vrot.slane %v9807_v62, 1  ;;  %v3769_v39 = vrot.slane %v9807_v62, 2  ;;  %v3849_v24 = vld [vmem:[%s10571_s7 + $0x1c8] sm:$0xff] }
 0x613   : > { %v3631_v32 = vpop.f32.mrb[150].mxu1  ;;  %4254 = vmatprep.mubr.f32.mxu0 %v10574_v23  ;;  %6416 = vmatprep.subr.bf16.mxu0 %v6415_v46  ;;  %v6419_v46 = vpack.c.bf16 %v3847_v36, %v3845_v14  ;;  %v6421_v36 = vpack.c.bf16 %v3846_v53, %v3844_v10  ;;  %v3850_v23 = vld [vmem:[%s10571_s7 + $0x1d0] sm:$0xff] }
 0x614   : > { %v3662_v1 = vadd.f32 %v3631_v32, %v9429_v11  ;;  %v3633_v0 = vpop.f32.mrb[151].mxu1  ;;  %v9837_v52 = vsel %vm399_vm2, %v3719_v47, %v3729_v42  ;;  %v9841_v16 = vsel %vm464_vm1, %v3759_v26, %v3769_v39  ;;  %v3673_v11 = vadd.f32 %v9442_v8, %v9437_v7  ;;  %v3848_v7 = vld [vmem:[%s10571_s7 + $0x1c0] sm:$0xff] }
 0x615   : > { %10583 = vst [vmem:[#allocation3_spill] sm:$0xff] %v9841_v16  ;;  %4109 = vmatprep.mubr.f32.mxu1 %v9837_v52  ;;  %4255 = vmatmul.mubr.f32.gmra.mrb[52].mxu0 %v9841_v16  ;;  %v9853_v32 = vmax.f32 %v3688_v60, 0.0  ;;  %v9859_v14 = vsel %vm399_vm2, %v3729_v42, %v3719_v47  ;;  %v3672_v16 = vadd.f32 %v9442_v8, %v9435_v28 }
 0x616   : > { %v3689_v0 = vadd.f32 %v9442_v8, %v3662_v1  ;;  %6418 = vmatpush1.bf16.msra.mxu0 %v6417_v61  ;;  %4110 = vmatmul.mubr.f32.gmra.mrb[180].mxu1 %v9789_v51  ;;  %v10584_v1 = vmov 0.0   ;;  %v6423_v61 = vpack.c.bf16 %v3851_v41, %v3849_v24  ;;  %v9878_v53 = vsel %vm464_vm1, %v3769_v39, %v3759_v26  ;;  %v3855_v24 = vld [vmem:[%s10571_s7 + $0x1f8] sm:$0xff] }
 0x617   : > { %v3636_v60 = vpop.f32.mrb[152].mxu1  ;;  %4115 = vmatprep.mubr.f32.mxu1 %v9859_v14  ;;  %4260 = vmatprep.mubr.f32.mxu0 %v10584_v1  ;;  %v9886_v28 = vmax.f32 %v3673_v11, 0.0  ;;  %v3720_v8 = vrot.slane %v9853_v32, 1  ;;  %v3760_v39 = vrot.slane %v9853_v32, 2  ;;  %v6427_v11 = vpack.c.bf16 %v3855_v24, %v3853_v50 }
 0x618   : > { %v9871_v47 = vmax.f32 %v3689_v0, 0.0  ;;  %v9874_v42 = vadd.f32 %v3636_v60, %v9431_v17  ;;  %v3638_v10 = vpop.f32.mrb[153].mxu1  ;;  %6420 = vmatprep.subr.bf16.mxu0 %v6419_v46  ;;  %v6425_v17 = vpack.c.bf16 %v3850_v23, %v3848_v7  ;;  %v3852_v23 = vld [vmem:[%s10571_s7 + $0x1e0] sm:$0xff]  ;;  %v3854_v0 = vld [vmem:[%s10571_s7 + $0x1f0] sm:$0xff] }
 0x619   : > { %4261 = vmatmul.mubr.f32.gmra.mrb[54].mxu0 %v9878_v53  ;;  %v6429_v24 = vpack.c.bf16 %v3854_v0, %v3852_v23  ;;  %v3861_v23 = vld [vmem:[%s10571_s7 + $0x228] sm:$0xff]  ;;  %v3863_v0 = vld [vmem:[%s10571_s7 + $0x238] sm:$0xff] }
 0x61a   : > { %6422 = vmatpush1.bf16.msra.mxu0 %v6421_v36  ;;  %4116 = vmatmul.mubr.f32.gmra.mrb[182].mxu1 %v9807_v62  ;;  %v3730_v26 = vrot.slane %v9871_v47, 1  ;;  %v3770_v46 = vrot.slane %v9871_v47, 2  ;;  %v9901_v36 = vmax.f32 %v3672_v16, 0.0  ;;  %v3859_v16 = vld [vmem:[%s10571_s7 + $0x218] sm:$0xff] }
 0x61b   : > { %v3641_v41 = vpop.f32.mrb[154].mxu1  ;;  %4264 = vmatprep.mubr.f32.mxu0 %v10584_v1  ;;  %6424 = vmatprep.subr.bf16.mxu0 %v6423_v61  ;;  %v3857_v61 = vld [vmem:[%s10571_s7 + $0x208] sm:$0xff] }
 0x61c   : > { %v9904_v7 = vadd.f32 %v3641_v41, %v9433_v45  ;;  %v3643_v60 = vpop.f32.mrb[155].mxu1  ;;  %v9908_v10 = vsel %vm399_vm2, %v3720_v8, %v3730_v26  ;;  %v9912_v50 = vsel %vm464_vm1, %v3760_v39, %v3770_v46  ;;  %v9925_v45 = vsel %vm399_vm2, %v3730_v26, %v3720_v8 }
 0x61d   : > { %10585 = vst [vmem:[#allocation4_spill] sm:$0xff] %v9908_v10  ;;  %4119 = vmatprep.mubr.f32.mxu1 %v9908_v10  ;;  %4265 = vmatmul.mubr.f32.gmra.mrb[56].mxu0 %v9912_v50  ;;  %v3722_v41 = vrot.slane %v9886_v28, 1  ;;  %v6431_v60 = vpack.c.bf16 %v3859_v16, %v3857_v61  ;;  %v3856_v10 = vld [vmem:[%s10571_s7 + $0x200] sm:$0xff]  ;;  %v9938_v8 = vsel %vm464_vm1, %v3770_v46, %v3760_v39  ;;  %v3712_v26 = vrot.slane %v9901_v36, 1  ;;  %v3862_v16 = vld [vmem:[%s10571_s7 + $0x230] sm:$0xff] }
 0x61e   : > { %6426 = vmatpush1.bf16.msra.mxu0 %v6425_v17  ;;  %4120 = vmatmul.mubr.f32.gmra.mrb[184].mxu1 %v9853_v32  ;;  %v3858_v17 = vld [vmem:[%s10571_s7 + $0x210] sm:$0xff]  ;;  %10586 = vst [vmem:[#allocation5_spill] sm:$0xff] %v9938_v8  ;;  %v6435_v46 = vpack.c.bf16 %v3863_v0, %v3861_v23  ;;  %v3860_v61 = vld [vmem:[%s10571_s7 + $0x220] sm:$0xff] }
 0x61f   : > { %4125 = vmatprep.mubr.f32.mxu1 %v9925_v45  ;;  %4270 = vmatprep.mubr.f32.mxu0 %v10584_v1  ;;  %v6433_v39 = vpack.c.bf16 %v3858_v17, %v3856_v10  ;;  %v3742_v10 = vsel %vm399_vm2, %v3722_v41, %v3712_v26  ;;  %v3864_v23 = vld [vmem:[%s10571_s7 + $0x240] sm:$0xff]  ;;  %v3866_v0 = vld [vmem:[%s10571_s7 + $0x250] sm:$0xff] }
 0x620   : > { %6428 = vmatprep.subr.bf16.mxu0 %v6427_v11  ;;  %v3732_v11 = vsel %vm399_vm2, %v3712_v26, %v3722_v41  ;;  %v3871_v41 = vld [vmem:[%s10571_s7 + $0x278] sm:$0xff] }
 0x621   : > { %4271 = vmatmul.mubr.f32.gmra.mrb[58].mxu0 %v9938_v8  ;;  %v3867_v8 = vld [vmem:[%s10571_s7 + $0x258] sm:$0xff] }
 0x622   : > { %6430 = vmatpush1.bf16.msra.mxu0 %v6429_v24  ;;  %4126 = vmatmul.mubr.f32.gmra.mrb[186].mxu1 %v9871_v47  ;;  %v3865_v24 = vld [vmem:[%s10571_s7 + $0x248] sm:$0xff] }
 0x623   : > { %4339 = vmatprep.mubr.f32.mxu0 %v3732_v11  ;;  %6432 = vmatprep.subr.bf16.mxu0 %v6431_v60  ;;  %v6437_v60 = vpack.c.bf16 %v3862_v16, %v3860_v61  ;;  %v6439_v17 = vpack.c.bf16 %v3867_v8, %v3865_v24  ;;  %v3869_v11 = vld [vmem:[%s10571_s7 + $0x268] sm:$0xff]  ;;  %v6441_v8 = vpack.c.bf16 %v3866_v0, %v3864_v23  ;;  %v3876_v0 = vld [vmem:[%s10571_s7 + $0x2a0] sm:$0xff] }
 0x624   : > { %v6443_v26 = vpack.c.bf16 %v3871_v41, %v3869_v11  ;;  %v3873_v61 = vld [vmem:[%s10571_s7 + $0x288] sm:$0xff]  ;;  %v3878_v11 = vld [vmem:[%s10571_s7 + $0x2b0] sm:$0xff] }
 0x625   : > { %4340 = vmatmul.mubr.f32.vlgmr.msra.gmra.mrb[28].mxu0 %v9901_v36  ;;  %v3881_v41 = vld [vmem:[%s10571_s7 + $0x2c8] sm:$0xff] }
 0x626   : > { %6434 = vmatpush1.bf16.msra.mxu0 %v6433_v39  ;;  %4345 = vmatprep.mubr.f32.mxu0 %v3742_v10  ;;  %v3868_v39 = vld [vmem:[%s10571_s7 + $0x260] sm:$0xff] }
 0x627   : > { %6436 = vmatprep.subr.bf16.mxu0 %v6435_v46  ;;  %v3870_v46 = vld [vmem:[%s10571_s7 + $0x270] sm:$0xff]  ;;  %v3872_v10 = vld [vmem:[%s10571_s7 + $0x280] sm:$0xff] }
 0x628   : > { %v6445_v16 = vpack.c.bf16 %v3870_v46, %v3868_v39  ;;  %v3880_v39 = vld [vmem:[%s10571_s7 + $0x2c0] sm:$0xff]  ;;  %v3882_v46 = vld [vmem:[%s10571_s7 + $0x2d0] sm:$0xff] }
 0x629   : > { %4346 = vmatmul.mubr.f32.gmra.mrb[60].mxu0 %v9886_v28 }
 0x62a   : > { %4349 = vmatprep.mubr.f32.mxu0 %v9477_v30  ;;  %6438 = vmatpush1.bf16.msra.mxu0 %v6437_v60  ;;  %v3875_v30 = vld [vmem:[%s10571_s7 + $0x298] sm:$0xff]  ;;  %v3874_v60 = vld [vmem:[%s10571_s7 + $0x290] sm:$0xff] }
 0x62b   : > { %6440 = vmatprep.subr.bf16.mxu0 %v6439_v17  ;;  %v6447_v24 = vpack.c.bf16 %v3875_v30, %v3873_v61  ;;  %v3877_v17 = vld [vmem:[%s10571_s7 + $0x2a8] sm:$0xff]  ;;  %v3887_v30 = vld [vmem:[%s10571_s7 + $0x2f8] sm:$0xff] }
 0x62c   : > { %v3885_v61 = vld [vmem:[%s10571_s7 + $0x2e8] sm:$0xff] }
 0x62d   : > { %4350 = vmatmul.mubr.f32.gmra.mrb[32].mxu0 %v9445_v25  ;;  %v3879_v25 = vld [vmem:[%s10571_s7 + $0x2b8] sm:$0xff] }
 0x62e   : > { %4355 = vmatprep.mubr.f32.mxu0 %v9497_v31  ;;  %6442 = vmatpush1.bf16.msra.mxu0 %v6441_v8  ;;  %v6449_v31 = vpack.c.bf16 %v3874_v60, %v3872_v10  ;;  %v6451_v23 = vpack.c.bf16 %v3879_v25, %v3877_v17  ;;  %v6453_v8 = vpack.c.bf16 %v3878_v11, %v3876_v0  ;;  %v3884_v10 = vld [vmem:[%s10571_s7 + $0x2e0] sm:$0xff]  ;;  %v3886_v60 = vld [vmem:[%s10571_s7 + $0x2f0] sm:$0xff]  ;;  %v5485_v17 = vld [vmem:[%s10571_s7 + $0x608] sm:$0xff] }
 0x62f   : > { %6444 = vmatprep.subr.bf16.mxu0 %v6443_v26  ;;  %v5487_v25 = vld [vmem:[%s10571_s7 + $0x618] sm:$0xff]  ;;  %v5484_v0 = vld [vmem:[%s10571_s7 + $0x600] sm:$0xff]  ;;  %v5486_v11 = vld [vmem:[%s10571_s7 + $0x610] sm:$0xff] }
 0x631   : > { %4356 = vmatmul.mubr.f32.gmra.mrb[62].mxu0 %v9454_v4  ;;  %v3883_v4 = vld [vmem:[%s10571_s7 + $0x2d8] sm:$0xff] }
 0x632   : > { %4359 = vmatprep.mubr.f32.mxu0 %v9537_v29  ;;  %6446 = vmatpush1.bf16.msra.mxu0 %v6445_v16  ;;  %v6455_v26 = vpack.c.bf16 %v3883_v4, %v3881_v41  ;;  %v6457_v16 = vpack.c.bf16 %v3882_v46, %v3880_v39  ;;  %v3762_v41 = vrot.slane %v9886_v28, 2  ;;  %v5489_v4 = vld [vmem:[%s10571_s7 + $0x628] sm:$0xff]  ;;  %v6465_v39 = vpack.c.bf16 %v5486_v11, %v5484_v0  ;;  %v5488_v28 = vld [vmem:[%s10571_s7 + $0x620] sm:$0xff] }
 0x633   : > { %6448 = vmatprep.subr.bf16.mxu0 %v6447_v24  ;;  %v6459_v24 = vpack.c.bf16 %v3887_v30, %v3885_v61  ;;  %v5490_v61 = vld [vmem:[%s10571_s7 + $0x630] sm:$0xff] }
 0x635   : > { %4360 = vmatmul.mubr.f32.gmra.mrb[36].mxu0 %v9489_v15 }
 0x636   : > { %4365 = vmatprep.mubr.f32.mxu0 %v9557_v22  ;;  %6450 = vmatpush1.bf16.msra.mxu0 %v6449_v31  ;;  %v6461_v31 = vpack.c.bf16 %v3886_v60, %v3884_v10  ;;  %v5492_v60 = vld [vmem:[%s10571_s7 + $0x640] sm:$0xff] }
 0x637   : > { %6452 = vmatprep.subr.bf16.mxu0 %v6451_v23  ;;  %v6463_v23 = vpack.c.bf16 %v5487_v25, %v5485_v17  ;;  %v5494_v17 = vld [vmem:[%s10571_s7 + $0x650] sm:$0xff] }
 0x638   : > { %v6473_v0 = vpack.c.bf16 %v5494_v17, %v5492_v60  ;;  %v5509_v60 = vld [vmem:[%s10571_s7 + $0x6c8] sm:$0xff] }
 0x639   : > { %4366 = vmatmul.mubr.f32.gmra.mrb[64].mxu0 %v9507_v19 }
 0x63a   : > { %4369 = vmatprep.mubr.f32.mxu0 %v9597_v18  ;;  %6454 = vmatpush1.bf16.msra.mxu0 %v6453_v8  ;;  %v5491_v8 = vld [vmem:[%s10571_s7 + $0x638] sm:$0xff] }
 0x63b   : > { %6456 = vmatprep.subr.bf16.mxu0 %v6455_v26  ;;  %v3752_v26 = vrot.slane %v9901_v36, 2  ;;  %v6467_v46 = vpack.c.bf16 %v5491_v8, %v5489_v4  ;;  %v5495_v36 = vld [vmem:[%s10571_s7 + $0x658] sm:$0xff]  ;;  %v5496_v4 = vld [vmem:[%s10571_s7 + $0x660] sm:$0xff]  ;;  %v5501_v8 = vld [vmem:[%s10571_s7 + $0x688] sm:$0xff] }
 0x63d   : > { %4370 = vmatmul.mubr.f32.gmra.mrb[40].mxu0 %v9549_v35  ;;  %v3772_v30 = vsel %vm464_vm1, %v3752_v26, %v3762_v41  ;;  %v3782_v25 = vsel %vm464_vm1, %v3762_v41, %v3752_v26  ;;  %v5498_v41 = vld [vmem:[%s10571_s7 + $0x670] sm:$0xff]  ;;  %v5503_v26 = vld [vmem:[%s10571_s7 + $0x698] sm:$0xff] }
 0x63e   : > { %4375 = vmatprep.mubr.f32.mxu0 %v9617_v9  ;;  %6458 = vmatpush1.bf16.msra.mxu0 %v6457_v16  ;;  %v5493_v16 = vld [vmem:[%s10571_s7 + $0x648] sm:$0xff] }
 0x63f   : > { %6460 = vmatprep.subr.bf16.mxu0 %v6459_v24  ;;  %v6469_v24 = vpack.c.bf16 %v5490_v61, %v5488_v28  ;;  %v6471_v10 = vpack.c.bf16 %v5495_v36, %v5493_v16  ;;  %v5500_v28 = vld [vmem:[%s10571_s7 + $0x680] sm:$0xff]  ;;  %v5502_v61 = vld [vmem:[%s10571_s7 + $0x690] sm:$0xff] }
 0x640   : > { %v6481_v16 = vpack.c.bf16 %v5502_v61, %v5500_v28 }
 0x641   : > { %4376 = vmatmul.mubr.f32.gmra.mrb[66].mxu0 %v9567_v43 }
 0x642   : > { %4379 = vmatprep.mubr.f32.mxu0 %v9657_v27  ;;  %6462 = vmatpush1.bf16.msra.mxu0 %v6461_v31  ;;  %v5497_v31 = vld [vmem:[%s10571_s7 + $0x668] sm:$0xff] }
 0x643   : > { %6464 = vmatprep.subr.bf16.mxu0 %v6463_v23  ;;  %v5499_v23 = vld [vmem:[%s10571_s7 + $0x678] sm:$0xff] }
 0x644   : > { %v6475_v11 = vpack.c.bf16 %v5499_v23, %v5497_v31  ;;  %v5508_v31 = vld [vmem:[%s10571_s7 + $0x6c0] sm:$0xff]  ;;  %v5510_v23 = vld [vmem:[%s10571_s7 + $0x6d0] sm:$0xff] }
 0x645   : > { %4380 = vmatmul.mubr.f32.gmra.mrb[44].mxu0 %v9609_v63 }
 0x646   : > { %4385 = vmatprep.mubr.f32.mxu0 %v9677_v12 }
 0x649   : > { %4386 = vmatmul.mubr.f32.gmra.mrb[68].mxu0 %v9627_v13 }
 0x64a   : > { %4389 = vmatprep.mubr.f32.mxu0 %v9717_v55 }
 0x64d   : > { %4390 = vmatmul.mubr.f32.gmra.mrb[48].mxu0 %v9669_v48 }
 0x64e   : > { %4395 = vmatprep.mubr.f32.mxu0 %v9737_v57 }
 0x651   : > { %4396 = vmatmul.mubr.f32.gmra.mrb[70].mxu0 %v9687_v5 }
 0x652   : > { %4399 = vmatprep.mubr.f32.mxu0 %v9777_v58 }
 0x655   : > { %4400 = vmatmul.mubr.f32.gmra.mrb[52].mxu0 %v9729_v49 }
 0x656   : > { %4405 = vmatprep.mubr.f32.mxu0 %v9797_v38 }
 0x659   : > { %4406 = vmatmul.mubr.f32.gmra.mrb[72].mxu0 %v9747_v40 }
 0x65a   : > { %4409 = vmatprep.mubr.f32.mxu0 %v9837_v52 }
 0x65d   : > { %4410 = vmatmul.mubr.f32.gmra.mrb[56].mxu0 %v9789_v51 }
 0x65e   : > { %4415 = vmatprep.mubr.f32.mxu0 %v9859_v14 }
 0x661   : > { %4416 = vmatmul.mubr.f32.gmra.mrb[74].mxu0 %v9807_v62 }
 0x662   : > { %4484 = vmatprep.mubr.f32.mxu0 %v10584_v1 }
 0x665   : > { %4485 = vmatmul.mubr.f32.vlgmr.msra.gmra.mrb[28].mxu0 %v3772_v30  ;;  %v5505_v30 = vld [vmem:[%s10571_s7 + $0x6a8] sm:$0xff] }
 0x666   : > { %6466 = vmatpush1.bf16.msra.mxu0 %v6465_v39  ;;  %4490 = vmatprep.mubr.f32.mxu0 %v10584_v1  ;;  %v6477_v39 = vpack.c.bf16 %v5498_v41, %v5496_v4  ;;  %v6489_v4 = vpack.c.bf16 %v5510_v23, %v5508_v31 }
 0x667   : > { %6468 = vmatprep.subr.bf16.mxu0 %v6467_v46  ;;  %v6479_v46 = vpack.c.bf16 %v5503_v26, %v5501_v8  ;;  %v5512_v8 = vld [vmem:[%s10571_s7 + $0x6e0] sm:$0xff]  ;;  %v5514_v26 = vld [vmem:[%s10571_s7 + $0x6f0] sm:$0xff] }
 0x668   : > { %v6493_v28 = vpack.c.bf16 %v5514_v26, %v5512_v8 }
 0x669   : > { %4491 = vmatmul.mubr.f32.gmra.mrb[76].mxu0 %v3782_v25 }
 0x66a   : > { %6470 = vmatpush1.bf16.msra.mxu0 %v6469_v24  ;;  %4494 = vmatprep.mubr.f32.mxu0 %v10584_v1  ;;  %v5504_v24 = vld [vmem:[%s10571_s7 + $0x6a0] sm:$0xff] }
 0x66b   : > { %6472 = vmatprep.subr.bf16.mxu0 %v6471_v10  ;;  %v5506_v10 = vld [vmem:[%s10571_s7 + $0x6b0] sm:$0xff] }
 0x66c   : > { %v6485_v17 = vpack.c.bf16 %v5506_v10, %v5504_v24 }
 0x66d   : > { %4495 = vmatmul.mubr.f32.gmra.mrb[32].mxu0 %v9481_v37  ;;  %v5507_v37 = vld [vmem:[%s10571_s7 + $0x6b8] sm:$0xff] }
 0x66e   : > { %6474 = vmatpush1.bf16.msra.mxu0 %v6473_v0  ;;  %4500 = vmatprep.mubr.f32.mxu0 %v10584_v1  ;;  %v6483_v36 = vpack.c.bf16 %v5507_v37, %v5505_v30  ;;  %v5513_v0 = vld [vmem:[%s10571_s7 + $0x6e8] sm:$0xff]  ;;  %v5516_v30 = vld [vmem:[%s10571_s7 + $0x700] sm:$0xff]  ;;  %v5518_v37 = vld [vmem:[%s10571_s7 + $0x710] sm:$0xff] }
 0x66f   : > { %6476 = vmatprep.subr.bf16.mxu0 %v6475_v11  ;;  %v5515_v11 = vld [vmem:[%s10571_s7 + $0x6f8] sm:$0xff]  ;;  %v6497_v24 = vpack.c.bf16 %v5518_v37, %v5516_v30 }
 0x670   : > { %v6491_v41 = vpack.c.bf16 %v5515_v11, %v5513_v0  ;;  %v5524_v0 = vld [vmem:[%s10571_s7 + $0x740] sm:$0xff]  ;;  %v5526_v11 = vld [vmem:[%s10571_s7 + $0x750] sm:$0xff] }
 0x671   : > { %4501 = vmatmul.mubr.f32.gmra.mrb[78].mxu0 %v9512_v56  ;;  %v5511_v56 = vld [vmem:[%s10571_s7 + $0x6d8] sm:$0xff]  ;;  %v6505_v8 = vpack.c.bf16 %v5526_v11, %v5524_v0 }
 0x672   : > { %6478 = vmatpush1.bf16.msra.mxu0 %v6477_v39  ;;  %4504 = vmatprep.mubr.f32.mxu0 %v10584_v1  ;;  %v6487_v25 = vpack.c.bf16 %v5511_v56, %v5509_v60  ;;  %v5517_v39 = vld [vmem:[%s10571_s7 + $0x708] sm:$0xff]  ;;  %v5520_v60 = vld [vmem:[%s10571_s7 + $0x720] sm:$0xff]  ;;  %v5522_v56 = vld [vmem:[%s10571_s7 + $0x730] sm:$0xff] }
 0x673   : > { %6480 = vmatprep.subr.bf16.mxu0 %v6479_v46  ;;  %v5519_v46 = vld [vmem:[%s10571_s7 + $0x718] sm:$0xff]  ;;  %v6501_v31 = vpack.c.bf16 %v5522_v56, %v5520_v60 }
 0x674   : > { %v6495_v61 = vpack.c.bf16 %v5519_v46, %v5517_v39  ;;  %v5528_v39 = vld [vmem:[%s10571_s7 + $0x760] sm:$0xff]  ;;  %v5530_v46 = vld [vmem:[%s10571_s7 + $0x770] sm:$0xff] }
 0x675   : > { %4505 = vmatmul.mubr.f32.gmra.mrb[36].mxu0 %v9541_v3  ;;  %v6509_v30 = vpack.c.bf16 %v5530_v46, %v5528_v39  ;;  %v10587_v39 = vld [vmem:[#allocation2_spill] sm:$0xff] }
 0x676   : > { %6482 = vmatpush1.bf16.msra.mxu0 %v6481_v16  ;;  %4510 = vmatprep.mubr.f32.mxu0 %v10584_v1  ;;  %v5521_v16 = vld [vmem:[%s10571_s7 + $0x728] sm:$0xff] }
 0x677   : > { %6484 = vmatprep.subr.bf16.mxu0 %v6483_v36  ;;  %v5523_v36 = vld [vmem:[%s10571_s7 + $0x738] sm:$0xff] }
 0x678   : > { %v6499_v10 = vpack.c.bf16 %v5523_v36, %v5521_v16  ;;  %v5532_v16 = vld [vmem:[%s10571_s7 + $0x780] sm:$0xff]  ;;  %v5534_v36 = vld [vmem:[%s10571_s7 + $0x790] sm:$0xff] }
 0x679   : > { %4511 = vmatmul.mubr.f32.gmra.mrb[80].mxu0 %v9572_v21  ;;  %v6513_v60 = vpack.c.bf16 %v5534_v36, %v5532_v16  ;;  %v5551_v16 = vld [vmem:[%s10571_s7 + $0x818] sm:$0xff]  ;;  %v10588_v36 = vld [vmem:[#allocation3_spill] sm:$0xff] }
 0x67a   : > { %6486 = vmatpush1.bf16.msra.mxu0 %v6485_v17  ;;  %4514 = vmatprep.mubr.f32.mxu0 %v10584_v1  ;;  %v5525_v17 = vld [vmem:[%s10571_s7 + $0x748] sm:$0xff] }
 0x67b   : > { %6488 = vmatprep.subr.bf16.mxu0 %v6487_v25  ;;  %v5527_v25 = vld [vmem:[%s10571_s7 + $0x758] sm:$0xff] }
 0x67c   : > { %v6503_v23 = vpack.c.bf16 %v5527_v25, %v5525_v17  ;;  %v5536_v17 = vld [vmem:[%s10571_s7 + $0x7a0] sm:$0xff]  ;;  %v5538_v25 = vld [vmem:[%s10571_s7 + $0x7b0] sm:$0xff] }
 0x67d   : > { %4515 = vmatmul.mubr.f32.gmra.mrb[40].mxu0 %v9601_v33  ;;  %v6517_v0 = vpack.c.bf16 %v5538_v25, %v5536_v17  ;;  %v5553_v17 = vld [vmem:[%s10571_s7 + $0x828] sm:$0xff]  ;;  %v5555_v25 = vld [vmem:[%s10571_s7 + $0x838] sm:$0xff] }
 0x67e   : > { %6490 = vmatpush1.bf16.msra.mxu0 %v6489_v4  ;;  %4520 = vmatprep.mubr.f32.mxu0 %v10584_v1  ;;  %v5529_v4 = vld [vmem:[%s10571_s7 + $0x768] sm:$0xff] }
 0x67f   : > { %6492 = vmatprep.subr.bf16.mxu0 %v6491_v41  ;;  %v5531_v41 = vld [vmem:[%s10571_s7 + $0x778] sm:$0xff] }
 0x680   : > { %v6507_v26 = vpack.c.bf16 %v5531_v41, %v5529_v4  ;;  %v5540_v4 = vld [vmem:[%s10571_s7 + $0x7c0] sm:$0xff]  ;;  %v5542_v41 = vld [vmem:[%s10571_s7 + $0x7d0] sm:$0xff] }
 0x681   : > { %4521 = vmatmul.mubr.f32.gmra.mrb[82].mxu0 %v9632_v6  ;;  %v6521_v46 = vpack.c.bf16 %v5542_v41, %v5540_v4  ;;  %v5557_v4 = vld [vmem:[%s10571_s7 + $0x848] sm:$0xff]  ;;  %v5559_v41 = vld [vmem:[%s10571_s7 + $0x858] sm:$0xff] }
 0x682   : > { %6494 = vmatpush1.bf16.msra.mxu0 %v6493_v28  ;;  %4524 = vmatprep.mubr.f32.mxu0 %v10584_v1  ;;  %v5533_v28 = vld [vmem:[%s10571_s7 + $0x788] sm:$0xff] }
 0x683   : > { %6496 = vmatprep.subr.bf16.mxu0 %v6495_v61  ;;  %v5535_v61 = vld [vmem:[%s10571_s7 + $0x798] sm:$0xff] }
 0x684   : > { %v6511_v37 = vpack.c.bf16 %v5535_v61, %v5533_v28  ;;  %v5544_v61 = vld [vmem:[%s10571_s7 + $0x7e0] sm:$0xff] }
 0x685   : > { %4525 = vmatmul.mubr.f32.gmra.mrb[44].mxu0 %v9661_v44 }
 0x686   : > { %6498 = vmatpush1.bf16.msra.mxu0 %v6497_v24  ;;  %4530 = vmatprep.mubr.f32.mxu0 %v10584_v1  ;;  %v5537_v24 = vld [vmem:[%s10571_s7 + $0x7a8] sm:$0xff] }
 0x687   : > { %6500 = vmatprep.subr.bf16.mxu0 %v6499_v10  ;;  %v5539_v10 = vld [vmem:[%s10571_s7 + $0x7b8] sm:$0xff] }
 0x688   : > { %v6515_v56 = vpack.c.bf16 %v5539_v10, %v5537_v24 }
 0x689   : > { %4531 = vmatmul.mubr.f32.gmra.mrb[84].mxu0 %v9692_v20 }
 0x68a   : > { %6502 = vmatpush1.bf16.msra.mxu0 %v6501_v31  ;;  %4534 = vmatprep.mubr.f32.mxu0 %v10584_v1  ;;  %v5541_v31 = vld [vmem:[%s10571_s7 + $0x7c8] sm:$0xff] }
 0x68b   : > { %6504 = vmatprep.subr.bf16.mxu0 %v6503_v23  ;;  %v5543_v23 = vld [vmem:[%s10571_s7 + $0x7d8] sm:$0xff] }
 0x68c   : > { %v6519_v11 = vpack.c.bf16 %v5543_v23, %v5541_v31  ;;  %v6531_v23 = vpack.c.bf16 %v5555_v25, %v5553_v17  ;;  %v5568_v25 = vld [vmem:[%s10571_s7 + $0x8a0] sm:$0xff] }
 0x68d   : > { %4535 = vmatmul.mubr.f32.gmra.mrb[48].mxu0 %v9721_v54 }
 0x68e   : > { %6506 = vmatpush1.bf16.msra.mxu0 %v6505_v8  ;;  %4540 = vmatprep.mubr.f32.mxu0 %v10584_v1  ;;  %v5545_v8 = vld [vmem:[%s10571_s7 + $0x7e8] sm:$0xff] }
 0x68f   : > { %6508 = vmatprep.subr.bf16.mxu0 %v6507_v26  ;;  %v5547_v26 = vld [vmem:[%s10571_s7 + $0x7f8] sm:$0xff] }
 0x690   : > { %v6523_v28 = vpack.c.bf16 %v5547_v26, %v5545_v8  ;;  %v6535_v8 = vpack.c.bf16 %v5559_v41, %v5557_v4  ;;  %v5556_v26 = vld [vmem:[%s10571_s7 + $0x840] sm:$0xff]  ;;  %v5574_v4 = vld [vmem:[%s10571_s7 + $0x8d0] sm:$0xff]  ;;  %v5577_v41 = vld [vmem:[%s10571_s7 + $0x8e8] sm:$0xff] }
 0x691   : > { %4541 = vmatmul.mubr.f32.gmra.mrb[86].mxu0 %v9752_v34 }
 0x692   : > { %6510 = vmatpush1.bf16.msra.mxu0 %v6509_v30  ;;  %4544 = vmatprep.mubr.f32.mxu0 %v10584_v1  ;;  %v5546_v30 = vld [vmem:[%s10571_s7 + $0x7f0] sm:$0xff] }
 0x693   : > { %6512 = vmatprep.subr.bf16.mxu0 %v6511_v37  ;;  %v5549_v37 = vld [vmem:[%s10571_s7 + $0x808] sm:$0xff]  ;;  %v6525_v24 = vpack.c.bf16 %v5546_v30, %v5544_v61  ;;  %v5560_v30 = vld [vmem:[%s10571_s7 + $0x860] sm:$0xff] }
 0x694   : > { %v6527_v10 = vpack.c.bf16 %v5551_v16, %v5549_v37  ;;  %v5562_v37 = vld [vmem:[%s10571_s7 + $0x870] sm:$0xff]  ;;  %v5565_v16 = vld [vmem:[%s10571_s7 + $0x888] sm:$0xff] }
 0x695   : > { %4545 = vmatmul.mubr.f32.gmra.mrb[52].mxu0 %v9781_v59 }
 0x696   : > { %6514 = vmatpush1.bf16.msra.mxu0 %v6513_v60  ;;  %4550 = vmatprep.mubr.f32.mxu0 %v10584_v1  ;;  %v5548_v60 = vld [vmem:[%s10571_s7 + $0x800] sm:$0xff] }
 0x697   : > { %6516 = vmatprep.subr.bf16.mxu0 %v6515_v56  ;;  %v5550_v56 = vld [vmem:[%s10571_s7 + $0x810] sm:$0xff] }
 0x698   : > { %v6529_v31 = vpack.c.bf16 %v5550_v56, %v5548_v60  ;;  %v5566_v60 = vld [vmem:[%s10571_s7 + $0x890] sm:$0xff]  ;;  %v5569_v56 = vld [vmem:[%s10571_s7 + $0x8a8] sm:$0xff] }
 0x699   : > { %4551 = vmatmul.mubr.f32.gmra.mrb[88].mxu0 %v10587_v39 }
 0x69a   : > { %6518 = vmatpush1.bf16.msra.mxu0 %v6517_v0  ;;  %4554 = vmatprep.mubr.f32.mxu0 %v10584_v1  ;;  %v5552_v0 = vld [vmem:[%s10571_s7 + $0x820] sm:$0xff] }
 0x69b   : > { %6520 = vmatprep.subr.bf16.mxu0 %v6519_v11  ;;  %v5554_v11 = vld [vmem:[%s10571_s7 + $0x830] sm:$0xff] }
 0x69d   : > { %4555 = vmatmul.mubr.f32.gmra.mrb[56].mxu0 %v10588_v36 }
 0x69e   : > { %6522 = vmatpush1.bf16.msra.mxu0 %v6521_v46  ;;  %4560 = vmatprep.mubr.f32.mxu0 %v10584_v1  ;;  %v5558_v46 = vld [vmem:[%s10571_s7 + $0x850] sm:$0xff] }
 0x69f   : > { %6524 = vmatprep.subr.bf16.mxu0 %v6523_v28  ;;  %v5561_v28 = vld [vmem:[%s10571_s7 + $0x868] sm:$0xff] }
 0x6a1   : > { %4561 = vmatmul.mubr.f32.gmra.mrb[90].mxu0 %v9878_v53 }
 0x6a2   : > { %6526 = vmatpush1.bf16.msra.mxu0 %v6525_v24  ;;  %4726 = vmatprep.mubr.f32.mxu0 %v9537_v29  ;;  %v6533_v29 = vpack.c.bf16 %v5554_v11, %v5552_v0  ;;  %v5572_v11 = vld [vmem:[%s10571_s7 + $0x8c0] sm:$0xff] }
 0x6a3   : > { %6528 = vmatprep.subr.bf16.mxu0 %v6527_v10  ;;  %v5564_v10 = vld [vmem:[%s10571_s7 + $0x880] sm:$0xff] }
 0x6a5   : > { %4727 = vmatmul.mubr.f32.vlgmr.msra.gmra.mrb[28].mxu0 %v9489_v15  ;;  %v5563_v15 = vld [vmem:[%s10571_s7 + $0x878] sm:$0xff] }
 0x6a6   : > { %6530 = vmatpush1.bf16.msra.mxu0 %v6529_v31  ;;  %4732 = vmatprep.mubr.f32.mxu0 %v9557_v22  ;;  %v6537_v22 = vpack.c.bf16 %v5558_v46, %v5556_v26  ;;  %v6539_v61 = vpack.c.bf16 %v5563_v15, %v5561_v28  ;;  %v5570_v31 = vld [vmem:[%s10571_s7 + $0x8b0] sm:$0xff]  ;;  %v5576_v46 = vld [vmem:[%s10571_s7 + $0x8e0] sm:$0xff] }
 0x6a7   : > { %6532 = vmatprep.subr.bf16.mxu0 %v6531_v23  ;;  %v5573_v23 = vld [vmem:[%s10571_s7 + $0x8c8] sm:$0xff]  ;;  %v5578_v28 = vld [vmem:[%s10571_s7 + $0x8f0] sm:$0xff] }
 0x6a9   : > { %4733 = vmatmul.mubr.f32.gmra.mrb[92].mxu0 %v9507_v19  ;;  %v5567_v19 = vld [vmem:[%s10571_s7 + $0x898] sm:$0xff] }
 0x6aa   : > { %4736 = vmatprep.mubr.f32.mxu0 %v9597_v18  ;;  %6534 = vmatpush1.bf16.msra.mxu0 %v6533_v29  ;;  %v6541_v18 = vpack.c.bf16 %v5562_v37, %v5560_v30  ;;  %v6543_v24 = vpack.c.bf16 %v5567_v19, %v5565_v16 }
 0x6ab   : > { %6536 = vmatprep.subr.bf16.mxu0 %v6535_v8  ;;  %v6553_v8 = vpack.c.bf16 %v5574_v4, %v5572_v11 }
 0x6ad   : > { %4737 = vmatmul.mubr.f32.gmra.mrb[32].mxu0 %v9549_v35  ;;  %v5571_v35 = vld [vmem:[%s10571_s7 + $0x8b8] sm:$0xff] }
 0x6ae   : > { %4742 = vmatprep.mubr.f32.mxu0 %v9617_v9  ;;  %6538 = vmatpush1.bf16.msra.mxu0 %v6537_v22  ;;  %v6545_v9 = vpack.c.bf16 %v5566_v60, %v5564_v10  ;;  %v6547_v17 = vpack.c.bf16 %v5571_v35, %v5569_v56 }
 0x6af   : > { %6540 = vmatprep.subr.bf16.mxu0 %v6539_v61 }
 0x6b1   : > { %4743 = vmatmul.mubr.f32.gmra.mrb[94].mxu0 %v9567_v43  ;;  %v5575_v43 = vld [vmem:[%s10571_s7 + $0x8d8] sm:$0xff] }
 0x6b2   : > { %4746 = vmatprep.mubr.f32.mxu0 %v9657_v27  ;;  %6542 = vmatpush1.bf16.msra.mxu0 %v6541_v18  ;;  %v6549_v27 = vpack.c.bf16 %v5570_v31, %v5568_v25  ;;  %v6551_v0 = vpack.c.bf16 %v5575_v43, %v5573_v23 }
 0x6b3   : > { %6544 = vmatprep.subr.bf16.mxu0 %v6543_v24 }
 0x6b5   : > { %4747 = vmatmul.mubr.f32.gmra.mrb[36].mxu0 %v9609_v63  ;;  %v5579_v63 = vld [vmem:[%s10571_s7 + $0x8f8] sm:$0xff] }
 0x6b6   : > { %4752 = vmatprep.mubr.f32.mxu0 %v9677_v12  ;;  %6546 = vmatpush1.bf16.msra.mxu0 %v6545_v9  ;;  %v6555_v26 = vpack.c.bf16 %v5579_v63, %v5577_v41  ;;  %v10589_v9 = vld [vmem:[#allocation4_spill] sm:$0xff] }
 0x6b7   : > { %6548 = vmatprep.subr.bf16.mxu0 %v6547_v17 }
 0x6b9   : > { %v10390_v12 = vpop.f32.mrb[156].mxu1  ;;  %4753 = vmatmul.mubr.f32.gmra.mrb[96].mxu0 %v9627_v13 }
 0x6ba   : > { %v10393_v29 = vpop.f32.mrb[157].mxu1  ;;  %4756 = vmatprep.mubr.f32.mxu0 %v9717_v55  ;;  %6550 = vmatpush1.bf16.msra.mxu0 %v6549_v27  ;;  %v6557_v55 = vpack.c.bf16 %v5578_v28, %v5576_v46 }
 0x6bb   : > { %6552 = vmatprep.subr.bf16.mxu0 %v6551_v0 }
 0x6bc   : > { %v4202_v15 = vpop.f32.mrb[30].mxu0 }
 0x6bd   : > { %v4057_v22 = vpop.f32.mrb[158].mxu1  ;;  %v4203_v61 = vpop.f32.mrb[31].mxu0  ;;  %4757 = vmatmul.mubr.f32.gmra.mrb[40].mxu0 %v9669_v48 }
 0x6be   : > { %v4058_v13 = vpop.f32.mrb[159].mxu1  ;;  %4762 = vmatprep.mubr.f32.mxu0 %v9737_v57  ;;  %6554 = vmatpush1.bf16.msra.mxu0 %v6553_v8 }
 0x6bf   : > { %6556 = vmatprep.subr.bf16.mxu0 %v6555_v26 }
 0x6c1   : > { %v10404_v30 = vpop.f32.mrb[160].mxu1  ;;  %4763 = vmatmul.mubr.f32.gmra.mrb[98].mxu0 %v9687_v5 }
 0x6c2   : > { %v10407_v37 = vpop.f32.mrb[161].mxu1  ;;  %4766 = vmatprep.mubr.f32.mxu0 %v9777_v58  ;;  %6558 = vmatpush1.bf16.msra.mxu0 %v6557_v55  ;;  %v6759_v58 = vld [vmem:[%s10570_s6] ss:$0 sm:$0xff] }
 0x6c3   : > { %v3691_v10 = vadd.f32 %v6759_v58, %v9904_v7 }
 0x6c4   : > { %v4212_v16 = vpop.f32.mrb[34].mxu0 }
 0x6c5   : > { %v4067_v19 = vpop.f32.mrb[162].mxu1  ;;  %v4213_v18 = vpop.f32.mrb[35].mxu0  ;;  %4767 = vmatmul.mubr.f32.gmra.mrb[44].mxu0 %v9729_v49  ;;  %v10425_v56 = vmax.f32 %v3691_v10, 0.0 }
 0x6c6   : > { %v4068_v48 = vpop.f32.mrb[163].mxu1  ;;  %4772 = vmatprep.mubr.f32.mxu0 %v9797_v38 }
 0x6c9   : > { %v10412_v57 = vpop.f32.mrb[164].mxu1  ;;  %4773 = vmatmul.mubr.f32.gmra.mrb[100].mxu0 %v9747_v40  ;;  %v3690_v40 = vadd.f32 %v6759_v58, %v9874_v42 }
 0x6ca   : > { %v10415_v24 = vpop.f32.mrb[165].mxu1  ;;  %4776 = vmatprep.mubr.f32.mxu0 %v9837_v52 }
 0x6cb   : > { %v10433_v7 = vmax.f32 %v3690_v40, 0.0 }
 0x6cc   : > { %v4222_v5 = vpop.f32.mrb[38].mxu0 }
 0x6cd   : > { %v4077_v60 = vpop.f32.mrb[166].mxu1  ;;  %v4223_v49 = vpop.f32.mrb[39].mxu0  ;;  %4777 = vmatmul.mubr.f32.gmra.mrb[48].mxu0 %v9789_v51  ;;  %v3721_v31 = vrot.slane %v10433_v7, 1 }
 0x6ce   : > { %v4078_v38 = vpop.f32.mrb[167].mxu1  ;;  %4782 = vmatprep.mubr.f32.mxu0 %v9859_v14  ;;  %v3731_v14 = vrot.slane %v10425_v56, 1 }
 0x6d1   : > { %v10427_v35 = vpop.f32.mrb[168].mxu1  ;;  %4783 = vmatmul.mubr.f32.gmra.mrb[102].mxu0 %v9807_v62  ;;  %v3741_v62 = vsel %vm399_vm2, %v3721_v31, %v3731_v14 }
 0x6d2   : > { %v10430_v52 = vpop.f32.mrb[169].mxu1  ;;  %4786 = vmatprep.mubr.f32.mxu0 %v10589_v9 }
 0x6d4   : > { %v4232_v17 = vpop.f32.mrb[42].mxu0 }
 0x6d5   : > { %v4087_v25 = vpop.f32.mrb[170].mxu1  ;;  %v4233_v51 = vpop.f32.mrb[43].mxu0  ;;  %4787 = vmatmul.mubr.f32.gmra.mrb[52].mxu0 %v9853_v32 }
 0x6d6   : > { %v4088_v42 = vpop.f32.mrb[171].mxu1  ;;  %4792 = vmatprep.mubr.f32.mxu0 %v9925_v45  ;;  %v3751_v45 = vsel %vm399_vm2, %v3731_v14, %v3721_v31 }
 0x6d9   : > { %v10439_v23 = vpop.f32.mrb[172].mxu1  ;;  %4793 = vmatmul.mubr.f32.gmra.mrb[104].mxu0 %v9871_v47 }
 0x6da   : > { %v10444_v43 = vpop.f32.mrb[173].mxu1  ;;  %4796 = vmatprep.mubr.f32.mxu0 %v3741_v62 }
 0x6dc   : > { %v4242_v27 = vpop.f32.mrb[46].mxu0 }
 0x6dd   : > { %v4097_v0 = vpop.f32.mrb[174].mxu1  ;;  %v4243_v32 = vpop.f32.mrb[47].mxu0  ;;  %4797 = vmatmul.mubr.f32.gmra.mrb[56].mxu0 %v10433_v7 }
 0x6de   : > { %v4098_v11 = vpop.f32.mrb[175].mxu1  ;;  %4802 = vmatprep.mubr.f32.mxu0 %v3751_v45 }
 0x6e1   : > { %v10449_v4 = vpop.f32.mrb[176].mxu1  ;;  %4803 = vmatmul.mubr.f32.gmra.mrb[106].mxu0 %v10425_v56 }
 0x6e2   : > { %v10452_v47 = vpop.f32.mrb[177].mxu1  ;;  %4871 = vmatprep.mubr.f32.mxu0 %v10584_v1 }
 0x6e4   : > { %v4252_v41 = vpop.f32.mrb[50].mxu0 }
 0x6e5   : > { %v4107_v63 = vpop.f32.mrb[178].mxu1  ;;  %v4253_v8 = vpop.f32.mrb[51].mxu0  ;;  %4872 = vmatmul.mubr.f32.vlgmr.msra.gmra.mrb[28].mxu0 %v9541_v3 }
 0x6e6   : > { %v4108_v26 = vpop.f32.mrb[179].mxu1  ;;  %4877 = vmatprep.mubr.f32.mxu0 %v10584_v1 }
 0x6e9   : > { %v10457_v46 = vpop.f32.mrb[180].mxu1  ;;  %4878 = vmatmul.mubr.f32.gmra.mrb[108].mxu0 %v9572_v21 }
 0x6ea   : > { %v10460_v28 = vpop.f32.mrb[181].mxu1  ;;  %4881 = vmatprep.mubr.f32.mxu0 %v10584_v1 }
 0x6ec   : > { %v4262_v15 = vpop.f32.mrb[54].mxu0 }
 0x6ed   : > { %v4117_v22 = vpop.f32.mrb[182].mxu1  ;;  %v4263_v61 = vpop.f32.mrb[55].mxu0  ;;  %4882 = vmatmul.mubr.f32.gmra.mrb[32].mxu0 %v9601_v33 }
 0x6ee   : > { %v4118_v13 = vpop.f32.mrb[183].mxu1  ;;  %4887 = vmatprep.mubr.f32.mxu0 %v10584_v1 }
 0x6f1   : > { %v10465_v3 = vpop.f32.mrb[184].mxu1  ;;  %4888 = vmatmul.mubr.f32.gmra.mrb[110].mxu0 %v9632_v6 }
 0x6f2   : > { %v10468_v55 = vpop.f32.mrb[185].mxu1  ;;  %4891 = vmatprep.mubr.f32.mxu0 %v10584_v1 }
 0x6f4   : > { %v4272_v21 = vpop.f32.mrb[58].mxu0 }
 0x6f5   : > { %v4127_v16 = vpop.f32.mrb[186].mxu1  ;;  %v4273_v19 = vpop.f32.mrb[59].mxu0  ;;  %4892 = vmatmul.mubr.f32.gmra.mrb[36].mxu0 %v9661_v44 }
 0x6f6   : > { %v4128_v18 = vpop.f32.mrb[187].mxu1  ;;  %4897 = vmatprep.mubr.f32.mxu0 %v10584_v1 }
 0x6f9   : > { %4898 = vmatmul.mubr.f32.gmra.mrb[112].mxu0 %v9692_v20 }
 0x6fa   : > { %4901 = vmatprep.mubr.f32.mxu0 %v10584_v1 }
 0x6fc   : > { %v4347_v33 = vpop.f32.mrb[60].mxu0 }
 0x6fd   : > { %v4348_v48 = vpop.f32.mrb[61].mxu0  ;;  %4902 = vmatmul.mubr.f32.gmra.mrb[40].mxu0 %v9721_v54 }
 0x6fe   : > { %4907 = vmatprep.mubr.f32.mxu0 %v10584_v1 }
 0x701   : > { %4908 = vmatmul.mubr.f32.gmra.mrb[114].mxu0 %v9752_v34 }
 0x702   : > { %4911 = vmatprep.mubr.f32.mxu0 %v10584_v1 }
 0x704   : > { %v4357_v6 = vpop.f32.mrb[62].mxu0 }
 0x705   : > { %v4358_v5 = vpop.f32.mrb[63].mxu0  ;;  %4912 = vmatmul.mubr.f32.gmra.mrb[44].mxu0 %v9781_v59  ;;  %v3771_v59 = vrot.slane %v10425_v56, 2 }
 0x706   : > { %4917 = vmatprep.mubr.f32.mxu0 %v10584_v1 }
 0x709   : > { %4918 = vmatmul.mubr.f32.gmra.mrb[116].mxu0 %v10587_v39  ;;  %v10590_v39 = vld [vmem:[#allocation5_spill] sm:$0xff] }
 0x70a   : > { %4921 = vmatprep.mubr.f32.mxu0 %v10584_v1 }
 0x70c   : > { %v4367_v44 = vpop.f32.mrb[64].mxu0 }
 0x70d   : > { %v4368_v20 = vpop.f32.mrb[65].mxu0  ;;  %4922 = vmatmul.mubr.f32.gmra.mrb[48].mxu0 %v10588_v36  ;;  %v3761_v36 = vrot.slane %v10433_v7, 2  ;;  %v4972_v44 = vsub.s32 0, %v6837_v2 }
 0x70e   : > { %4927 = vmatprep.mubr.f32.mxu0 %v10584_v1 }
 0x711   : > { %4928 = vmatmul.mubr.f32.gmra.mrb[118].mxu0 %v9878_v53  ;;  %v3781_v53 = vsel %vm464_vm1, %v3761_v36, %v3771_v59 }
 0x712   : > { %4931 = vmatprep.mubr.f32.mxu0 %v10584_v1 }
 0x714   : > { %v4377_v54 = vpop.f32.mrb[66].mxu0 }
 0x715   : > { %v4378_v34 = vpop.f32.mrb[67].mxu0  ;;  %4932 = vmatmul.mubr.f32.gmra.mrb[52].mxu0 %v9912_v50  ;;  %v3791_v50 = vsel %vm464_vm1, %v3771_v59, %v3761_v36  ;;  %v4968_v54 = vld [vmem:[%s10572_s8] sm:$0x3] }
 0x716   : > { %4937 = vmatprep.mubr.f32.mxu0 %v10584_v1  ;;  %v4976_v34 = vsub.s32 1, %v6837_v2 }
 0x719   : > { %4938 = vmatmul.mubr.f32.gmra.mrb[120].mxu0 %v10590_v39  ;;  %v10503_v39 = vrot.slane %v4968_v54, %v4972_v44 }
 0x71a   : > { %4941 = vmatprep.mubr.f32.mxu0 %v10584_v1 }
 0x71c   : > { %v4387_v58 = vpop.f32.mrb[68].mxu0 }
 0x71d   : > { %v4388_v10 = vpop.f32.mrb[69].mxu0  ;;  %4942 = vmatmul.mubr.f32.gmra.mrb[56].mxu0 %v3781_v53  ;;  %v10505_v58 = vrot.slane %v4968_v54, %v4976_v34 }
 0x71e   : > { %4947 = vmatprep.mubr.f32.mxu0 %v10584_v1 }
 0x721   : > { %4948 = vmatmul.mubr.f32.gmra.mrb[122].mxu0 %v3791_v50 }
 0x724   : > { %v4397_v60 = vpop.f32.mrb[70].mxu0 }
 0x725   : > { %v4398_v49 = vpop.f32.mrb[71].mxu0 }
 0x72c   : > { %v4407_v38 = vpop.f32.mrb[72].mxu0 }
 0x72d   : > { %v4408_v40 = vpop.f32.mrb[73].mxu0 }
 0x734   : > { %v4417_v56 = vpop.f32.mrb[74].mxu0 }
 0x735   : > { %v4418_v9 = vpop.f32.mrb[75].mxu0 }
 0x73c   : > { %v4492_v17 = vpop.f32.mrb[76].mxu0 }
 0x73d   : > { %v4493_v7 = vpop.f32.mrb[77].mxu0 }
 0x744   : > { %v4502_v25 = vpop.f32.mrb[78].mxu0 }
 0x745   : > { %v4503_v51 = vpop.f32.mrb[79].mxu0 }
 0x74c   : > { %v4512_v14 = vpop.f32.mrb[80].mxu0 }
 0x74d   : > { %v4513_v42 = vpop.f32.mrb[81].mxu0 }
 0x754   : > { %v4522_v31 = vpop.f32.mrb[82].mxu0 }
 0x755   : > { %v4523_v62 = vpop.f32.mrb[83].mxu0 }
 0x75c   : > { %v4532_v27 = vpop.f32.mrb[84].mxu0 }
 0x75d   : > { %v4533_v1 = vpop.f32.mrb[85].mxu0 }
 0x764   : > { %v4542_v0 = vpop.f32.mrb[86].mxu0 }
 0x765   : > { %v4543_v32 = vpop.f32.mrb[87].mxu0 }
 0x76c   : > { %v4552_v45 = vpop.f32.mrb[88].mxu0 }
 0x76d   : > { %v4553_v11 = vpop.f32.mrb[89].mxu0 }
 0x774   : > { %v4562_v41 = vpop.f32.mrb[90].mxu0 }
 0x775   : > { %v4563_v63 = vpop.f32.mrb[91].mxu0 }
 0x77c   : > { %v4734_v8 = vpop.f32.mrb[92].mxu0 }
 0x77d   : > { %v4735_v26 = vpop.f32.mrb[93].mxu0 }
 0x784   : > { %v4744_v15 = vpop.f32.mrb[94].mxu0 }
 0x785   : > { %v4745_v22 = vpop.f32.mrb[95].mxu0 }
 0x78c   : > { %v4754_v61 = vpop.f32.mrb[96].mxu0 }
 0x78d   : > { %v4755_v13 = vpop.f32.mrb[97].mxu0 }
 0x794   : > { %v4764_v21 = vpop.f32.mrb[98].mxu0 }
 0x795   : > { %v4765_v16 = vpop.f32.mrb[99].mxu0 }
 0x79c   : > { %v4774_v19 = vpop.f32.mrb[100].mxu0 }
 0x79d   : > { %v4775_v18 = vpop.f32.mrb[101].mxu0 }
 0x7a4   : > { %v4784_v33 = vpop.f32.mrb[102].mxu0 }
 0x7a5   : > { %v4785_v48 = vpop.f32.mrb[103].mxu0 }
 0x7ac   : > { %v4794_v6 = vpop.f32.mrb[104].mxu0 }
 0x7ad   : > { %v4795_v5 = vpop.f32.mrb[105].mxu0 }
 0x7b4   : > { %v4804_v20 = vpop.f32.mrb[106].mxu0 }
 0x7b5   : > { %v4805_v59 = vpop.f32.mrb[107].mxu0 }
 0x7b8   : > { %v4873_v36 = vpop.f32.mrb[28].mxu0 }
 0x7b9   : > { %v6573_v53 = vadd.f32 %v4873_v36, %v10390_v12  ;;  %v4875_v10 = vpop.f32.mrb[29].mxu0 }
 0x7ba   : > { %v6574_v50 = vadd.f32 %v4875_v10, %v10393_v29 }
 0x7bb   : > { %v4980_v60 = vadd.f32 %v6573_v53, %v10503_v39 }
 0x7bc   : > { %v4981_v2 = vadd.f32 %v6574_v50, %v10505_v58  ;;  %v4879_v49 = vpop.f32.mrb[108].mxu0 }
 0x7bd   : > { %v4996_v38 = vmax.f32 %v4980_v60, 0.0  ;;  %v4880_v40 = vpop.f32.mrb[109].mxu0 }
 0x7be   : > { %v4997_v12 = vmax.f32 %v4981_v2, 0.0 }
 0x7bf   : > { %5012 = vst [vmem:[%s10514_s18] sm:$0x7f] %v4996_v38 }
 0x7c0   : > { %5013 = vst [vmem:[%s10514_s18 + $0x8] sm:$0x7f] %v4997_v12  ;;  %v4883_v29 = vpop.f32.mrb[32].mxu0 }
 0x7c1   : > { %v6575_v56 = vadd.f32 %v4883_v29, %v10404_v30  ;;  %v4885_v9 = vpop.f32.mrb[33].mxu0 }
 0x7c2   : > { %v6576_v17 = vadd.f32 %v4885_v9, %v10407_v37 }
 0x7c3   : > { %v4982_v7 = vadd.f32 %v6575_v56, %v10503_v39 }
 0x7c4   : > { %v4983_v25 = vadd.f32 %v6576_v17, %v10505_v58  ;;  %v4889_v51 = vpop.f32.mrb[110].mxu0 }
 0x7c5   : > { %v4998_v14 = vmax.f32 %v4982_v7, 0.0  ;;  %v4890_v42 = vpop.f32.mrb[111].mxu0 }
 0x7c6   : > { %v4999_v31 = vmax.f32 %v4983_v25, 0.0 }
 0x7c7   : > { %5014 = vst [vmem:[%s10514_s18 + $0x10] sm:$0x7f] %v4998_v14 }
 0x7c8   : > { %5015 = vst [vmem:[%s10514_s18 + $0x18] sm:$0x7f] %v4999_v31  ;;  %v4893_v62 = vpop.f32.mrb[36].mxu0 }
 0x7c9   : > { %v6577_v27 = vadd.f32 %v4893_v62, %v10412_v57  ;;  %v4895_v1 = vpop.f32.mrb[37].mxu0 }
 0x7ca   : > { %v6578_v30 = vadd.f32 %v4895_v1, %v10415_v24 }
 0x7cb   : > { %v4984_v37 = vadd.f32 %v6577_v27, %v10503_v39 }
 0x7cc   : > { %v4985_v0 = vadd.f32 %v6578_v30, %v10505_v58  ;;  %v4899_v32 = vpop.f32.mrb[112].mxu0 }
 0x7cd   : > { %v5000_v45 = vmax.f32 %v4984_v37, 0.0  ;;  %v4900_v11 = vpop.f32.mrb[113].mxu0 }
 0x7ce   : > { %v5001_v41 = vmax.f32 %v4985_v0, 0.0 }
 0x7cf   : > { %5016 = vst [vmem:[%s10514_s18 + $0x20] sm:$0x7f] %v5000_v45 }
 0x7d0   : > { %5017 = vst [vmem:[%s10514_s18 + $0x28] sm:$0x7f] %v5001_v41  ;;  %v4903_v63 = vpop.f32.mrb[40].mxu0 }
 0x7d1   : > { %v6579_v8 = vadd.f32 %v4903_v63, %v10427_v35  ;;  %v4905_v26 = vpop.f32.mrb[41].mxu0 }
 0x7d2   : > { %v6580_v57 = vadd.f32 %v4905_v26, %v10430_v52 }
 0x7d3   : > { %v4986_v24 = vadd.f32 %v6579_v8, %v10503_v39 }
 0x7d4   : > { %v4987_v15 = vadd.f32 %v6580_v57, %v10505_v58  ;;  %v4909_v22 = vpop.f32.mrb[114].mxu0 }
 0x7d5   : > { %v5002_v61 = vmax.f32 %v4986_v24, 0.0  ;;  %v4910_v13 = vpop.f32.mrb[115].mxu0 }
 0x7d6   : > { %v5003_v21 = vmax.f32 %v4987_v15, 0.0 }
 0x7d7   : > { %5018 = vst [vmem:[%s10514_s18 + $0x30] sm:$0x7f] %v5002_v61 }
 0x7d8   : > { %5019 = vst [vmem:[%s10514_s18 + $0x38] sm:$0x7f] %v5003_v21  ;;  %v4913_v16 = vpop.f32.mrb[44].mxu0 }
 0x7d9   : > { %v6581_v19 = vadd.f32 %v4913_v16, %v10439_v23  ;;  %v4915_v18 = vpop.f32.mrb[45].mxu0 }
 0x7da   : > { %v6582_v35 = vadd.f32 %v4915_v18, %v10444_v43 }
 0x7db   : > { %v4988_v52 = vadd.f32 %v6581_v19, %v10503_v39 }
 0x7dc   : > { %v4989_v33 = vadd.f32 %v6582_v35, %v10505_v58  ;;  %v4919_v48 = vpop.f32.mrb[116].mxu0 }
 0x7dd   : > { %v5004_v6 = vmax.f32 %v4988_v52, 0.0  ;;  %v4920_v5 = vpop.f32.mrb[117].mxu0 }
 0x7de   : > { %v5005_v44 = vmax.f32 %v4989_v33, 0.0 }
 0x7df   : > { %5020 = vst [vmem:[%s10514_s18 + $0x40] sm:$0x7f] %v5004_v6 }
 0x7e0   : > { %5021 = vst [vmem:[%s10514_s18 + $0x48] sm:$0x7f] %v5005_v44  ;;  %v4923_v20 = vpop.f32.mrb[48].mxu0 }
 0x7e1   : > { %v6583_v54 = vadd.f32 %v4923_v20, %v10449_v4  ;;  %v4925_v34 = vpop.f32.mrb[49].mxu0 }
 0x7e2   : > { %v6584_v23 = vadd.f32 %v4925_v34, %v10452_v47 }
 0x7e3   : > { %v4990_v43 = vadd.f32 %v6583_v54, %v10503_v39 }
 0x7e4   : > { %v4991_v59 = vadd.f32 %v6584_v23, %v10505_v58  ;;  %v4929_v36 = vpop.f32.mrb[118].mxu0 }
 0x7e5   : > { %v5006_v53 = vmax.f32 %v4990_v43, 0.0  ;;  %v4930_v10 = vpop.f32.mrb[119].mxu0 }
 0x7e6   : > { %v5007_v50 = vmax.f32 %v4991_v59, 0.0 }
 0x7e7   : > { %5022 = vst [vmem:[%s10514_s18 + $0x50] sm:$0x7f] %v5006_v53 }
 0x7e8   : > { %5023 = vst [vmem:[%s10514_s18 + $0x58] sm:$0x7f] %v5007_v50  ;;  %v4933_v60 = vpop.f32.mrb[52].mxu0 }
 0x7e9   : > { %v6585_v2 = vadd.f32 %v4933_v60, %v10457_v46  ;;  %v4935_v49 = vpop.f32.mrb[53].mxu0 }
 0x7ea   : > { %v6586_v4 = vadd.f32 %v4935_v49, %v10460_v28 }
 0x7eb   : > { %v4992_v47 = vadd.f32 %v6585_v2, %v10503_v39 }
 0x7ec   : > { %v4993_v38 = vadd.f32 %v6586_v4, %v10505_v58  ;;  %v4939_v40 = vpop.f32.mrb[120].mxu0 }
 0x7ed   : > { %v5008_v12 = vmax.f32 %v4992_v47, 0.0  ;;  %v4940_v29 = vpop.f32.mrb[121].mxu0 }
 0x7ee   : > { %v5009_v56 = vmax.f32 %v4993_v38, 0.0 }
 0x7ef   : > { %5024 = vst [vmem:[%s10514_s18 + $0x60] sm:$0x7f] %v5008_v12 }
 0x7f0   : > { %5025 = vst [vmem:[%s10514_s18 + $0x68] sm:$0x7f] %v5009_v56  ;;  %v4943_v9 = vpop.f32.mrb[56].mxu0 }
 0x7f1   : > { %v6587_v17 = vadd.f32 %v4943_v9, %v10465_v3  ;;  %v4945_v7 = vpop.f32.mrb[57].mxu0 }
 0x7f2   : > { %v6588_v46 = vadd.f32 %v4945_v7, %v10468_v55 }
 0x7f3   : > { %v4994_v28 = vadd.f32 %v6587_v17, %v10503_v39 }
 0x7f4   : > { %v4995_v25 = vadd.f32 %v6588_v46, %v10505_v58  ;;  %v4949_v51 = vpop.f32.mrb[122].mxu0 }
 0x7f5   : > { %v5010_v14 = vmax.f32 %v4994_v28, 0.0  ;;  %v4950_v42 = vpop.f32.mrb[123].mxu0 }
 0x7f6   : > { %v5011_v31 = vmax.f32 %v4995_v25, 0.0 }
 0x7f7   : > { %5026 = vst [vmem:[%s10514_s18 + $0x70] sm:$0x7f] %v5010_v14 }
 0x7f8   : > { %5027 = vst [vmem:[%s10514_s18 + $0x78] sm:$0x7f] %v5011_v31 }
 0x7f9 PF: > { %s19_s30 = sadd.s32 1, %s6766_s30  }
 0x7fa   : > { %p16_p4 = scmp.ge.s32.totalorder %s19_s30, 4  }
 0x7fc   :  { %18 = sbr.rel (!%p16_p4) target bundleno = 1 (0x1), region = 94 }

</bundles_post_ra>
